<compile_context>
chip_gen: v6e
topology: v6e:2x2x1
jax: 0.10.0
libtpu: 0.0.40
codegen_flags: <defaults>
</compile_context>

<pallas_src>
import functools

import numpy as np
import jax
import jax.numpy as jnp
from jax.experimental import pallas as pl
from jax.experimental.pallas import tpu as pltpu

_INV_SQRT2 = 0.7071067811865476


def _gelu(x, approx=False):
    if approx:
        # tanh-approximate GELU: lowers to the EUP (own bundle slot).
        return jax.nn.gelu(x, approximate=True)
    # Exact erf-based GELU, matching torch.nn.GELU() default. gelu(0) == 0.
    return 0.5 * x * (1.0 + jax.lax.erf(x * _INV_SQRT2))


def sparse_mlp_kernel(zT_ref, w1z_ref, w1x_ref, wmid_ref, wfin_ref,
                      out_ref, h0_ref, *, nsub, approx_gelu):
    # zT_ref   : (d, TB)               batch-on-lanes input tile
    # w1z_ref  : (d*hidden, d)         fc1 rows stacked per idx, cols<idx zeroed
    # w1x_ref  : (d, hidden, d)        fc1 per idx, cols>=idx zeroed (x part)
    # wmid_ref : (d, n_mid, hidden, hidden)
    # wfin_ref : (d, hidden)           final-layer weight row of each MLP
    # out_ref  : (d, TB)
    # h0_ref   : (d*hidden, TB)        VMEM scratch for the hoisted z-term
    d, tb = zT_ref.shape
    hidden = wfin_ref.shape[1]
    n_mid = wmid_ref.shape[1]
    sub = tb // nsub
    gelu = functools.partial(_gelu, approx=approx_gelu)

    row = jax.lax.broadcasted_iota(jnp.int32, (d, sub), 0)

    # Hoisted z-contribution of every MLP's first layer: one big, well-cadenced
    # MXU matmul (M = d*hidden, K = d, N = sub) per sub-tile instead of d tiny
    # K=d matmuls inside the serial idx chain.  Lives in VMEM scratch; the
    # per-idx slice reads are cheap aligned vlds (hidden is a multiple of 8).
    for s in range(nsub):
        z_s = zT_ref[:, s * sub:(s + 1) * sub]
        h0_ref[:, s * sub:(s + 1) * sub] = jnp.dot(
            w1z_ref[...], z_s, preferred_element_type=jnp.float32)

    wfin_all = wfin_ref[...]                               # (d, hidden)
    xs = [jnp.zeros((d, sub), jnp.float32) for _ in range(nsub)]

    # d / n_layers are small & static -> unroll the serial dependency chain.
    # TODO(synk): switch to lax.fori_loop with dynamic weight indexing if
    # d or n_layers grows beyond toy sizes (vreg pressure / code size).
    for idx in range(d):
        w1x = w1x_ref[idx]                                 # (hidden, d)
        wmids = [wmid_ref[idx, m] for m in range(n_mid)]   # (hidden, hidden)
        wfin_row = wfin_all[idx:idx + 1, :]                # (1, hidden)
        for s in range(nsub):   # independent sub-chains -> scheduler interleaves
            pre = h0_ref[idx * hidden:(idx + 1) * hidden,
                         s * sub:(s + 1) * sub]            # (hidden, sub)
            if idx > 0:
                # x rows >= idx are still exactly 0 and w1x cols >= idx are 0,
                # so this adds exactly the concat(x[:, :idx], ...) contribution.
                pre = pre + jnp.dot(w1x, xs[s],
                                    preferred_element_type=jnp.float32)
            h = gelu(pre)
            for m in range(n_mid):
                h = gelu(jnp.dot(wmids[m], h,
                                 preferred_element_type=jnp.float32))
            # Only row idx of the output is meaningful -> 1-row matmul + GELU,
            # then place with a cheap VPU select.
            g = gelu(jnp.dot(wfin_row, h,
                             preferred_element_type=jnp.float32))  # (1, sub)
            xs[s] = jnp.where(row == idx, g, xs[s])

    for s in range(nsub):
        out_ref[:, s * sub:(s + 1) * sub] = xs[s]


def sparse_mlp_forward(z, w1, wmid, wfin, *, tb=512, nsub=2, approx_gelu=False):
    """z: (B, d); w1: (d, d, hidden); wmid: (d, n_mid, hidden, hidden);
    wfin: (d, hidden, 1)   (weights given in the `x @ W` i.e. (in, out) layout)."""
    B, d = z.shape
    hidden = w1.shape[2]
    n_mid = wmid.shape[1]

    # Kernel-side layouts: (out, in) weights; fc1 split into the z-part
    # (cols >= idx, hoisted out of the serial chain) and the x-part
    # (cols < idx, applied per idx); batch-last z.
    w1_t = jnp.swapaxes(w1, 1, 2)                          # (d, hidden, d)
    col_ge_idx = (jnp.arange(d)[None, None, :] >=
                  jnp.arange(d)[:, None, None])            # (d, 1, d)
    w1_z = jnp.where(col_ge_idx, w1_t, 0.0).reshape(d * hidden, d)
    w1_x = jnp.where(col_ge_idx, 0.0, w1_t)                # (d, hidden, d)
    wmid_t = jnp.swapaxes(wmid, 2, 3)                      # (d, n_mid, h, h)
    wfin_rows = wfin[:, :, 0]                              # (d, hidden)
    zT = z.T                                               # (d, B)

    # Tile selection: lane-dense (multiple-of-128) sub-tiles, prefer 256-lane
    # sub-chains (fills the v6e/v7x 256-wide MXU), and keep >= 2 "parallel"
    # grid steps when B allows (v7x has 2 TensorCores).
    if B % tb != 0 or tb % 128 != 0:
        tb = B                                 # single (possibly masked) tile
    while B // tb < 2 and tb % 256 == 0:
        tb //= 2
    if nsub < 1 or tb % nsub != 0 or (tb // nsub) % 128 != 0:
        nsub = 1                               # keep sub-tiles lane-aligned

    flops = 2 * B * d * (hidden * d + n_mid * hidden * hidden + hidden)
    transcendentals = B * d * (hidden * (1 + n_mid) + 1)
    bytes_accessed = 4 * (2 * B * d + w1_z.size + w1_x.size
                          + wmid_t.size + wfin_rows.size)

    out_t = pl.pallas_call(
        functools.partial(sparse_mlp_kernel, nsub=nsub,
                          approx_gelu=approx_gelu),
        out_shape=jax.ShapeDtypeStruct((d, B), jnp.float32),
        grid=(B // tb,),
        in_specs=[
            pl.BlockSpec((d, tb), lambda i: (0, i)),
            # Weights: full-array blocks with constant index_maps -> DMA'd
            # once, resident in VMEM across all grid steps (~15 KB here).
            pl.BlockSpec(w1_z.shape, lambda i: (0, 0)),
            pl.BlockSpec(w1_x.shape, lambda i: (0, 0, 0)),
            pl.BlockSpec(wmid_t.shape, lambda i: (0, 0, 0, 0)),
            pl.BlockSpec(wfin_rows.shape, lambda i: (0, 0)),
        ],
        out_specs=pl.BlockSpec((d, tb), lambda i: (0, i)),
        scratch_shapes=[pltpu.VMEM((d * hidden, tb), jnp.float32)],
        compiler_params=pltpu.CompilerParams(
            dimension_semantics=("parallel",)),
        cost_estimate=pl.CostEstimate(
            flops=flops, transcendentals=transcendentals,
            bytes_accessed=bytes_accessed),
    )(zT, w1_z, w1_x, wmid_t, wfin_rows)
    return out_t.T


def sparse_mlp_reference(z, w1, wmid, wfin):
    # Pure-JAX mirror of the PyTorch forward, for correctness checking.
    B, d = z.shape
    n_mid = wmid.shape[1]
    x = jnp.zeros((B, d), jnp.float32)
    for idx in range(d):
        inp = jnp.concatenate([x[:, :idx], z[:, idx:]], axis=1)
        h = _gelu(inp @ w1[idx])
        for m in range(n_mid):
            h = _gelu(h @ wmid[idx, m])
        y = _gelu(h @ wfin[idx])            # (B, 1)
        x = x.at[:, idx].set(y[:, 0])
    return x


def make_params(key, d, n_layers, hidden):
    """Deterministic synthetic parameters matching make_sparse_mlp shapes."""
    n_mid = n_layers - 2
    k_sp, k1, k2, k3 = jax.random.split(key, 4)
    # sparsity: (d, d) binary matrix; row i sparsifies the first layer of MLP i.
    sparsity = (jax.random.uniform(k_sp, (d, d)) > 0.5).astype(jnp.float32)
    # fc1: uniform(5, 10), zero input columns where sparsity row == 0.
    w1 = jax.random.uniform(k1, (d, d, hidden), minval=5.0, maxval=10.0,
                            dtype=jnp.float32)
    w1 = w1 * (sparsity != 0).astype(jnp.float32)[:, :, None]
    # hidden layers: uniform(0, 1)
    wmid = jax.random.uniform(k2, (d, n_mid, hidden, hidden),
                              minval=0.0, maxval=1.0, dtype=jnp.float32)
    # final layer hidden -> 1: uniform(0, 1)
    wfin = jax.random.uniform(k3, (d, hidden, 1),
                              minval=0.0, maxval=1.0, dtype=jnp.float32)
    return w1, wmid, wfin


if __name__ == "__main__":
    B = 1024       # 2 "parallel" grid steps of 512; 2 x 256-lane sub-chains each
    d = 8          # number of features / number of per-feature MLPs
    n_layers = 3   # fc1 + 1 hidden + fc_final
    hidden = 2 * d

    key = jax.random.PRNGKey(0)
    k_params, k_z = jax.random.split(key)
    w1, wmid, wfin = make_params(k_params, d, n_layers, hidden)
    z = jax.random.normal(k_z, (B, d), dtype=jnp.float32)

    out = sparse_mlp_forward(z, w1, wmid, wfin, tb=512, nsub=2)
    out = jax.block_until_ready(out)

    ref = sparse_mlp_reference(z, w1, wmid, wfin)
    # MXU accumulation order differs from the pure-XLA reference and values
    # reach ~1e7 with magnitude-5..10 weights, so allow ~1e-4-scale relative
    # drift (previous run failed only the rtol=1e-5 check, max rel diff 1e-4).
    np.testing.assert_allclose(np.asarray(out), np.asarray(ref),
                               rtol=1e-3, atol=1e-3)
    print("KERNEL_OK")
</pallas_src>

<mosaic_0001>
module attributes {stable_mosaic.version = 11 : i64} {
  func.func @sparse_mlp_kernel(%arg0: i32, %arg1: memref<8x512xf32, #tpu.memory_space<vmem>>, %arg2: memref<128x8xf32, #tpu.memory_space<vmem>>, %arg3: memref<8x16x8xf32, #tpu.memory_space<vmem>>, %arg4: memref<8x1x16x16xf32, #tpu.memory_space<vmem>>, %arg5: memref<8x16xf32, #tpu.memory_space<vmem>>, %arg6: memref<8x512xf32, #tpu.memory_space<vmem>>, %arg7: memref<128x512xf32, #tpu.memory_space<vmem>>) attributes {dimension_semantics = [#tpu.dimension_semantics<parallel>], iteration_bounds = array<i64: 2>, scalar_prefetch = 0 : i64, scratch_operands = 1 : i64, tpu.core_type = #tpu.core_type<tc>, window_params = [{transform_indices = @transform_0, window_bounds = array<i64: 8, 512>}, {pipeline_mode = #tpu.pipeline_mode<synchronous>, transform_indices = @transform_1, window_bounds = array<i64: 128, 8>}, {pipeline_mode = #tpu.pipeline_mode<synchronous>, transform_indices = @transform_2, window_bounds = array<i64: 8, 16, 8>}, {pipeline_mode = #tpu.pipeline_mode<synchronous>, transform_indices = @transform_3, window_bounds = array<i64: 8, 1, 16, 16>}, {pipeline_mode = #tpu.pipeline_mode<synchronous>, transform_indices = @transform_4, window_bounds = array<i64: 8, 16>}, {transform_indices = @transform_5, window_bounds = array<i64: 8, 512>}]} {
    %0 = tpu.iota {dimensions = array<i32: 0>} : vector<8x256xi32>
    %c0 = arith.constant 0 : index
    %c0_0 = arith.constant 0 : index
    %1 = vector.load %arg1[%c0, %c0_0] : memref<8x512xf32, #tpu.memory_space<vmem>>, vector<8x256xf32>
    %c0_1 = arith.constant 0 : index
    %c0_2 = arith.constant 0 : index
    %2 = vector.load %arg2[%c0_1, %c0_2] : memref<128x8xf32, #tpu.memory_space<vmem>>, vector<128x8xf32>
    %cst = arith.constant dense<0.000000e+00> : vector<128x256xf32>
    %3 = tpu.matmul %2, %1, %cst {dimension_numbers = #tpu.dot_dimension_numbers<[1], [0], [0], [1], [0, 0, 1, 1], [], []>} : vector<128x8xf32>, vector<8x256xf32>, vector<128x256xf32> -> vector<128x256xf32>
    %c0_3 = arith.constant 0 : index
    %c0_4 = arith.constant 0 : index
    %4 = vector.load %arg7[%c0_3, %c0_4] : memref<128x512xf32, #tpu.memory_space<vmem>>, vector<128x256xf32>
    tpu.vector_store %arg7[%c0_3, %c0_4], %3 {strides = array<i32>} : memref<128x512xf32, #tpu.memory_space<vmem>>, vector<128x256xf32>,
    %c0_5 = arith.constant 0 : index
    %c256 = arith.constant 256 : index
    %5 = vector.load %arg1[%c0_5, %c256] : memref<8x512xf32, #tpu.memory_space<vmem>>, vector<8x256xf32>
    %c0_6 = arith.constant 0 : index
    %c0_7 = arith.constant 0 : index
    %6 = vector.load %arg2[%c0_6, %c0_7] : memref<128x8xf32, #tpu.memory_space<vmem>>, vector<128x8xf32>
    %cst_8 = arith.constant dense<0.000000e+00> : vector<128x256xf32>
    %7 = tpu.matmul %6, %5, %cst_8 {dimension_numbers = #tpu.dot_dimension_numbers<[1], [0], [0], [1], [0, 0, 1, 1], [], []>} : vector<128x8xf32>, vector<8x256xf32>, vector<128x256xf32> -> vector<128x256xf32>
    %c0_9 = arith.constant 0 : index
    %c256_10 = arith.constant 256 : index
    %8 = vector.load %arg7[%c0_9, %c256_10] : memref<128x512xf32, #tpu.memory_space<vmem>>, vector<128x256xf32>
    tpu.vector_store %arg7[%c0_9, %c256_10], %7 {strides = array<i32>} : memref<128x512xf32, #tpu.memory_space<vmem>>, vector<128x256xf32>,
    %c0_11 = arith.constant 0 : index
    %c0_12 = arith.constant 0 : index
    %9 = vector.load %arg5[%c0_11, %c0_12] : memref<8x16xf32, #tpu.memory_space<vmem>>, vector<8x16xf32>
    %cst_13 = arith.constant 0.000000e+00 : f32
    %10 = vector.broadcast %cst_13 : f32 to vector<8x256xf32>
    %cst_14 = arith.constant 0.000000e+00 : f32
    %11 = vector.broadcast %cst_14 : f32 to vector<8x256xf32>
    %c0_15 = arith.constant 0 : index
    %c0_16 = arith.constant 0 : index
    %c0_17 = arith.constant 0 : index
    %c0_18 = arith.constant 0 : index
    %12 = vector.load %arg4[%c0_15, %c0_16, %c0_17, %c0_18] : memref<8x1x16x16xf32, #tpu.memory_space<vmem>>, vector<1x1x16x16xf32>
    %13 = vector.shape_cast %12 : vector<1x1x16x16xf32> to vector<16x16xf32>
    %14 = vector.extract_strided_slice %9 {offsets = [0, 0], sizes = [1, 16], strides = [1, 1]} : vector<8x16xf32> to vector<1x16xf32>
    %c0_19 = arith.constant 0 : index
    %c0_20 = arith.constant 0 : index
    %15 = vector.load %arg7[%c0_19, %c0_20] : memref<128x512xf32, #tpu.memory_space<vmem>>, vector<16x256xf32>
    %cst_21 = arith.constant 5.000000e-01 : f32
    %16 = vector.broadcast %cst_21 : f32 to vector<16x256xf32>
    %17 = arith.mulf %16, %15 : vector<16x256xf32>
    %cst_22 = arith.constant 0.707106769 : f32
    %18 = vector.broadcast %cst_22 : f32 to vector<16x256xf32>
    %19 = arith.mulf %15, %18 : vector<16x256xf32>
    %20 = math.erf %19 : vector<16x256xf32>
    %cst_23 = arith.constant 1.000000e+00 : f32
    %21 = vector.broadcast %cst_23 : f32 to vector<16x256xf32>
    %22 = arith.addf %21, %20 : vector<16x256xf32>
    %23 = arith.mulf %17, %22 : vector<16x256xf32>
    %cst_24 = arith.constant dense<0.000000e+00> : vector<16x256xf32>
    %24 = tpu.matmul %13, %23, %cst_24 {dimension_numbers = #tpu.dot_dimension_numbers<[1], [0], [0], [1], [0, 0, 1, 1], [], []>} : vector<16x16xf32>, vector<16x256xf32>, vector<16x256xf32> -> vector<16x256xf32>
    %cst_25 = arith.constant 5.000000e-01 : f32
    %25 = vector.broadcast %cst_25 : f32 to vector<16x256xf32>
    %26 = arith.mulf %25, %24 : vector<16x256xf32>
    %cst_26 = arith.constant 0.707106769 : f32
    %27 = vector.broadcast %cst_26 : f32 to vector<16x256xf32>
    %28 = arith.mulf %24, %27 : vector<16x256xf32>
    %29 = math.erf %28 : vector<16x256xf32>
    %cst_27 = arith.constant 1.000000e+00 : f32
    %30 = vector.broadcast %cst_27 : f32 to vector<16x256xf32>
    %31 = arith.addf %30, %29 : vector<16x256xf32>
    %32 = arith.mulf %26, %31 : vector<16x256xf32>
    %cst_28 = arith.constant dense<0.000000e+00> : vector<1x256xf32>
    %33 = tpu.matmul %14, %32, %cst_28 {dimension_numbers = #tpu.dot_dimension_numbers<[1], [0], [0], [1], [0, 0, 1, 1], [], []>} : vector<1x16xf32>, vector<16x256xf32>, vector<1x256xf32> -> vector<1x256xf32>
    %cst_29 = arith.constant 5.000000e-01 : f32
    %34 = vector.broadcast %cst_29 : f32 to vector<1x256xf32>
    %35 = arith.mulf %34, %33 : vector<1x256xf32>
    %cst_30 = arith.constant 0.707106769 : f32
    %36 = vector.broadcast %cst_30 : f32 to vector<1x256xf32>
    %37 = arith.mulf %33, %36 : vector<1x256xf32>
    %38 = math.erf %37 : vector<1x256xf32>
    %cst_31 = arith.constant 1.000000e+00 : f32
    %39 = vector.broadcast %cst_31 : f32 to vector<1x256xf32>
    %40 = arith.addf %39, %38 : vector<1x256xf32>
    %41 = arith.mulf %35, %40 : vector<1x256xf32>
    %c0_i32 = arith.constant 0 : i32
    %42 = vector.broadcast %c0_i32 : i32 to vector<8x256xi32>
    %43 = arith.cmpi eq, %0, %42 : vector<8x256xi32>
    %44 = vector.shape_cast %41 : vector<1x256xf32> to vector<1x256xf32>
    %45 = vector.broadcast %44 : vector<1x256xf32> to vector<8x256xf32>
    %46 = arith.select %43, %45, %10 : vector<8x256xi1>, vector<8x256xf32>
    %c0_32 = arith.constant 0 : index
    %c256_33 = arith.constant 256 : index
    %47 = vector.load %arg7[%c0_32, %c256_33] : memref<128x512xf32, #tpu.memory_space<vmem>>, vector<16x256xf32>
    %cst_34 = arith.constant 5.000000e-01 : f32
    %48 = vector.broadcast %cst_34 : f32 to vector<16x256xf32>
    %49 = arith.mulf %48, %47 : vector<16x256xf32>
    %cst_35 = arith.constant 0.707106769 : f32
    %50 = vector.broadcast %cst_35 : f32 to vector<16x256xf32>
    %51 = arith.mulf %47, %50 : vector<16x256xf32>
    %52 = math.erf %51 : vector<16x256xf32>
    %cst_36 = arith.constant 1.000000e+00 : f32
    %53 = vector.broadcast %cst_36 : f32 to vector<16x256xf32>
    %54 = arith.addf %53, %52 : vector<16x256xf32>
    %55 = arith.mulf %49, %54 : vector<16x256xf32>
    %cst_37 = arith.constant dense<0.000000e+00> : vector<16x256xf32>
    %56 = tpu.matmul %13, %55, %cst_37 {dimension_numbers = #tpu.dot_dimension_numbers<[1], [0], [0], [1], [0, 0, 1, 1], [], []>} : vector<16x16xf32>, vector<16x256xf32>, vector<16x256xf32> -> vector<16x256xf32>
    %cst_38 = arith.constant 5.000000e-01 : f32
    %57 = vector.broadcast %cst_38 : f32 to vector<16x256xf32>
    %58 = arith.mulf %57, %56 : vector<16x256xf32>
    %cst_39 = arith.constant 0.707106769 : f32
    %59 = vector.broadcast %cst_39 : f32 to vector<16x256xf32>
    %60 = arith.mulf %56, %59 : vector<16x256xf32>
    %61 = math.erf %60 : vector<16x256xf32>
    %cst_40 = arith.constant 1.000000e+00 : f32
    %62 = vector.broadcast %cst_40 : f32 to vector<16x256xf32>
    %63 = arith.addf %62, %61 : vector<16x256xf32>
    %64 = arith.mulf %58, %63 : vector<16x256xf32>
    %cst_41 = arith.constant dense<0.000000e+00> : vector<1x256xf32>
    %65 = tpu.matmul %14, %64, %cst_41 {dimension_numbers = #tpu.dot_dimension_numbers<[1], [0], [0], [1], [0, 0, 1, 1], [], []>} : vector<1x16xf32>, vector<16x256xf32>, vector<1x256xf32> -> vector<1x256xf32>
    %cst_42 = arith.constant 5.000000e-01 : f32
    %66 = vector.broadcast %cst_42 : f32 to vector<1x256xf32>
    %67 = arith.mulf %66, %65 : vector<1x256xf32>
    %cst_43 = arith.constant 0.707106769 : f32
    %68 = vector.broadcast %cst_43 : f32 to vector<1x256xf32>
    %69 = arith.mulf %65, %68 : vector<1x256xf32>
    %70 = math.erf %69 : vector<1x256xf32>
    %cst_44 = arith.constant 1.000000e+00 : f32
    %71 = vector.broadcast %cst_44 : f32 to vector<1x256xf32>
    %72 = arith.addf %71, %70 : vector<1x256xf32>
    %73 = arith.mulf %67, %72 : vector<1x256xf32>
    %c0_i32_45 = arith.constant 0 : i32
    %74 = vector.broadcast %c0_i32_45 : i32 to vector<8x256xi32>
    %75 = arith.cmpi eq, %0, %74 : vector<8x256xi32>
    %76 = vector.shape_cast %73 : vector<1x256xf32> to vector<1x256xf32>
    %77 = vector.broadcast %76 : vector<1x256xf32> to vector<8x256xf32>
    %78 = arith.select %75, %77, %11 : vector<8x256xi1>, vector<8x256xf32>
    %c1 = arith.constant 1 : index
    %c0_46 = arith.constant 0 : index
    %c0_47 = arith.constant 0 : index
    %79 = vector.load %arg3[%c1, %c0_46, %c0_47] : memref<8x16x8xf32, #tpu.memory_space<vmem>>, vector<1x16x8xf32>
    %80 = vector.shape_cast %79 : vector<1x16x8xf32> to vector<16x8xf32>
    %c1_48 = arith.constant 1 : index
    %c0_49 = arith.constant 0 : index
    %c0_50 = arith.constant 0 : index
    %c0_51 = arith.constant 0 : index
    %81 = vector.load %arg4[%c1_48, %c0_49, %c0_50, %c0_51] : memref<8x1x16x16xf32, #tpu.memory_space<vmem>>, vector<1x1x16x16xf32>
    %82 = vector.shape_cast %81 : vector<1x1x16x16xf32> to vector<16x16xf32>
    %83 = vector.extract_strided_slice %9 {offsets = [1, 0], sizes = [1, 16], strides = [1, 1]} : vector<8x16xf32> to vector<1x16xf32>
    %c16 = arith.constant 16 : index
    %c0_52 = arith.constant 0 : index
    %84 = vector.load %arg7[%c16, %c0_52] : memref<128x512xf32, #tpu.memory_space<vmem>>, vector<16x256xf32>
    %cst_53 = arith.constant dense<0.000000e+00> : vector<16x256xf32>
    %85 = tpu.matmul %80, %46, %cst_53 {dimension_numbers = #tpu.dot_dimension_numbers<[1], [0], [0], [1], [0, 0, 1, 1], [], []>} : vector<16x8xf32>, vector<8x256xf32>, vector<16x256xf32> -> vector<16x256xf32>
    %86 = arith.addf %84, %85 : vector<16x256xf32>
    %cst_54 = arith.constant 5.000000e-01 : f32
    %87 = vector.broadcast %cst_54 : f32 to vector<16x256xf32>
    %88 = arith.mulf %87, %86 : vector<16x256xf32>
    %cst_55 = arith.constant 0.707106769 : f32
    %89 = vector.broadcast %cst_55 : f32 to vector<16x256xf32>
    %90 = arith.mulf %86, %89 : vector<16x256xf32>
    %91 = math.erf %90 : vector<16x256xf32>
    %cst_56 = arith.constant 1.000000e+00 : f32
    %92 = vector.broadcast %cst_56 : f32 to vector<16x256xf32>
    %93 = arith.addf %92, %91 : vector<16x256xf32>
    %94 = arith.mulf %88, %93 : vector<16x256xf32>
    %cst_57 = arith.constant dense<0.000000e+00> : vector<16x256xf32>
    %95 = tpu.matmul %82, %94, %cst_57 {dimension_numbers = #tpu.dot_dimension_numbers<[1], [0], [0], [1], [0, 0, 1, 1], [], []>} : vector<16x16xf32>, vector<16x256xf32>, vector<16x256xf32> -> vector<16x256xf32>
    %cst_58 = arith.constant 5.000000e-01 : f32
    %96 = vector.broadcast %cst_58 : f32 to vector<16x256xf32>
    %97 = arith.mulf %96, %95 : vector<16x256xf32>
    %cst_59 = arith.constant 0.707106769 : f32
    %98 = vector.broadcast %cst_59 : f32 to vector<16x256xf32>
    %99 = arith.mulf %95, %98 : vector<16x256xf32>
    %100 = math.erf %99 : vector<16x256xf32>
    %cst_60 = arith.constant 1.000000e+00 : f32
    %101 = vector.broadcast %cst_60 : f32 to vector<16x256xf32>
    %102 = arith.addf %101, %100 : vector<16x256xf32>
    %103 = arith.mulf %97, %102 : vector<16x256xf32>
    %cst_61 = arith.constant dense<0.000000e+00> : vector<1x256xf32>
    %104 = tpu.matmul %83, %103, %cst_61 {dimension_numbers = #tpu.dot_dimension_numbers<[1], [0], [0], [1], [0, 0, 1, 1], [], []>} : vector<1x16xf32>, vector<16x256xf32>, vector<1x256xf32> -> vector<1x256xf32>
    %cst_62 = arith.constant 5.000000e-01 : f32
    %105 = vector.broadcast %cst_62 : f32 to vector<1x256xf32>
    %106 = arith.mulf %105, %104 : vector<1x256xf32>
    %cst_63 = arith.constant 0.707106769 : f32
    %107 = vector.broadcast %cst_63 : f32 to vector<1x256xf32>
    %108 = arith.mulf %104, %107 : vector<1x256xf32>
    %109 = math.erf %108 : vector<1x256xf32>
    %cst_64 = arith.constant 1.000000e+00 : f32
    %110 = vector.broadcast %cst_64 : f32 to vector<1x256xf32>
    %111 = arith.addf %110, %109 : vector<1x256xf32>
    %112 = arith.mulf %106, %111 : vector<1x256xf32>
    %c1_i32 = arith.constant 1 : i32
    %113 = vector.broadcast %c1_i32 : i32 to vector<8x256xi32>
    %114 = arith.cmpi eq, %0, %113 : vector<8x256xi32>
    %115 = vector.shape_cast %112 : vector<1x256xf32> to vector<1x256xf32>
    %116 = vector.broadcast %115 : vector<1x256xf32> to vector<8x256xf32>
    %117 = arith.select %114, %116, %46 : vector<8x256xi1>, vector<8x256xf32>
    %c16_65 = arith.constant 16 : index
    %c256_66 = arith.constant 256 : index
    %118 = vector.load %arg7[%c16_65, %c256_66] : memref<128x512xf32, #tpu.memory_space<vmem>>, vector<16x256xf32>
    %cst_67 = arith.constant dense<0.000000e+00> : vector<16x256xf32>
    %119 = tpu.matmul %80, %78, %cst_67 {dimension_numbers = #tpu.dot_dimension_numbers<[1], [0], [0], [1], [0, 0, 1, 1], [], []>} : vector<16x8xf32>, vector<8x256xf32>, vector<16x256xf32> -> vector<16x256xf32>
    %120 = arith.addf %118, %119 : vector<16x256xf32>
    %cst_68 = arith.constant 5.000000e-01 : f32
    %121 = vector.broadcast %cst_68 : f32 to vector<16x256xf32>
    %122 = arith.mulf %121, %120 : vector<16x256xf32>
    %cst_69 = arith.constant 0.707106769 : f32
    %123 = vector.broadcast %cst_69 : f32 to vector<16x256xf32>
    %124 = arith.mulf %120, %123 : vector<16x256xf32>
    %125 = math.erf %124 : vector<16x256xf32>
    %cst_70 = arith.constant 1.000000e+00 : f32
    %126 = vector.broadcast %cst_70 : f32 to vector<16x256xf32>
    %127 = arith.addf %126, %125 : vector<16x256xf32>
    %128 = arith.mulf %122, %127 : vector<16x256xf32>
    %cst_71 = arith.constant dense<0.000000e+00> : vector<16x256xf32>
    %129 = tpu.matmul %82, %128, %cst_71 {dimension_numbers = #tpu.dot_dimension_numbers<[1], [0], [0], [1], [0, 0, 1, 1], [], []>} : vector<16x16xf32>, vector<16x256xf32>, vector<16x256xf32> -> vector<16x256xf32>
    %cst_72 = arith.constant 5.000000e-01 : f32
    %130 = vector.broadcast %cst_72 : f32 to vector<16x256xf32>
    %131 = arith.mulf %130, %129 : vector<16x256xf32>
    %cst_73 = arith.constant 0.707106769 : f32
    %132 = vector.broadcast %cst_73 : f32 to vector<16x256xf32>
    %133 = arith.mulf %129, %132 : vector<16x256xf32>
    %134 = math.erf %133 : vector<16x256xf32>
    %cst_74 = arith.constant 1.000000e+00 : f32
    %135 = vector.broadcast %cst_74 : f32 to vector<16x256xf32>
    %136 = arith.addf %135, %134 : vector<16x256xf32>
    %137 = arith.mulf %131, %136 : vector<16x256xf32>
    %cst_75 = arith.constant dense<0.000000e+00> : vector<1x256xf32>
    %138 = tpu.matmul %83, %137, %cst_75 {dimension_numbers = #tpu.dot_dimension_numbers<[1], [0], [0], [1], [0, 0, 1, 1], [], []>} : vector<1x16xf32>, vector<16x256xf32>, vector<1x256xf32> -> vector<1x256xf32>
    %cst_76 = arith.constant 5.000000e-01 : f32
    %139 = vector.broadcast %cst_76 : f32 to vector<1x256xf32>
    %140 = arith.mulf %139, %138 : vector<1x256xf32>
    %cst_77 = arith.constant 0.707106769 : f32
    %141 = vector.broadcast %cst_77 : f32 to vector<1x256xf32>
    %142 = arith.mulf %138, %141 : vector<1x256xf32>
    %143 = math.erf %142 : vector<1x256xf32>
    %cst_78 = arith.constant 1.000000e+00 : f32
    %144 = vector.broadcast %cst_78 : f32 to vector<1x256xf32>
    %145 = arith.addf %144, %143 : vector<1x256xf32>
    %146 = arith.mulf %140, %145 : vector<1x256xf32>
    %c1_i32_79 = arith.constant 1 : i32
    %147 = vector.broadcast %c1_i32_79 : i32 to vector<8x256xi32>
    %148 = arith.cmpi eq, %0, %147 : vector<8x256xi32>
    %149 = vector.shape_cast %146 : vector<1x256xf32> to vector<1x256xf32>
    %150 = vector.broadcast %149 : vector<1x256xf32> to vector<8x256xf32>
    %151 = arith.select %148, %150, %78 : vector<8x256xi1>, vector<8x256xf32>
    %c2 = arith.constant 2 : index
    %c0_80 = arith.constant 0 : index
    %c0_81 = arith.constant 0 : index
    %152 = vector.load %arg3[%c2, %c0_80, %c0_81] : memref<8x16x8xf32, #tpu.memory_space<vmem>>, vector<1x16x8xf32>
    %153 = vector.shape_cast %152 : vector<1x16x8xf32> to vector<16x8xf32>
    %c2_82 = arith.constant 2 : index
    %c0_83 = arith.constant 0 : index
    %c0_84 = arith.constant 0 : index
    %c0_85 = arith.constant 0 : index
    %154 = vector.load %arg4[%c2_82, %c0_83, %c0_84, %c0_85] : memref<8x1x16x16xf32, #tpu.memory_space<vmem>>, vector<1x1x16x16xf32>
    %155 = vector.shape_cast %154 : vector<1x1x16x16xf32> to vector<16x16xf32>
    %156 = vector.extract_strided_slice %9 {offsets = [2, 0], sizes = [1, 16], strides = [1, 1]} : vector<8x16xf32> to vector<1x16xf32>
    %c32 = arith.constant 32 : index
    %c0_86 = arith.constant 0 : index
    %157 = vector.load %arg7[%c32, %c0_86] : memref<128x512xf32, #tpu.memory_space<vmem>>, vector<16x256xf32>
    %cst_87 = arith.constant dense<0.000000e+00> : vector<16x256xf32>
    %158 = tpu.matmul %153, %117, %cst_87 {dimension_numbers = #tpu.dot_dimension_numbers<[1], [0], [0], [1], [0, 0, 1, 1], [], []>} : vector<16x8xf32>, vector<8x256xf32>, vector<16x256xf32> -> vector<16x256xf32>
    %159 = arith.addf %157, %158 : vector<16x256xf32>
    %cst_88 = arith.constant 5.000000e-01 : f32
    %160 = vector.broadcast %cst_88 : f32 to vector<16x256xf32>
    %161 = arith.mulf %160, %159 : vector<16x256xf32>
    %cst_89 = arith.constant 0.707106769 : f32
    %162 = vector.broadcast %cst_89 : f32 to vector<16x256xf32>
    %163 = arith.mulf %159, %162 : vector<16x256xf32>
    %164 = math.erf %163 : vector<16x256xf32>
    %cst_90 = arith.constant 1.000000e+00 : f32
    %165 = vector.broadcast %cst_90 : f32 to vector<16x256xf32>
    %166 = arith.addf %165, %164 : vector<16x256xf32>
    %167 = arith.mulf %161, %166 : vector<16x256xf32>
    %cst_91 = arith.constant dense<0.000000e+00> : vector<16x256xf32>
    %168 = tpu.matmul %155, %167, %cst_91 {dimension_numbers = #tpu.dot_dimension_numbers<[1], [0], [0], [1], [0, 0, 1, 1], [], []>} : vector<16x16xf32>, vector<16x256xf32>, vector<16x256xf32> -> vector<16x256xf32>
    %cst_92 = arith.constant 5.000000e-01 : f32
    %169 = vector.broadcast %cst_92 : f32 to vector<16x256xf32>
    %170 = arith.mulf %169, %168 : vector<16x256xf32>
    %cst_93 = arith.constant 0.707106769 : f32
    %171 = vector.broadcast %cst_93 : f32 to vector<16x256xf32>
    %172 = arith.mulf %168, %171 : vector<16x256xf32>
    %173 = math.erf %172 : vector<16x256xf32>
    %cst_94 = arith.constant 1.000000e+00 : f32
    %174 = vector.broadcast %cst_94 : f32 to vector<16x256xf32>
    %175 = arith.addf %174, %173 : vector<16x256xf32>
    %176 = arith.mulf %170, %175 : vector<16x256xf32>
    %cst_95 = arith.constant dense<0.000000e+00> : vector<1x256xf32>
    %177 = tpu.matmul %156, %176, %cst_95 {dimension_numbers = #tpu.dot_dimension_numbers<[1], [0], [0], [1], [0, 0, 1, 1], [], []>} : vector<1x16xf32>, vector<16x256xf32>, vector<1x256xf32> -> vector<1x256xf32>
    %cst_96 = arith.constant 5.000000e-01 : f32
    %178 = vector.broadcast %cst_96 : f32 to vector<1x256xf32>
    %179 = arith.mulf %178, %177 : vector<1x256xf32>
    %cst_97 = arith.constant 0.707106769 : f32
    %180 = vector.broadcast %cst_97 : f32 to vector<1x256xf32>
    %181 = arith.mulf %177, %180 : vector<1x256xf32>
    %182 = math.erf %181 : vector<1x256xf32>
    %cst_98 = arith.constant 1.000000e+00 : f32
    %183 = vector.broadcast %cst_98 : f32 to vector<1x256xf32>
    %184 = arith.addf %183, %182 : vector<1x256xf32>
    %185 = arith.mulf %179, %184 : vector<1x256xf32>
    %c2_i32 = arith.constant 2 : i32
    %186 = vector.broadcast %c2_i32 : i32 to vector<8x256xi32>
    %187 = arith.cmpi eq, %0, %186 : vector<8x256xi32>
    %188 = vector.shape_cast %185 : vector<1x256xf32> to vector<1x256xf32>
    %189 = vector.broadcast %188 : vector<1x256xf32> to vector<8x256xf32>
    %190 = arith.select %187, %189, %117 : vector<8x256xi1>, vector<8x256xf32>
    %c32_99 = arith.constant 32 : index
    %c256_100 = arith.constant 256 : index
    %191 = vector.load %arg7[%c32_99, %c256_100] : memref<128x512xf32, #tpu.memory_space<vmem>>, vector<16x256xf32>
    %cst_101 = arith.constant dense<0.000000e+00> : vector<16x256xf32>
    %192 = tpu.matmul %153, %151, %cst_101 {dimension_numbers = #tpu.dot_dimension_numbers<[1], [0], [0], [1], [0, 0, 1, 1], [], []>} : vector<16x8xf32>, vector<8x256xf32>, vector<16x256xf32> -> vector<16x256xf32>
    %193 = arith.addf %191, %192 : vector<16x256xf32>
    %cst_102 = arith.constant 5.000000e-01 : f32
    %194 = vector.broadcast %cst_102 : f32 to vector<16x256xf32>
    %195 = arith.mulf %194, %193 : vector<16x256xf32>
    %cst_103 = arith.constant 0.707106769 : f32
    %196 = vector.broadcast %cst_103 : f32 to vector<16x256xf32>
    %197 = arith.mulf %193, %196 : vector<16x256xf32>
    %198 = math.erf %197 : vector<16x256xf32>
    %cst_104 = arith.constant 1.000000e+00 : f32
    %199 = vector.broadcast %cst_104 : f32 to vector<16x256xf32>
    %200 = arith.addf %199, %198 : vector<16x256xf32>
    %201 = arith.mulf %195, %200 : vector<16x256xf32>
    %cst_105 = arith.constant dense<0.000000e+00> : vector<16x256xf32>
    %202 = tpu.matmul %155, %201, %cst_105 {dimension_numbers = #tpu.dot_dimension_numbers<[1], [0], [0], [1], [0, 0, 1, 1], [], []>} : vector<16x16xf32>, vector<16x256xf32>, vector<16x256xf32> -> vector<16x256xf32>
    %cst_106 = arith.constant 5.000000e-01 : f32
    %203 = vector.broadcast %cst_106 : f32 to vector<16x256xf32>
    %204 = arith.mulf %203, %202 : vector<16x256xf32>
    %cst_107 = arith.constant 0.707106769 : f32
    %205 = vector.broadcast %cst_107 : f32 to vector<16x256xf32>
    %206 = arith.mulf %202, %205 : vector<16x256xf32>
    %207 = math.erf %206 : vector<16x256xf32>
    %cst_108 = arith.constant 1.000000e+00 : f32
    %208 = vector.broadcast %cst_108 : f32 to vector<16x256xf32>
    %209 = arith.addf %208, %207 : vector<16x256xf32>
    %210 = arith.mulf %204, %209 : vector<16x256xf32>
    %cst_109 = arith.constant dense<0.000000e+00> : vector<1x256xf32>
    %211 = tpu.matmul %156, %210, %cst_109 {dimension_numbers = #tpu.dot_dimension_numbers<[1], [0], [0], [1], [0, 0, 1, 1], [], []>} : vector<1x16xf32>, vector<16x256xf32>, vector<1x256xf32> -> vector<1x256xf32>
    %cst_110 = arith.constant 5.000000e-01 : f32
    %212 = vector.broadcast %cst_110 : f32 to vector<1x256xf32>
    %213 = arith.mulf %212, %211 : vector<1x256xf32>
    %cst_111 = arith.constant 0.707106769 : f32
    %214 = vector.broadcast %cst_111 : f32 to vector<1x256xf32>
    %215 = arith.mulf %211, %214 : vector<1x256xf32>
    %216 = math.erf %215 : vector<1x256xf32>
    %cst_112 = arith.constant 1.000000e+00 : f32
    %217 = vector.broadcast %cst_112 : f32 to vector<1x256xf32>
    %218 = arith.addf %217, %216 : vector<1x256xf32>
    %219 = arith.mulf %213, %218 : vector<1x256xf32>
    %c2_i32_113 = arith.constant 2 : i32
    %220 = vector.broadcast %c2_i32_113 : i32 to vector<8x256xi32>
    %221 = arith.cmpi eq, %0, %220 : vector<8x256xi32>
    %222 = vector.shape_cast %219 : vector<1x256xf32> to vector<1x256xf32>
    %223 = vector.broadcast %222 : vector<1x256xf32> to vector<8x256xf32>
    %224 = arith.select %221, %223, %151 : vector<8x256xi1>, vector<8x256xf32>
    %c3 = arith.constant 3 : index
    %c0_114 = arith.constant 0 : index
    %c0_115 = arith.constant 0 : index
    %225 = vector.load %arg3[%c3, %c0_114, %c0_115] : memref<8x16x8xf32, #tpu.memory_space<vmem>>, vector<1x16x8xf32>
    %226 = vector.shape_cast %225 : vector<1x16x8xf32> to vector<16x8xf32>
    %c3_116 = arith.constant 3 : index
    %c0_117 = arith.constant 0 : index
    %c0_118 = arith.constant 0 : index
    %c0_119 = arith.constant 0 : index
    %227 = vector.load %arg4[%c3_116, %c0_117, %c0_118, %c0_119] : memref<8x1x16x16xf32, #tpu.memory_space<vmem>>, vector<1x1x16x16xf32>
    %228 = vector.shape_cast %227 : vector<1x1x16x16xf32> to vector<16x16xf32>
    %229 = vector.extract_strided_slice %9 {offsets = [3, 0], sizes = [1, 16], strides = [1, 1]} : vector<8x16xf32> to vector<1x16xf32>
    %c48 = arith.constant 48 : index
    %c0_120 = arith.constant 0 : index
    %230 = vector.load %arg7[%c48, %c0_120] : memref<128x512xf32, #tpu.memory_space<vmem>>, vector<16x256xf32>
    %cst_121 = arith.constant dense<0.000000e+00> : vector<16x256xf32>
    %231 = tpu.matmul %226, %190, %cst_121 {dimension_numbers = #tpu.dot_dimension_numbers<[1], [0], [0], [1], [0, 0, 1, 1], [], []>} : vector<16x8xf32>, vector<8x256xf32>, vector<16x256xf32> -> vector<16x256xf32>
    %232 = arith.addf %230, %231 : vector<16x256xf32>
    %cst_122 = arith.constant 5.000000e-01 : f32
    %233 = vector.broadcast %cst_122 : f32 to vector<16x256xf32>
    %234 = arith.mulf %233, %232 : vector<16x256xf32>
    %cst_123 = arith.constant 0.707106769 : f32
    %235 = vector.broadcast %cst_123 : f32 to vector<16x256xf32>
    %236 = arith.mulf %232, %235 : vector<16x256xf32>
    %237 = math.erf %236 : vector<16x256xf32>
    %cst_124 = arith.constant 1.000000e+00 : f32
    %238 = vector.broadcast %cst_124 : f32 to vector<16x256xf32>
    %239 = arith.addf %238, %237 : vector<16x256xf32>
    %240 = arith.mulf %234, %239 : vector<16x256xf32>
    %cst_125 = arith.constant dense<0.000000e+00> : vector<16x256xf32>
    %241 = tpu.matmul %228, %240, %cst_125 {dimension_numbers = #tpu.dot_dimension_numbers<[1], [0], [0], [1], [0, 0, 1, 1], [], []>} : vector<16x16xf32>, vector<16x256xf32>, vector<16x256xf32> -> vector<16x256xf32>
    %cst_126 = arith.constant 5.000000e-01 : f32
    %242 = vector.broadcast %cst_126 : f32 to vector<16x256xf32>
    %243 = arith.mulf %242, %241 : vector<16x256xf32>
    %cst_127 = arith.constant 0.707106769 : f32
    %244 = vector.broadcast %cst_127 : f32 to vector<16x256xf32>
    %245 = arith.mulf %241, %244 : vector<16x256xf32>
    %246 = math.erf %245 : vector<16x256xf32>
    %cst_128 = arith.constant 1.000000e+00 : f32
    %247 = vector.broadcast %cst_128 : f32 to vector<16x256xf32>
    %248 = arith.addf %247, %246 : vector<16x256xf32>
    %249 = arith.mulf %243, %248 : vector<16x256xf32>
    %cst_129 = arith.constant dense<0.000000e+00> : vector<1x256xf32>
    %250 = tpu.matmul %229, %249, %cst_129 {dimension_numbers = #tpu.dot_dimension_numbers<[1], [0], [0], [1], [0, 0, 1, 1], [], []>} : vector<1x16xf32>, vector<16x256xf32>, vector<1x256xf32> -> vector<1x256xf32>
    %cst_130 = arith.constant 5.000000e-01 : f32
    %251 = vector.broadcast %cst_130 : f32 to vector<1x256xf32>
    %252 = arith.mulf %251, %250 : vector<1x256xf32>
    %cst_131 = arith.constant 0.707106769 : f32
    %253 = vector.broadcast %cst_131 : f32 to vector<1x256xf32>
    %254 = arith.mulf %250, %253 : vector<1x256xf32>
    %255 = math.erf %254 : vector<1x256xf32>
    %cst_132 = arith.constant 1.000000e+00 : f32
    %256 = vector.broadcast %cst_132 : f32 to vector<1x256xf32>
    %257 = arith.addf %256, %255 : vector<1x256xf32>
    %258 = arith.mulf %252, %257 : vector<1x256xf32>
    %c3_i32 = arith.constant 3 : i32
    %259 = vector.broadcast %c3_i32 : i32 to vector<8x256xi32>
    %260 = arith.cmpi eq, %0, %259 : vector<8x256xi32>
    %261 = vector.shape_cast %258 : vector<1x256xf32> to vector<1x256xf32>
    %262 = vector.broadcast %261 : vector<1x256xf32> to vector<8x256xf32>
    %263 = arith.select %260, %262, %190 : vector<8x256xi1>, vector<8x256xf32>
    %c48_133 = arith.constant 48 : index
    %c256_134 = arith.constant 256 : index
    %264 = vector.load %arg7[%c48_133, %c256_134] : memref<128x512xf32, #tpu.memory_space<vmem>>, vector<16x256xf32>
    %cst_135 = arith.constant dense<0.000000e+00> : vector<16x256xf32>
    %265 = tpu.matmul %226, %224, %cst_135 {dimension_numbers = #tpu.dot_dimension_numbers<[1], [0], [0], [1], [0, 0, 1, 1], [], []>} : vector<16x8xf32>, vector<8x256xf32>, vector<16x256xf32> -> vector<16x256xf32>
    %266 = arith.addf %264, %265 : vector<16x256xf32>
    %cst_136 = arith.constant 5.000000e-01 : f32
    %267 = vector.broadcast %cst_136 : f32 to vector<16x256xf32>
    %268 = arith.mulf %267, %266 : vector<16x256xf32>
    %cst_137 = arith.constant 0.707106769 : f32
    %269 = vector.broadcast %cst_137 : f32 to vector<16x256xf32>
    %270 = arith.mulf %266, %269 : vector<16x256xf32>
    %271 = math.erf %270 : vector<16x256xf32>
    %cst_138 = arith.constant 1.000000e+00 : f32
    %272 = vector.broadcast %cst_138 : f32 to vector<16x256xf32>
    %273 = arith.addf %272, %271 : vector<16x256xf32>
    %274 = arith.mulf %268, %273 : vector<16x256xf32>
    %cst_139 = arith.constant dense<0.000000e+00> : vector<16x256xf32>
    %275 = tpu.matmul %228, %274, %cst_139 {dimension_numbers = #tpu.dot_dimension_numbers<[1], [0], [0], [1], [0, 0, 1, 1], [], []>} : vector<16x16xf32>, vector<16x256xf32>, vector<16x256xf32> -> vector<16x256xf32>
    %cst_140 = arith.constant 5.000000e-01 : f32
    %276 = vector.broadcast %cst_140 : f32 to vector<16x256xf32>
    %277 = arith.mulf %276, %275 : vector<16x256xf32>
    %cst_141 = arith.constant 0.707106769 : f32
    %278 = vector.broadcast %cst_141 : f32 to vector<16x256xf32>
    %279 = arith.mulf %275, %278 : vector<16x256xf32>
    %280 = math.erf %279 : vector<16x256xf32>
    %cst_142 = arith.constant 1.000000e+00 : f32
    %281 = vector.broadcast %cst_142 : f32 to vector<16x256xf32>
    %282 = arith.addf %281, %280 : vector<16x256xf32>
    %283 = arith.mulf %277, %282 : vector<16x256xf32>
    %cst_143 = arith.constant dense<0.000000e+00> : vector<1x256xf32>
    %284 = tpu.matmul %229, %283, %cst_143 {dimension_numbers = #tpu.dot_dimension_numbers<[1], [0], [0], [1], [0, 0, 1, 1], [], []>} : vector<1x16xf32>, vector<16x256xf32>, vector<1x256xf32> -> vector<1x256xf32>
    %cst_144 = arith.constant 5.000000e-01 : f32
    %285 = vector.broadcast %cst_144 : f32 to vector<1x256xf32>
    %286 = arith.mulf %285, %284 : vector<1x256xf32>
    %cst_145 = arith.constant 0.707106769 : f32
    %287 = vector.broadcast %cst_145 : f32 to vector<1x256xf32>
    %288 = arith.mulf %284, %287 : vector<1x256xf32>
    %289 = math.erf %288 : vector<1x256xf32>
    %cst_146 = arith.constant 1.000000e+00 : f32
    %290 = vector.broadcast %cst_146 : f32 to vector<1x256xf32>
    %291 = arith.addf %290, %289 : vector<1x256xf32>
    %292 = arith.mulf %286, %291 : vector<1x256xf32>
    %c3_i32_147 = arith.constant 3 : i32
    %293 = vector.broadcast %c3_i32_147 : i32 to vector<8x256xi32>
    %294 = arith.cmpi eq, %0, %293 : vector<8x256xi32>
    %295 = vector.shape_cast %292 : vector<1x256xf32> to vector<1x256xf32>
    %296 = vector.broadcast %295 : vector<1x256xf32> to vector<8x256xf32>
    %297 = arith.select %294, %296, %224 : vector<8x256xi1>, vector<8x256xf32>
    %c4 = arith.constant 4 : index
    %c0_148 = arith.constant 0 : index
    %c0_149 = arith.constant 0 : index
    %298 = vector.load %arg3[%c4, %c0_148, %c0_149] : memref<8x16x8xf32, #tpu.memory_space<vmem>>, vector<1x16x8xf32>
    %299 = vector.shape_cast %298 : vector<1x16x8xf32> to vector<16x8xf32>
    %c4_150 = arith.constant 4 : index
    %c0_151 = arith.constant 0 : index
    %c0_152 = arith.constant 0 : index
    %c0_153 = arith.constant 0 : index
    %300 = vector.load %arg4[%c4_150, %c0_151, %c0_152, %c0_153] : memref<8x1x16x16xf32, #tpu.memory_space<vmem>>, vector<1x1x16x16xf32>
    %301 = vector.shape_cast %300 : vector<1x1x16x16xf32> to vector<16x16xf32>
    %302 = vector.extract_strided_slice %9 {offsets = [4, 0], sizes = [1, 16], strides = [1, 1]} : vector<8x16xf32> to vector<1x16xf32>
    %c64 = arith.constant 64 : index
    %c0_154 = arith.constant 0 : index
    %303 = vector.load %arg7[%c64, %c0_154] : memref<128x512xf32, #tpu.memory_space<vmem>>, vector<16x256xf32>
    %cst_155 = arith.constant dense<0.000000e+00> : vector<16x256xf32>
    %304 = tpu.matmul %299, %263, %cst_155 {dimension_numbers = #tpu.dot_dimension_numbers<[1], [0], [0], [1], [0, 0, 1, 1], [], []>} : vector<16x8xf32>, vector<8x256xf32>, vector<16x256xf32> -> vector<16x256xf32>
    %305 = arith.addf %303, %304 : vector<16x256xf32>
    %cst_156 = arith.constant 5.000000e-01 : f32
    %306 = vector.broadcast %cst_156 : f32 to vector<16x256xf32>
    %307 = arith.mulf %306, %305 : vector<16x256xf32>
    %cst_157 = arith.constant 0.707106769 : f32
    %308 = vector.broadcast %cst_157 : f32 to vector<16x256xf32>
    %309 = arith.mulf %305, %308 : vector<16x256xf32>
    %310 = math.erf %309 : vector<16x256xf32>
    %cst_158 = arith.constant 1.000000e+00 : f32
    %311 = vector.broadcast %cst_158 : f32 to vector<16x256xf32>
    %312 = arith.addf %311, %310 : vector<16x256xf32>
    %313 = arith.mulf %307, %312 : vector<16x256xf32>
    %cst_159 = arith.constant dense<0.000000e+00> : vector<16x256xf32>
    %314 = tpu.matmul %301, %313, %cst_159 {dimension_numbers = #tpu.dot_dimension_numbers<[1], [0], [0], [1], [0, 0, 1, 1], [], []>} : vector<16x16xf32>, vector<16x256xf32>, vector<16x256xf32> -> vector<16x256xf32>
    %cst_160 = arith.constant 5.000000e-01 : f32
    %315 = vector.broadcast %cst_160 : f32 to vector<16x256xf32>
    %316 = arith.mulf %315, %314 : vector<16x256xf32>
    %cst_161 = arith.constant 0.707106769 : f32
    %317 = vector.broadcast %cst_161 : f32 to vector<16x256xf32>
    %318 = arith.mulf %314, %317 : vector<16x256xf32>
    %319 = math.erf %318 : vector<16x256xf32>
    %cst_162 = arith.constant 1.000000e+00 : f32
    %320 = vector.broadcast %cst_162 : f32 to vector<16x256xf32>
    %321 = arith.addf %320, %319 : vector<16x256xf32>
    %322 = arith.mulf %316, %321 : vector<16x256xf32>
    %cst_163 = arith.constant dense<0.000000e+00> : vector<1x256xf32>
    %323 = tpu.matmul %302, %322, %cst_163 {dimension_numbers = #tpu.dot_dimension_numbers<[1], [0], [0], [1], [0, 0, 1, 1], [], []>} : vector<1x16xf32>, vector<16x256xf32>, vector<1x256xf32> -> vector<1x256xf32>
    %cst_164 = arith.constant 5.000000e-01 : f32
    %324 = vector.broadcast %cst_164 : f32 to vector<1x256xf32>
    %325 = arith.mulf %324, %323 : vector<1x256xf32>
    %cst_165 = arith.constant 0.707106769 : f32
    %326 = vector.broadcast %cst_165 : f32 to vector<1x256xf32>
    %327 = arith.mulf %323, %326 : vector<1x256xf32>
    %328 = math.erf %327 : vector<1x256xf32>
    %cst_166 = arith.constant 1.000000e+00 : f32
    %329 = vector.broadcast %cst_166 : f32 to vector<1x256xf32>
    %330 = arith.addf %329, %328 : vector<1x256xf32>
    %331 = arith.mulf %325, %330 : vector<1x256xf32>
    %c4_i32 = arith.constant 4 : i32
    %332 = vector.broadcast %c4_i32 : i32 to vector<8x256xi32>
    %333 = arith.cmpi eq, %0, %332 : vector<8x256xi32>
    %334 = vector.shape_cast %331 : vector<1x256xf32> to vector<1x256xf32>
    %335 = vector.broadcast %334 : vector<1x256xf32> to vector<8x256xf32>
    %336 = arith.select %333, %335, %263 : vector<8x256xi1>, vector<8x256xf32>
    %c64_167 = arith.constant 64 : index
    %c256_168 = arith.constant 256 : index
    %337 = vector.load %arg7[%c64_167, %c256_168] : memref<128x512xf32, #tpu.memory_space<vmem>>, vector<16x256xf32>
    %cst_169 = arith.constant dense<0.000000e+00> : vector<16x256xf32>
    %338 = tpu.matmul %299, %297, %cst_169 {dimension_numbers = #tpu.dot_dimension_numbers<[1], [0], [0], [1], [0, 0, 1, 1], [], []>} : vector<16x8xf32>, vector<8x256xf32>, vector<16x256xf32> -> vector<16x256xf32>
    %339 = arith.addf %337, %338 : vector<16x256xf32>
    %cst_170 = arith.constant 5.000000e-01 : f32
    %340 = vector.broadcast %cst_170 : f32 to vector<16x256xf32>
    %341 = arith.mulf %340, %339 : vector<16x256xf32>
    %cst_171 = arith.constant 0.707106769 : f32
    %342 = vector.broadcast %cst_171 : f32 to vector<16x256xf32>
    %343 = arith.mulf %339, %342 : vector<16x256xf32>
    %344 = math.erf %343 : vector<16x256xf32>
    %cst_172 = arith.constant 1.000000e+00 : f32
    %345 = vector.broadcast %cst_172 : f32 to vector<16x256xf32>
    %346 = arith.addf %345, %344 : vector<16x256xf32>
    %347 = arith.mulf %341, %346 : vector<16x256xf32>
    %cst_173 = arith.constant dense<0.000000e+00> : vector<16x256xf32>
    %348 = tpu.matmul %301, %347, %cst_173 {dimension_numbers = #tpu.dot_dimension_numbers<[1], [0], [0], [1], [0, 0, 1, 1], [], []>} : vector<16x16xf32>, vector<16x256xf32>, vector<16x256xf32> -> vector<16x256xf32>
    %cst_174 = arith.constant 5.000000e-01 : f32
    %349 = vector.broadcast %cst_174 : f32 to vector<16x256xf32>
    %350 = arith.mulf %349, %348 : vector<16x256xf32>
    %cst_175 = arith.constant 0.707106769 : f32
    %351 = vector.broadcast %cst_175 : f32 to vector<16x256xf32>
    %352 = arith.mulf %348, %351 : vector<16x256xf32>
    %353 = math.erf %352 : vector<16x256xf32>
    %cst_176 = arith.constant 1.000000e+00 : f32
    %354 = vector.broadcast %cst_176 : f32 to vector<16x256xf32>
    %355 = arith.addf %354, %353 : vector<16x256xf32>
    %356 = arith.mulf %350, %355 : vector<16x256xf32>
    %cst_177 = arith.constant dense<0.000000e+00> : vector<1x256xf32>
    %357 = tpu.matmul %302, %356, %cst_177 {dimension_numbers = #tpu.dot_dimension_numbers<[1], [0], [0], [1], [0, 0, 1, 1], [], []>} : vector<1x16xf32>, vector<16x256xf32>, vector<1x256xf32> -> vector<1x256xf32>
    %cst_178 = arith.constant 5.000000e-01 : f32
    %358 = vector.broadcast %cst_178 : f32 to vector<1x256xf32>
    %359 = arith.mulf %358, %357 : vector<1x256xf32>
    %cst_179 = arith.constant 0.707106769 : f32
    %360 = vector.broadcast %cst_179 : f32 to vector<1x256xf32>
    %361 = arith.mulf %357, %360 : vector<1x256xf32>
    %362 = math.erf %361 : vector<1x256xf32>
    %cst_180 = arith.constant 1.000000e+00 : f32
    %363 = vector.broadcast %cst_180 : f32 to vector<1x256xf32>
    %364 = arith.addf %363, %362 : vector<1x256xf32>
    %365 = arith.mulf %359, %364 : vector<1x256xf32>
    %c4_i32_181 = arith.constant 4 : i32
    %366 = vector.broadcast %c4_i32_181 : i32 to vector<8x256xi32>
    %367 = arith.cmpi eq, %0, %366 : vector<8x256xi32>
    %368 = vector.shape_cast %365 : vector<1x256xf32> to vector<1x256xf32>
    %369 = vector.broadcast %368 : vector<1x256xf32> to vector<8x256xf32>
    %370 = arith.select %367, %369, %297 : vector<8x256xi1>, vector<8x256xf32>
    %c5 = arith.constant 5 : index
    %c0_182 = arith.constant 0 : index
    %c0_183 = arith.constant 0 : index
    %371 = vector.load %arg3[%c5, %c0_182, %c0_183] : memref<8x16x8xf32, #tpu.memory_space<vmem>>, vector<1x16x8xf32>
    %372 = vector.shape_cast %371 : vector<1x16x8xf32> to vector<16x8xf32>
    %c5_184 = arith.constant 5 : index
    %c0_185 = arith.constant 0 : index
    %c0_186 = arith.constant 0 : index
    %c0_187 = arith.constant 0 : index
    %373 = vector.load %arg4[%c5_184, %c0_185, %c0_186, %c0_187] : memref<8x1x16x16xf32, #tpu.memory_space<vmem>>, vector<1x1x16x16xf32>
    %374 = vector.shape_cast %373 : vector<1x1x16x16xf32> to vector<16x16xf32>
    %375 = vector.extract_strided_slice %9 {offsets = [5, 0], sizes = [1, 16], strides = [1, 1]} : vector<8x16xf32> to vector<1x16xf32>
    %c80 = arith.constant 80 : index
    %c0_188 = arith.constant 0 : index
    %376 = vector.load %arg7[%c80, %c0_188] : memref<128x512xf32, #tpu.memory_space<vmem>>, vector<16x256xf32>
    %cst_189 = arith.constant dense<0.000000e+00> : vector<16x256xf32>
    %377 = tpu.matmul %372, %336, %cst_189 {dimension_numbers = #tpu.dot_dimension_numbers<[1], [0], [0], [1], [0, 0, 1, 1], [], []>} : vector<16x8xf32>, vector<8x256xf32>, vector<16x256xf32> -> vector<16x256xf32>
    %378 = arith.addf %376, %377 : vector<16x256xf32>
    %cst_190 = arith.constant 5.000000e-01 : f32
    %379 = vector.broadcast %cst_190 : f32 to vector<16x256xf32>
    %380 = arith.mulf %379, %378 : vector<16x256xf32>
    %cst_191 = arith.constant 0.707106769 : f32
    %381 = vector.broadcast %cst_191 : f32 to vector<16x256xf32>
    %382 = arith.mulf %378, %381 : vector<16x256xf32>
    %383 = math.erf %382 : vector<16x256xf32>
    %cst_192 = arith.constant 1.000000e+00 : f32
    %384 = vector.broadcast %cst_192 : f32 to vector<16x256xf32>
    %385 = arith.addf %384, %383 : vector<16x256xf32>
    %386 = arith.mulf %380, %385 : vector<16x256xf32>
    %cst_193 = arith.constant dense<0.000000e+00> : vector<16x256xf32>
    %387 = tpu.matmul %374, %386, %cst_193 {dimension_numbers = #tpu.dot_dimension_numbers<[1], [0], [0], [1], [0, 0, 1, 1], [], []>} : vector<16x16xf32>, vector<16x256xf32>, vector<16x256xf32> -> vector<16x256xf32>
    %cst_194 = arith.constant 5.000000e-01 : f32
    %388 = vector.broadcast %cst_194 : f32 to vector<16x256xf32>
    %389 = arith.mulf %388, %387 : vector<16x256xf32>
    %cst_195 = arith.constant 0.707106769 : f32
    %390 = vector.broadcast %cst_195 : f32 to vector<16x256xf32>
    %391 = arith.mulf %387, %390 : vector<16x256xf32>
    %392 = math.erf %391 : vector<16x256xf32>
    %cst_196 = arith.constant 1.000000e+00 : f32
    %393 = vector.broadcast %cst_196 : f32 to vector<16x256xf32>
    %394 = arith.addf %393, %392 : vector<16x256xf32>
    %395 = arith.mulf %389, %394 : vector<16x256xf32>
    %cst_197 = arith.constant dense<0.000000e+00> : vector<1x256xf32>
    %396 = tpu.matmul %375, %395, %cst_197 {dimension_numbers = #tpu.dot_dimension_numbers<[1], [0], [0], [1], [0, 0, 1, 1], [], []>} : vector<1x16xf32>, vector<16x256xf32>, vector<1x256xf32> -> vector<1x256xf32>
    %cst_198 = arith.constant 5.000000e-01 : f32
    %397 = vector.broadcast %cst_198 : f32 to vector<1x256xf32>
    %398 = arith.mulf %397, %396 : vector<1x256xf32>
    %cst_199 = arith.constant 0.707106769 : f32
    %399 = vector.broadcast %cst_199 : f32 to vector<1x256xf32>
    %400 = arith.mulf %396, %399 : vector<1x256xf32>
    %401 = math.erf %400 : vector<1x256xf32>
    %cst_200 = arith.constant 1.000000e+00 : f32
    %402 = vector.broadcast %cst_200 : f32 to vector<1x256xf32>
    %403 = arith.addf %402, %401 : vector<1x256xf32>
    %404 = arith.mulf %398, %403 : vector<1x256xf32>
    %c5_i32 = arith.constant 5 : i32
    %405 = vector.broadcast %c5_i32 : i32 to vector<8x256xi32>
    %406 = arith.cmpi eq, %0, %405 : vector<8x256xi32>
    %407 = vector.shape_cast %404 : vector<1x256xf32> to vector<1x256xf32>
    %408 = vector.broadcast %407 : vector<1x256xf32> to vector<8x256xf32>
    %409 = arith.select %406, %408, %336 : vector<8x256xi1>, vector<8x256xf32>
    %c80_201 = arith.constant 80 : index
    %c256_202 = arith.constant 256 : index
    %410 = vector.load %arg7[%c80_201, %c256_202] : memref<128x512xf32, #tpu.memory_space<vmem>>, vector<16x256xf32>
    %cst_203 = arith.constant dense<0.000000e+00> : vector<16x256xf32>
    %411 = tpu.matmul %372, %370, %cst_203 {dimension_numbers = #tpu.dot_dimension_numbers<[1], [0], [0], [1], [0, 0, 1, 1], [], []>} : vector<16x8xf32>, vector<8x256xf32>, vector<16x256xf32> -> vector<16x256xf32>
    %412 = arith.addf %410, %411 : vector<16x256xf32>
    %cst_204 = arith.constant 5.000000e-01 : f32
    %413 = vector.broadcast %cst_204 : f32 to vector<16x256xf32>
    %414 = arith.mulf %413, %412 : vector<16x256xf32>
    %cst_205 = arith.constant 0.707106769 : f32
    %415 = vector.broadcast %cst_205 : f32 to vector<16x256xf32>
    %416 = arith.mulf %412, %415 : vector<16x256xf32>
    %417 = math.erf %416 : vector<16x256xf32>
    %cst_206 = arith.constant 1.000000e+00 : f32
    %418 = vector.broadcast %cst_206 : f32 to vector<16x256xf32>
    %419 = arith.addf %418, %417 : vector<16x256xf32>
    %420 = arith.mulf %414, %419 : vector<16x256xf32>
    %cst_207 = arith.constant dense<0.000000e+00> : vector<16x256xf32>
    %421 = tpu.matmul %374, %420, %cst_207 {dimension_numbers = #tpu.dot_dimension_numbers<[1], [0], [0], [1], [0, 0, 1, 1], [], []>} : vector<16x16xf32>, vector<16x256xf32>, vector<16x256xf32> -> vector<16x256xf32>
    %cst_208 = arith.constant 5.000000e-01 : f32
    %422 = vector.broadcast %cst_208 : f32 to vector<16x256xf32>
    %423 = arith.mulf %422, %421 : vector<16x256xf32>
    %cst_209 = arith.constant 0.707106769 : f32
    %424 = vector.broadcast %cst_209 : f32 to vector<16x256xf32>
    %425 = arith.mulf %421, %424 : vector<16x256xf32>
    %426 = math.erf %425 : vector<16x256xf32>
    %cst_210 = arith.constant 1.000000e+00 : f32
    %427 = vector.broadcast %cst_210 : f32 to vector<16x256xf32>
    %428 = arith.addf %427, %426 : vector<16x256xf32>
    %429 = arith.mulf %423, %428 : vector<16x256xf32>
    %cst_211 = arith.constant dense<0.000000e+00> : vector<1x256xf32>
    %430 = tpu.matmul %375, %429, %cst_211 {dimension_numbers = #tpu.dot_dimension_numbers<[1], [0], [0], [1], [0, 0, 1, 1], [], []>} : vector<1x16xf32>, vector<16x256xf32>, vector<1x256xf32> -> vector<1x256xf32>
    %cst_212 = arith.constant 5.000000e-01 : f32
    %431 = vector.broadcast %cst_212 : f32 to vector<1x256xf32>
    %432 = arith.mulf %431, %430 : vector<1x256xf32>
    %cst_213 = arith.constant 0.707106769 : f32
    %433 = vector.broadcast %cst_213 : f32 to vector<1x256xf32>
    %434 = arith.mulf %430, %433 : vector<1x256xf32>
    %435 = math.erf %434 : vector<1x256xf32>
    %cst_214 = arith.constant 1.000000e+00 : f32
    %436 = vector.broadcast %cst_214 : f32 to vector<1x256xf32>
    %437 = arith.addf %436, %435 : vector<1x256xf32>
    %438 = arith.mulf %432, %437 : vector<1x256xf32>
    %c5_i32_215 = arith.constant 5 : i32
    %439 = vector.broadcast %c5_i32_215 : i32 to vector<8x256xi32>
    %440 = arith.cmpi eq, %0, %439 : vector<8x256xi32>
    %441 = vector.shape_cast %438 : vector<1x256xf32> to vector<1x256xf32>
    %442 = vector.broadcast %441 : vector<1x256xf32> to vector<8x256xf32>
    %443 = arith.select %440, %442, %370 : vector<8x256xi1>, vector<8x256xf32>
    %c6 = arith.constant 6 : index
    %c0_216 = arith.constant 0 : index
    %c0_217 = arith.constant 0 : index
    %444 = vector.load %arg3[%c6, %c0_216, %c0_217] : memref<8x16x8xf32, #tpu.memory_space<vmem>>, vector<1x16x8xf32>
    %445 = vector.shape_cast %444 : vector<1x16x8xf32> to vector<16x8xf32>
    %c6_218 = arith.constant 6 : index
    %c0_219 = arith.constant 0 : index
    %c0_220 = arith.constant 0 : index
    %c0_221 = arith.constant 0 : index
    %446 = vector.load %arg4[%c6_218, %c0_219, %c0_220, %c0_221] : memref<8x1x16x16xf32, #tpu.memory_space<vmem>>, vector<1x1x16x16xf32>
    %447 = vector.shape_cast %446 : vector<1x1x16x16xf32> to vector<16x16xf32>
    %448 = vector.extract_strided_slice %9 {offsets = [6, 0], sizes = [1, 16], strides = [1, 1]} : vector<8x16xf32> to vector<1x16xf32>
    %c96 = arith.constant 96 : index
    %c0_222 = arith.constant 0 : index
    %449 = vector.load %arg7[%c96, %c0_222] : memref<128x512xf32, #tpu.memory_space<vmem>>, vector<16x256xf32>
    %cst_223 = arith.constant dense<0.000000e+00> : vector<16x256xf32>
    %450 = tpu.matmul %445, %409, %cst_223 {dimension_numbers = #tpu.dot_dimension_numbers<[1], [0], [0], [1], [0, 0, 1, 1], [], []>} : vector<16x8xf32>, vector<8x256xf32>, vector<16x256xf32> -> vector<16x256xf32>
    %451 = arith.addf %449, %450 : vector<16x256xf32>
    %cst_224 = arith.constant 5.000000e-01 : f32
    %452 = vector.broadcast %cst_224 : f32 to vector<16x256xf32>
    %453 = arith.mulf %452, %451 : vector<16x256xf32>
    %cst_225 = arith.constant 0.707106769 : f32
    %454 = vector.broadcast %cst_225 : f32 to vector<16x256xf32>
    %455 = arith.mulf %451, %454 : vector<16x256xf32>
    %456 = math.erf %455 : vector<16x256xf32>
    %cst_226 = arith.constant 1.000000e+00 : f32
    %457 = vector.broadcast %cst_226 : f32 to vector<16x256xf32>
    %458 = arith.addf %457, %456 : vector<16x256xf32>
    %459 = arith.mulf %453, %458 : vector<16x256xf32>
    %cst_227 = arith.constant dense<0.000000e+00> : vector<16x256xf32>
    %460 = tpu.matmul %447, %459, %cst_227 {dimension_numbers = #tpu.dot_dimension_numbers<[1], [0], [0], [1], [0, 0, 1, 1], [], []>} : vector<16x16xf32>, vector<16x256xf32>, vector<16x256xf32> -> vector<16x256xf32>
    %cst_228 = arith.constant 5.000000e-01 : f32
    %461 = vector.broadcast %cst_228 : f32 to vector<16x256xf32>
    %462 = arith.mulf %461, %460 : vector<16x256xf32>
    %cst_229 = arith.constant 0.707106769 : f32
    %463 = vector.broadcast %cst_229 : f32 to vector<16x256xf32>
    %464 = arith.mulf %460, %463 : vector<16x256xf32>
    %465 = math.erf %464 : vector<16x256xf32>
    %cst_230 = arith.constant 1.000000e+00 : f32
    %466 = vector.broadcast %cst_230 : f32 to vector<16x256xf32>
    %467 = arith.addf %466, %465 : vector<16x256xf32>
    %468 = arith.mulf %462, %467 : vector<16x256xf32>
    %cst_231 = arith.constant dense<0.000000e+00> : vector<1x256xf32>
    %469 = tpu.matmul %448, %468, %cst_231 {dimension_numbers = #tpu.dot_dimension_numbers<[1], [0], [0], [1], [0, 0, 1, 1], [], []>} : vector<1x16xf32>, vector<16x256xf32>, vector<1x256xf32> -> vector<1x256xf32>
    %cst_232 = arith.constant 5.000000e-01 : f32
    %470 = vector.broadcast %cst_232 : f32 to vector<1x256xf32>
    %471 = arith.mulf %470, %469 : vector<1x256xf32>
    %cst_233 = arith.constant 0.707106769 : f32
    %472 = vector.broadcast %cst_233 : f32 to vector<1x256xf32>
    %473 = arith.mulf %469, %472 : vector<1x256xf32>
    %474 = math.erf %473 : vector<1x256xf32>
    %cst_234 = arith.constant 1.000000e+00 : f32
    %475 = vector.broadcast %cst_234 : f32 to vector<1x256xf32>
    %476 = arith.addf %475, %474 : vector<1x256xf32>
    %477 = arith.mulf %471, %476 : vector<1x256xf32>
    %c6_i32 = arith.constant 6 : i32
    %478 = vector.broadcast %c6_i32 : i32 to vector<8x256xi32>
    %479 = arith.cmpi eq, %0, %478 : vector<8x256xi32>
    %480 = vector.shape_cast %477 : vector<1x256xf32> to vector<1x256xf32>
    %481 = vector.broadcast %480 : vector<1x256xf32> to vector<8x256xf32>
    %482 = arith.select %479, %481, %409 : vector<8x256xi1>, vector<8x256xf32>
    %c96_235 = arith.constant 96 : index
    %c256_236 = arith.constant 256 : index
    %483 = vector.load %arg7[%c96_235, %c256_236] : memref<128x512xf32, #tpu.memory_space<vmem>>, vector<16x256xf32>
    %cst_237 = arith.constant dense<0.000000e+00> : vector<16x256xf32>
    %484 = tpu.matmul %445, %443, %cst_237 {dimension_numbers = #tpu.dot_dimension_numbers<[1], [0], [0], [1], [0, 0, 1, 1], [], []>} : vector<16x8xf32>, vector<8x256xf32>, vector<16x256xf32> -> vector<16x256xf32>
    %485 = arith.addf %483, %484 : vector<16x256xf32>
    %cst_238 = arith.constant 5.000000e-01 : f32
    %486 = vector.broadcast %cst_238 : f32 to vector<16x256xf32>
    %487 = arith.mulf %486, %485 : vector<16x256xf32>
    %cst_239 = arith.constant 0.707106769 : f32
    %488 = vector.broadcast %cst_239 : f32 to vector<16x256xf32>
    %489 = arith.mulf %485, %488 : vector<16x256xf32>
    %490 = math.erf %489 : vector<16x256xf32>
    %cst_240 = arith.constant 1.000000e+00 : f32
    %491 = vector.broadcast %cst_240 : f32 to vector<16x256xf32>
    %492 = arith.addf %491, %490 : vector<16x256xf32>
    %493 = arith.mulf %487, %492 : vector<16x256xf32>
    %cst_241 = arith.constant dense<0.000000e+00> : vector<16x256xf32>
    %494 = tpu.matmul %447, %493, %cst_241 {dimension_numbers = #tpu.dot_dimension_numbers<[1], [0], [0], [1], [0, 0, 1, 1], [], []>} : vector<16x16xf32>, vector<16x256xf32>, vector<16x256xf32> -> vector<16x256xf32>
    %cst_242 = arith.constant 5.000000e-01 : f32
    %495 = vector.broadcast %cst_242 : f32 to vector<16x256xf32>
    %496 = arith.mulf %495, %494 : vector<16x256xf32>
    %cst_243 = arith.constant 0.707106769 : f32
    %497 = vector.broadcast %cst_243 : f32 to vector<16x256xf32>
    %498 = arith.mulf %494, %497 : vector<16x256xf32>
    %499 = math.erf %498 : vector<16x256xf32>
    %cst_244 = arith.constant 1.000000e+00 : f32
    %500 = vector.broadcast %cst_244 : f32 to vector<16x256xf32>
    %501 = arith.addf %500, %499 : vector<16x256xf32>
    %502 = arith.mulf %496, %501 : vector<16x256xf32>
    %cst_245 = arith.constant dense<0.000000e+00> : vector<1x256xf32>
    %503 = tpu.matmul %448, %502, %cst_245 {dimension_numbers = #tpu.dot_dimension_numbers<[1], [0], [0], [1], [0, 0, 1, 1], [], []>} : vector<1x16xf32>, vector<16x256xf32>, vector<1x256xf32> -> vector<1x256xf32>
    %cst_246 = arith.constant 5.000000e-01 : f32
    %504 = vector.broadcast %cst_246 : f32 to vector<1x256xf32>
    %505 = arith.mulf %504, %503 : vector<1x256xf32>
    %cst_247 = arith.constant 0.707106769 : f32
    %506 = vector.broadcast %cst_247 : f32 to vector<1x256xf32>
    %507 = arith.mulf %503, %506 : vector<1x256xf32>
    %508 = math.erf %507 : vector<1x256xf32>
    %cst_248 = arith.constant 1.000000e+00 : f32
    %509 = vector.broadcast %cst_248 : f32 to vector<1x256xf32>
    %510 = arith.addf %509, %508 : vector<1x256xf32>
    %511 = arith.mulf %505, %510 : vector<1x256xf32>
    %c6_i32_249 = arith.constant 6 : i32
    %512 = vector.broadcast %c6_i32_249 : i32 to vector<8x256xi32>
    %513 = arith.cmpi eq, %0, %512 : vector<8x256xi32>
    %514 = vector.shape_cast %511 : vector<1x256xf32> to vector<1x256xf32>
    %515 = vector.broadcast %514 : vector<1x256xf32> to vector<8x256xf32>
    %516 = arith.select %513, %515, %443 : vector<8x256xi1>, vector<8x256xf32>
    %c7 = arith.constant 7 : index
    %c0_250 = arith.constant 0 : index
    %c0_251 = arith.constant 0 : index
    %517 = vector.load %arg3[%c7, %c0_250, %c0_251] : memref<8x16x8xf32, #tpu.memory_space<vmem>>, vector<1x16x8xf32>
    %518 = vector.shape_cast %517 : vector<1x16x8xf32> to vector<16x8xf32>
    %c7_252 = arith.constant 7 : index
    %c0_253 = arith.constant 0 : index
    %c0_254 = arith.constant 0 : index
    %c0_255 = arith.constant 0 : index
    %519 = vector.load %arg4[%c7_252, %c0_253, %c0_254, %c0_255] : memref<8x1x16x16xf32, #tpu.memory_space<vmem>>, vector<1x1x16x16xf32>
    %520 = vector.shape_cast %519 : vector<1x1x16x16xf32> to vector<16x16xf32>
    %521 = vector.extract_strided_slice %9 {offsets = [7, 0], sizes = [1, 16], strides = [1, 1]} : vector<8x16xf32> to vector<1x16xf32>
    %c112 = arith.constant 112 : index
    %c0_256 = arith.constant 0 : index
    %522 = vector.load %arg7[%c112, %c0_256] : memref<128x512xf32, #tpu.memory_space<vmem>>, vector<16x256xf32>
    %cst_257 = arith.constant dense<0.000000e+00> : vector<16x256xf32>
    %523 = tpu.matmul %518, %482, %cst_257 {dimension_numbers = #tpu.dot_dimension_numbers<[1], [0], [0], [1], [0, 0, 1, 1], [], []>} : vector<16x8xf32>, vector<8x256xf32>, vector<16x256xf32> -> vector<16x256xf32>
    %524 = arith.addf %522, %523 : vector<16x256xf32>
    %cst_258 = arith.constant 5.000000e-01 : f32
    %525 = vector.broadcast %cst_258 : f32 to vector<16x256xf32>
    %526 = arith.mulf %525, %524 : vector<16x256xf32>
    %cst_259 = arith.constant 0.707106769 : f32
    %527 = vector.broadcast %cst_259 : f32 to vector<16x256xf32>
    %528 = arith.mulf %524, %527 : vector<16x256xf32>
    %529 = math.erf %528 : vector<16x256xf32>
    %cst_260 = arith.constant 1.000000e+00 : f32
    %530 = vector.broadcast %cst_260 : f32 to vector<16x256xf32>
    %531 = arith.addf %530, %529 : vector<16x256xf32>
    %532 = arith.mulf %526, %531 : vector<16x256xf32>
    %cst_261 = arith.constant dense<0.000000e+00> : vector<16x256xf32>
    %533 = tpu.matmul %520, %532, %cst_261 {dimension_numbers = #tpu.dot_dimension_numbers<[1], [0], [0], [1], [0, 0, 1, 1], [], []>} : vector<16x16xf32>, vector<16x256xf32>, vector<16x256xf32> -> vector<16x256xf32>
    %cst_262 = arith.constant 5.000000e-01 : f32
    %534 = vector.broadcast %cst_262 : f32 to vector<16x256xf32>
    %535 = arith.mulf %534, %533 : vector<16x256xf32>
    %cst_263 = arith.constant 0.707106769 : f32
    %536 = vector.broadcast %cst_263 : f32 to vector<16x256xf32>
    %537 = arith.mulf %533, %536 : vector<16x256xf32>
    %538 = math.erf %537 : vector<16x256xf32>
    %cst_264 = arith.constant 1.000000e+00 : f32
    %539 = vector.broadcast %cst_264 : f32 to vector<16x256xf32>
    %540 = arith.addf %539, %538 : vector<16x256xf32>
    %541 = arith.mulf %535, %540 : vector<16x256xf32>
    %cst_265 = arith.constant dense<0.000000e+00> : vector<1x256xf32>
    %542 = tpu.matmul %521, %541, %cst_265 {dimension_numbers = #tpu.dot_dimension_numbers<[1], [0], [0], [1], [0, 0, 1, 1], [], []>} : vector<1x16xf32>, vector<16x256xf32>, vector<1x256xf32> -> vector<1x256xf32>
    %cst_266 = arith.constant 5.000000e-01 : f32
    %543 = vector.broadcast %cst_266 : f32 to vector<1x256xf32>
    %544 = arith.mulf %543, %542 : vector<1x256xf32>
    %cst_267 = arith.constant 0.707106769 : f32
    %545 = vector.broadcast %cst_267 : f32 to vector<1x256xf32>
    %546 = arith.mulf %542, %545 : vector<1x256xf32>
    %547 = math.erf %546 : vector<1x256xf32>
    %cst_268 = arith.constant 1.000000e+00 : f32
    %548 = vector.broadcast %cst_268 : f32 to vector<1x256xf32>
    %549 = arith.addf %548, %547 : vector<1x256xf32>
    %550 = arith.mulf %544, %549 : vector<1x256xf32>
    %c7_i32 = arith.constant 7 : i32
    %551 = vector.broadcast %c7_i32 : i32 to vector<8x256xi32>
    %552 = arith.cmpi eq, %0, %551 : vector<8x256xi32>
    %553 = vector.shape_cast %550 : vector<1x256xf32> to vector<1x256xf32>
    %554 = vector.broadcast %553 : vector<1x256xf32> to vector<8x256xf32>
    %555 = arith.select %552, %554, %482 : vector<8x256xi1>, vector<8x256xf32>
    %c112_269 = arith.constant 112 : index
    %c256_270 = arith.constant 256 : index
    %556 = vector.load %arg7[%c112_269, %c256_270] : memref<128x512xf32, #tpu.memory_space<vmem>>, vector<16x256xf32>
    %cst_271 = arith.constant dense<0.000000e+00> : vector<16x256xf32>
    %557 = tpu.matmul %518, %516, %cst_271 {dimension_numbers = #tpu.dot_dimension_numbers<[1], [0], [0], [1], [0, 0, 1, 1], [], []>} : vector<16x8xf32>, vector<8x256xf32>, vector<16x256xf32> -> vector<16x256xf32>
    %558 = arith.addf %556, %557 : vector<16x256xf32>
    %cst_272 = arith.constant 5.000000e-01 : f32
    %559 = vector.broadcast %cst_272 : f32 to vector<16x256xf32>
    %560 = arith.mulf %559, %558 : vector<16x256xf32>
    %cst_273 = arith.constant 0.707106769 : f32
    %561 = vector.broadcast %cst_273 : f32 to vector<16x256xf32>
    %562 = arith.mulf %558, %561 : vector<16x256xf32>
    %563 = math.erf %562 : vector<16x256xf32>
    %cst_274 = arith.constant 1.000000e+00 : f32
    %564 = vector.broadcast %cst_274 : f32 to vector<16x256xf32>
    %565 = arith.addf %564, %563 : vector<16x256xf32>
    %566 = arith.mulf %560, %565 : vector<16x256xf32>
    %cst_275 = arith.constant dense<0.000000e+00> : vector<16x256xf32>
    %567 = tpu.matmul %520, %566, %cst_275 {dimension_numbers = #tpu.dot_dimension_numbers<[1], [0], [0], [1], [0, 0, 1, 1], [], []>} : vector<16x16xf32>, vector<16x256xf32>, vector<16x256xf32> -> vector<16x256xf32>
    %cst_276 = arith.constant 5.000000e-01 : f32
    %568 = vector.broadcast %cst_276 : f32 to vector<16x256xf32>
    %569 = arith.mulf %568, %567 : vector<16x256xf32>
    %cst_277 = arith.constant 0.707106769 : f32
    %570 = vector.broadcast %cst_277 : f32 to vector<16x256xf32>
    %571 = arith.mulf %567, %570 : vector<16x256xf32>
    %572 = math.erf %571 : vector<16x256xf32>
    %cst_278 = arith.constant 1.000000e+00 : f32
    %573 = vector.broadcast %cst_278 : f32 to vector<16x256xf32>
    %574 = arith.addf %573, %572 : vector<16x256xf32>
    %575 = arith.mulf %569, %574 : vector<16x256xf32>
    %cst_279 = arith.constant dense<0.000000e+00> : vector<1x256xf32>
    %576 = tpu.matmul %521, %575, %cst_279 {dimension_numbers = #tpu.dot_dimension_numbers<[1], [0], [0], [1], [0, 0, 1, 1], [], []>} : vector<1x16xf32>, vector<16x256xf32>, vector<1x256xf32> -> vector<1x256xf32>
    %cst_280 = arith.constant 5.000000e-01 : f32
    %577 = vector.broadcast %cst_280 : f32 to vector<1x256xf32>
    %578 = arith.mulf %577, %576 : vector<1x256xf32>
    %cst_281 = arith.constant 0.707106769 : f32
    %579 = vector.broadcast %cst_281 : f32 to vector<1x256xf32>
    %580 = arith.mulf %576, %579 : vector<1x256xf32>
    %581 = math.erf %580 : vector<1x256xf32>
    %cst_282 = arith.constant 1.000000e+00 : f32
    %582 = vector.broadcast %cst_282 : f32 to vector<1x256xf32>
    %583 = arith.addf %582, %581 : vector<1x256xf32>
    %584 = arith.mulf %578, %583 : vector<1x256xf32>
    %c7_i32_283 = arith.constant 7 : i32
    %585 = vector.broadcast %c7_i32_283 : i32 to vector<8x256xi32>
    %586 = arith.cmpi eq, %0, %585 : vector<8x256xi32>
    %587 = vector.shape_cast %584 : vector<1x256xf32> to vector<1x256xf32>
    %588 = vector.broadcast %587 : vector<1x256xf32> to vector<8x256xf32>
    %589 = arith.select %586, %588, %516 : vector<8x256xi1>, vector<8x256xf32>
    %c0_284 = arith.constant 0 : index
    %c0_285 = arith.constant 0 : index
    %590 = vector.load %arg6[%c0_284, %c0_285] : memref<8x512xf32, #tpu.memory_space<vmem>>, vector<8x256xf32>
    tpu.vector_store %arg6[%c0_284, %c0_285], %555 {strides = array<i32>} : memref<8x512xf32, #tpu.memory_space<vmem>>, vector<8x256xf32>,
    %c0_286 = arith.constant 0 : index
    %c256_287 = arith.constant 256 : index
    %591 = vector.load %arg6[%c0_286, %c256_287] : memref<8x512xf32, #tpu.memory_space<vmem>>, vector<8x256xf32>
    tpu.vector_store %arg6[%c0_286, %c256_287], %589 {strides = array<i32>} : memref<8x512xf32, #tpu.memory_space<vmem>>, vector<8x256xf32>,
    return
  }
  func.func @transform_0(%arg0: i32) -> (i32, i32) {
    %c0_i32 = arith.constant 0 : i32
    %c0_i32_0 = arith.constant 0 : i32
    return %c0_i32, %arg0 : i32, i32
  }
  func.func @transform_1(%arg0: i32) -> (i32, i32) {
    %c0_i32 = arith.constant 0 : i32
    %c0_i32_0 = arith.constant 0 : i32
    %c0_i32_1 = arith.constant 0 : i32
    return %c0_i32, %c0_i32_0 : i32, i32
  }
  func.func @transform_2(%arg0: i32) -> (i32, i32, i32) {
    %c0_i32 = arith.constant 0 : i32
    %c0_i32_0 = arith.constant 0 : i32
    %c0_i32_1 = arith.constant 0 : i32
    %c0_i32_2 = arith.constant 0 : i32
    return %c0_i32, %c0_i32_0, %c0_i32_1 : i32, i32, i32
  }
  func.func @transform_3(%arg0: i32) -> (i32, i32, i32, i32) {
    %c0_i32 = arith.constant 0 : i32
    %c0_i32_0 = arith.constant 0 : i32
    %c0_i32_1 = arith.constant 0 : i32
    %c0_i32_2 = arith.constant 0 : i32
    %c0_i32_3 = arith.constant 0 : i32
    return %c0_i32, %c0_i32_0, %c0_i32_1, %c0_i32_2 : i32, i32, i32, i32
  }
  func.func @transform_4(%arg0: i32) -> (i32, i32) {
    %c0_i32 = arith.constant 0 : i32
    %c0_i32_0 = arith.constant 0 : i32
    %c0_i32_1 = arith.constant 0 : i32
    return %c0_i32, %c0_i32_0 : i32, i32
  }
  func.func @transform_5(%arg0: i32) -> (i32, i32) {
    %c0_i32 = arith.constant 0 : i32
    %c0_i32_0 = arith.constant 0 : i32
    return %c0_i32, %arg0 : i32, i32
  }
}

</mosaic_0001>

<bundles_post_ra>
// kernel: tpu_custom_call.1
= control target key start
LH: loop header
LB: loop body
LE: loop exit
PB: predicated region body
PF: predicated region fallthrough
CT: control target
= control target key end

     0   :  { %10 = vsyncpa [#allocation4], 0  ;;  %s7160_s0 = inlined_call_operand.vmem [shape: f32[8,1024], index: 0, kind: input, shape index: {}]   ;;  %s7161_s1 = inlined_call_operand.vmem [shape: f32[128,8], index: 1, kind: input, shape index: {}]   ;;  %s7162_s2 = inlined_call_operand.vmem [shape: f32[8,16,8], index: 2, kind: input, shape index: {}]   ;;  %s7163_s3 = inlined_call_operand.vmem [shape: f32[8,1,16,16], index: 3, kind: input, shape index: {}]   ;;  %s7164_s4 = inlined_call_operand.vmem [shape: f32[8,16], index: 4, kind: input, shape index: {}]   ;;  %s7165_s5 = inlined_call_operand.hbm [shape: f32[8,1024], index: 5, kind: output, shape index: {}]  }
   0x1   :  { %12 = vsyncpa [#allocation4 + $0x1], 0  ;;  %s6128_s18 = smov 0   ;;  %s6130_s19 = smov 0  }
   0x2   :  { %s6132_s20 = smov 0   ;;  %s6134_s21 = smov 0  }
   0x3 LB: > { %s6149_s22 = sadd.s32 4294967295, %s6094_s21   ;;  %s5519_s23 = sadd.s32 4294967294, %s6094_s21   ;;  %s6094_s21 = sphi %s6134_s21, %s7226_s21   ;;  %s6090_s20 = sphi %s6132_s20, %s7225_s20   ;;  %s6086_s19 = sphi %s6130_s19, %s7224_s19   ;;  %s6082_s18 = sphi %s6128_s18, %s7223_s18  }
   0x4   : > { %s6153_s24 = sadd.s32 1, %s6094_s21   ;;  %s135_s25 = sadd.s32 1, %s6090_s20 }
   0x5   : > { %s132_s26 = ssub.s32 %s6094_s21, %s6153_s24  ;;  %p145_p0 = scmp.ne.s32.totalorder %s6090_s20, %s6086_s19 }
   0x6   : > { %p133_p1 = scmp.eq.s32.totalorder %s132_s26, 0  ;;  %p146_p2 = scmp.eq.s32.totalorder %s6149_s22, 1 }
   0x7   : > { %p151_p3 = scmp.ne.s32.totalorder %s6086_s19, %s6082_s18  ;;  %p152_p4 = scmp.eq.s32.totalorder %s5519_s23, 1 }
   0x8   : > { %s6164_s27 = scalar_select %p133_p1, %s6090_s20, %s135_s25  }
   0x9   : > { %p6166_p5 = por %p146_p2, %p145_p0  ;;  %p6170_p6 = por %p152_p4, %p151_p3 }
   0xa   : > { %p5522_p7 = scmp.ge.s32.totalorder %s6094_s21, 1  ;;  %p191_p8 = scmp.lt.s32.totalorder %s6094_s21, 3 }
   0xc   : > { %p192_p9 = pnand %p5522_p7, %p191_p8 }
   0xe   : > { %195 = sbr.rel (%p192_p9) target bundleno = 5625 (0x15f9), region = 40 }
  0x13   : > { %s5524_s30 = sshll.u32 %s6149_s22, 2  ;;  %v7166_v0 = vmov 0.0   ;;  %v230_v3 = vld [vmem:[%s7161_s1] sm:$0xff]  ;;  %vm246_vm0 = vcmask 64512   ;;  %v231_v4 = vld [vmem:[%s7161_s1 + $0x8] sm:$0xff]  ;;  %v232_v5 = vld [vmem:[%s7161_s1 + $0x10] sm:$0xff] }
  0x14   : > { %p220_p10 = scmp.lt.s32.totalorder %s5524_s30, 7  ;;  %359 = vmatprep.mubr.f32.mxu0 %v7166_v0  ;;  %618 = vmatprep.mubr.f32.mxu1 %v7166_v0  ;;  %v233_v6 = vld [vmem:[%s7161_s1 + $0x18] sm:$0xff]  ;;  %v234_v7 = vld [vmem:[%s7161_s1 + $0x20] sm:$0xff]  ;;  %v235_v8 = vld [vmem:[%s7161_s1 + $0x28] sm:$0xff]  ;;  %vm774_vm1 = vcmask 130048   ;;  %s216_s13 = sand.u32 1, %s6086_s19  }
  0x15   : > { %v236_v9 = vld [vmem:[%s7161_s1 + $0x30] sm:$0xff]  ;;  %v237_v10 = vld [vmem:[%s7161_s1 + $0x38] sm:$0xff]  ;;  %v238_v11 = vld [vmem:[%s7161_s1 + $0x40] sm:$0xff]  ;;  %s5523_s14 = sshll.u32 %s216_s13, 5  ;;  %s5671_s16 = sshll.u32 %s6149_s22, 9 }
  0x16   : > { %s7228_s30 = smov (!%p220_p10, %s5524_s30), 7  ;;  %v239_v12 = vld [vmem:[%s7161_s1 + $0x48] sm:$0xff]  ;;  %v240_v13 = vld [vmem:[%s7161_s1 + $0x50] sm:$0xff]  ;;  %v241_v14 = vld [vmem:[%s7161_s1 + $0x58] sm:$0xff]  ;;  %s7098_s15 = scalar_lea.vmem [#allocation3], %s5523_s14 }
  0x17   : > { %s5525_s6 = sshll.u32 %s7228_s30, 3  ;;  %v242_v15 = vld [vmem:[%s7161_s1 + $0x60] sm:$0xff]  ;;  %v243_v18 = vld [vmem:[%s7161_s1 + $0x68] sm:$0xff]  ;;  %v244_v19 = vld [vmem:[%s7161_s1 + $0x70] sm:$0xff]  ;;  %s5460_s17 = sshll.u32 %s7098_s15, 4  ;;  %s5461_s17 = int_to_ptr.vmem [resolvable:$true] %s5460_s17 }
  0x18   : > { %s6182_s9 = scalar_lea.vmem %s7160_s0, %s5525_s6  ;;  %v245_v20 = vld [vmem:[%s7161_s1 + $0x78] sm:$0xff]  ;;  %v6303_v45 = vld [vmem:[%s7163_s3] sm:$0xff]  ;;  %v6311_v46 = vld [vmem:[%s7163_s3 + $0x8] sm:$0xff]  ;;  %s7119_s26 = scalar_lea.hbm %s7165_s5, %s5671_s16 }
  0x19   : > { %v229_v1 = vld [vmem:[%s6182_s9 + $0x8] sm:$0xff]  ;;  %v228_v2 = vld [vmem:[%s6182_s9] sm:$0xff]  ;;  %v489_v16 = vld [vmem:[%s6182_s9 + $0x18] sm:$0xff]  ;;  %s5446_s22 = scalar_lea.sflag [#allocation4], %s216_s13  ;;  %s6034_s30 = scalar_lea.vmem %s5461_s17, 512 }
  0x1a   : > { %325 = vmatprep.subr.mxu0 %v229_v1  ;;  %584 = vmatprep.subr.mxu1 %v489_v16  ;;  %v488_v17 = vld [vmem:[%s6182_s9 + $0x10] sm:$0xff]  ;;  %p6035_p11 = scmp.ne.s32.totalorder %s5461_s17, %s6034_s30  ;;  %s6097_s6 = smov [#allocation3]  }
  0x1b   : > { %326 = vmatpush1.msra.mxu0 %v228_v2  ;;  %585 = vmatpush1.msra.mxu1 %v488_v17  ;;  %s6038_s7 = sshll.u32 %s6097_s6, 4  ;;  %s6039_s7 = int_to_ptr.vmem [resolvable:$false] %s6038_s7 }
  0x1c   : > { %5526 = vmatmul.mubr.msk.f32.vlgmr.msra.gmra.mxu0 %vm246_vm0, %v230_v3  ;;  %5542 = vmatmul.mubr.msk.f32.vlgmr.msra.gmra.mxu1 %vm246_vm0, %v230_v3  ;;  %p6036_p12 = pnand %p6035_p11, %p6166_p5  ;;  %s6040_s8 = scalar_lea.vmem %s6039_s7, 1024 }
  0x1d   : > { %365 = vmatprep.mubr.f32.mxu0 %v7166_v0  ;;  %624 = vmatprep.mubr.f32.mxu1 %v7166_v0  ;;  %p6041_p0 = scmp.lt.s32.totalorder %s5461_s17, %s6039_s7  ;;  %p6042_p1 = scmp.lt.s32.totalorder %s6040_s8, %s6034_s30 }
  0x1e   : > { %p6037_p13 = pneg %p6036_p12 }
  0x1f   : > { %p6043_p2 = por %p6042_p1, %p6041_p0 }
  0x20   : > { %5527 = vmatmul.mubr.msk.f32.gmra.mxu0 %vm246_vm0, %v231_v4  ;;  %5543 = vmatmul.mubr.msk.f32.gmra.mxu1 %vm246_vm0, %v231_v4 }
  0x21   : > { %371 = vmatprep.mubr.f32.mxu0 %v7166_v0  ;;  %630 = vmatprep.mubr.f32.mxu1 %v7166_v0  ;;  %p6044_p3 = pnand %p6043_p2, %p6037_p13 }
  0x24   : > { %5528 = vmatmul.mubr.msk.f32.gmra.mxu0 %vm246_vm0, %v232_v5  ;;  %5544 = vmatmul.mubr.msk.f32.gmra.mxu1 %vm246_vm0, %v232_v5 }
  0x25   : > { %377 = vmatprep.mubr.f32.mxu0 %v7166_v0  ;;  %636 = vmatprep.mubr.f32.mxu1 %v7166_v0 }
  0x28   : > { %5529 = vmatmul.mubr.msk.f32.gmra.mxu0 %vm246_vm0, %v233_v6  ;;  %5545 = vmatmul.mubr.msk.f32.gmra.mxu1 %vm246_vm0, %v233_v6 }
  0x29   : > { %383 = vmatprep.mubr.f32.mxu0 %v7166_v0  ;;  %642 = vmatprep.mubr.f32.mxu1 %v7166_v0 }
  0x2c   : > { %5530 = vmatmul.mubr.msk.f32.gmra.mxu0 %vm246_vm0, %v234_v7  ;;  %5546 = vmatmul.mubr.msk.f32.gmra.mxu1 %vm246_vm0, %v234_v7 }
  0x2d   : > { %389 = vmatprep.mubr.f32.mxu0 %v7166_v0  ;;  %648 = vmatprep.mubr.f32.mxu1 %v7166_v0 }
  0x30   : > { %5531 = vmatmul.mubr.msk.f32.gmra.mxu0 %vm246_vm0, %v235_v8  ;;  %5547 = vmatmul.mubr.msk.f32.gmra.mxu1 %vm246_vm0, %v235_v8 }
  0x31   : > { %395 = vmatprep.mubr.f32.mxu0 %v7166_v0  ;;  %654 = vmatprep.mubr.f32.mxu1 %v7166_v0 }
  0x34   : > { %5532 = vmatmul.mubr.msk.f32.gmra.mxu0 %vm246_vm0, %v236_v9  ;;  %5548 = vmatmul.mubr.msk.f32.gmra.mxu1 %vm246_vm0, %v236_v9 }
  0x35   : > { %401 = vmatprep.mubr.f32.mxu0 %v7166_v0  ;;  %660 = vmatprep.mubr.f32.mxu1 %v7166_v0 }
  0x38   : > { %5533 = vmatmul.mubr.msk.f32.gmra.mxu0 %vm246_vm0, %v237_v10  ;;  %5549 = vmatmul.mubr.msk.f32.gmra.mxu1 %vm246_vm0, %v237_v10 }
  0x39   : > { %407 = vmatprep.mubr.f32.mxu0 %v7166_v0  ;;  %666 = vmatprep.mubr.f32.mxu1 %v7166_v0 }
  0x3c   : > { %5534 = vmatmul.mubr.msk.f32.gmra.mxu0 %vm246_vm0, %v238_v11  ;;  %5550 = vmatmul.mubr.msk.f32.gmra.mxu1 %vm246_vm0, %v238_v11 }
  0x3d   : > { %413 = vmatprep.mubr.f32.mxu0 %v7166_v0  ;;  %672 = vmatprep.mubr.f32.mxu1 %v7166_v0 }
  0x40   : > { %5535 = vmatmul.mubr.msk.f32.gmra.mxu0 %vm246_vm0, %v239_v12  ;;  %5551 = vmatmul.mubr.msk.f32.gmra.mxu1 %vm246_vm0, %v239_v12 }
  0x41   : > { %419 = vmatprep.mubr.f32.mxu0 %v7166_v0  ;;  %678 = vmatprep.mubr.f32.mxu1 %v7166_v0 }
  0x44   : > { %5536 = vmatmul.mubr.msk.f32.gmra.mxu0 %vm246_vm0, %v240_v13  ;;  %5552 = vmatmul.mubr.msk.f32.gmra.mxu1 %vm246_vm0, %v240_v13 }
  0x45   : > { %425 = vmatprep.mubr.f32.mxu0 %v7166_v0  ;;  %684 = vmatprep.mubr.f32.mxu1 %v7166_v0 }
  0x48   : > { %5537 = vmatmul.mubr.msk.f32.gmra.mxu0 %vm246_vm0, %v241_v14  ;;  %5553 = vmatmul.mubr.msk.f32.gmra.mxu1 %vm246_vm0, %v241_v14 }
  0x49   : > { %431 = vmatprep.mubr.f32.mxu0 %v7166_v0  ;;  %690 = vmatprep.mubr.f32.mxu1 %v7166_v0 }
  0x4c   : > { %5538 = vmatmul.mubr.msk.f32.gmra.mxu0 %vm246_vm0, %v242_v15  ;;  %5554 = vmatmul.mubr.msk.f32.gmra.mxu1 %vm246_vm0, %v242_v15 }
  0x4d   : > { %437 = vmatprep.mubr.f32.mxu0 %v7166_v0  ;;  %696 = vmatprep.mubr.f32.mxu1 %v7166_v0 }
  0x50   : > { %5539 = vmatmul.mubr.msk.f32.gmra.mxu0 %vm246_vm0, %v243_v18  ;;  %5555 = vmatmul.mubr.msk.f32.gmra.mxu1 %vm246_vm0, %v243_v18 }
  0x51   : > { %443 = vmatprep.mubr.f32.mxu0 %v7166_v0  ;;  %702 = vmatprep.mubr.f32.mxu1 %v7166_v0 }
  0x54   : > { %5540 = vmatmul.mubr.msk.f32.gmra.mxu0 %vm246_vm0, %v244_v19  ;;  %5556 = vmatmul.mubr.msk.f32.gmra.mxu1 %vm246_vm0, %v244_v19 }
  0x55   : > { %449 = vmatprep.mubr.f32.mxu0 %v7166_v0  ;;  %708 = vmatprep.mubr.f32.mxu1 %v7166_v0 }
  0x58   : > { %5541 = vmatmul.mubr.msk.f32.gmra.mxu0 %vm246_vm0, %v245_v20  ;;  %5557 = vmatmul.mubr.msk.f32.gmra.mxu1 %vm246_vm0, %v245_v20 }
  0x59   : > { %845 = vmatprep.mubr.f32.mxu0 %v7166_v0  ;;  %945 = vmatprep.mubr.f32.mxu1 %v7166_v0 }
  0xdc   : > { %v361_v21 = vpop.f32.mrf.mxu0  ;;  %v620_v9 = vpop.f32.mrf.mxu1 }
  0xdd   : > { %v758_v24 = vmul.f32 0.70710677, %v361_v21  ;;  %v754_v41 = vmul.f32 0.5, %v361_v21 }
  0xde   : > { %v363_v22 = vpop.f32.mrf.mxu0  ;;  %v622_v11 = vpop.f32.mrf.mxu1 }
  0xdf   : > { %v759_v23 = vmul.f32 0.70710677, %v363_v22  ;;  %v755_v39 = vmul.f32 0.5, %v363_v22 }
  0xe0   : > { %v367_v25 = vpop.f32.mrf.mxu0  ;;  %v626_v13 = vpop.f32.mrf.mxu1 }
  0xe1   : > { %v760_v26 = vmul.f32 0.70710677, %v367_v25  ;;  %5712 = verf.f32 %v759_v23  ;;  %v756_v38 = vmul.f32 0.5, %v367_v25  ;;  %v982_v25 = vmul.f32 0.70710677, %v622_v11 }
  0xe2   : > { %v369_v27 = vpop.f32.mrf.mxu0  ;;  %v628_v15 = vpop.f32.mrf.mxu1 }
  0xe3   : > { %5714 = verf.f32 %v760_v26  ;;  %v761_v28 = vmul.f32 0.70710677, %v369_v27  ;;  %v757_v35 = vmul.f32 0.5, %v369_v27  ;;  %v984_v17 = vmul.f32 0.70710677, %v628_v15 }
  0xe4   : > { %5716 = verf.f32 %v758_v24  ;;  %v6316_v47 = vpop.f32.mrf.mxu0  ;;  %v983_v24 = vmul.f32 0.70710677, %v626_v13  ;;  %v981_v27 = vmul.f32 0.70710677, %v620_v9 }
  0xe5   : > { %5718 = verf.f32 %v761_v28 }
  0xe6   : > { %v6318_v48 = vpop.f32.mrf.mxu0  ;;  %5720 = verf.f32 %v984_v17 }
  0xe8   : > { %v6320_v49 = vpop.f32.mrf.mxu0 }
  0xea   : > { %v6322_v50 = vpop.f32.mrf.mxu0 }
  0xec   : > { %v6324_v51 = vpop.f32.mrf.mxu0 }
  0xee   : > { %v5713_v29 = vpop.eup %5712  ;;  %v6326_v52 = vpop.f32.mrf.mxu0 }
  0xef   : > { %v767_v34 = vadd.f32 1.0, %v5713_v29 }
  0xf0   : > { %v5715_v30 = vpop.eup %5714  ;;  %v6328_v53 = vpop.f32.mrf.mxu0 }
  0xf1   : > { %v5717_v31 = vpop.eup %5716  ;;  %v768_v33 = vadd.f32 1.0, %v5715_v30  ;;  %v771_v43 = vmul.f32 %v767_v34, %v755_v39 }
  0xf2   : > { %v5719_v32 = vpop.eup %5718  ;;  %v766_v37 = vadd.f32 1.0, %v5717_v31  ;;  %v6330_v54 = vpop.f32.mrf.mxu0 }
  0xf3   : > { %v769_v36 = vadd.f32 1.0, %v5719_v32  ;;  %v772_v42 = vmul.f32 %v768_v33, %v756_v38  ;;  %v5721_v28 = vpop.eup %5720 }
  0xf4   : > { %v770_v44 = vmul.f32 %v766_v37, %v754_v41  ;;  %v6332_v55 = vpop.f32.mrf.mxu0  ;;  %v992_v17 = vadd.f32 1.0, %v5721_v28 }
  0xf5   : > { %v773_v40 = vmul.f32 %v769_v36, %v757_v35 }
  0xf6   : > { %v6334_v56 = vpop.f32.mrf.mxu0 }
  0xf7   : > { %809 = vmatprep.subr.mxu0 %v773_v40 }
  0xf8   : > { %810 = vmatpush1.msra.mxu0 %v772_v42  ;;  %v6336_v57 = vpop.f32.mrf.mxu0 }
  0xf9   : > { %811 = vmatprep.subr.mxu0 %v771_v43 }
  0xfa   : > { %812 = vmatpush1.msra.mxu0 %v770_v44  ;;  %v6338_v58 = vpop.f32.mrf.mxu0  ;;  %v980_v44 = vmul.f32 0.5, %v628_v15 }
  0xfb   : > { %5558 = vmatmul.mubr.msk.f32.vlgmr.msra.gmra.mxu0 %vm774_vm1, %v6303_v45 }
  0xfc   : > { %851 = vmatprep.mubr.f32.mxu0 %v7166_v0  ;;  %v6340_v59 = vpop.f32.mrf.mxu0 }
  0xfe   : > { %v6342_v60 = vpop.f32.mrf.mxu0 }
  0xff   : > { %5559 = vmatmul.mubr.msk.f32.gmra.mxu0 %vm774_vm1, %v6311_v46 }
 0x100   : > { %1158 = vmatprep.mubr.f32.mxu0 %v7166_v0  ;;  %v6344_v61 = vpop.f32.mrf.mxu0 }
 0x102   : > { %v6346_v62 = vpop.f32.mrf.mxu0 }
 0x104   : > { %v6348_v63 = vpop.f32.mrf.mxu0 }
 0x105   : > { %7170 = vst [vmem:[#allocation6_spill] sm:$0xff] %v6348_v63 }
 0x106   : > { %v6350_v1 = vpop.f32.mrf.mxu0 }
 0x107   : > { %7171 = vst [vmem:[#allocation7_spill] sm:$0xff] %v6350_v1 }
 0x108   : > { %v6352_v2 = vpop.f32.mrf.mxu0 }
 0x109   : > { %7172 = vst [vmem:[#allocation8_spill] sm:$0xff] %v6352_v2 }
 0x10a   : > { %v6354_v3 = vpop.f32.mrf.mxu0 }
 0x10b   : > { %7173 = vst [vmem:[#allocation9_spill] sm:$0xff] %v6354_v3 }
 0x10c   : > { %v6356_v4 = vpop.f32.mrf.mxu0 }
 0x10d   : > { %7174 = vst [vmem:[#allocation10_spill] sm:$0xff] %v6356_v4 }
 0x10e   : > { %v6358_v5 = vpop.f32.mrf.mxu0 }
 0x10f   : > { %7175 = vst [vmem:[#allocation11_spill] sm:$0xff] %v6358_v5 }
 0x110   : > { %v6360_v6 = vpop.f32.mrf.mxu0 }
 0x111   : > { %7176 = vst [vmem:[#allocation12_spill] sm:$0xff] %v6360_v6 }
 0x112   : > { %v6362_v7 = vpop.f32.mrf.mxu0 }
 0x113   : > { %7177 = vst [vmem:[#allocation13_spill] sm:$0xff] %v6362_v7 }
 0x114   : > { %v6364_v8 = vpop.f32.mrf.mxu0 }
 0x115   : > { %7178 = vst [vmem:[#allocation14_spill] sm:$0xff] %v6364_v8  ;;  %v226_v8 = vlaneseq }
 0x116   : > { %v6366_v10 = vpop.f32.mrf.mxu0 }
 0x117   : > { %7179 = vst [vmem:[#allocation15_spill] sm:$0xff] %v6366_v10  ;;  %v6442_v6 = vshrl.u32 %v226_v8, 7 }
 0x118   : > { %v6368_v12 = vpop.f32.mrf.mxu0 }
 0x119   : > { %7180 = vst [vmem:[#allocation16_spill] sm:$0xff] %v6368_v12  ;;  %v6445_v2 = vsub.s32 0, %v6442_v6  ;;  %vm962_vm2 = vcmp.eq.s32.totalorder %v6442_v6, 0  ;;  %vm1489_vm3 = vcmp.eq.s32.totalorder %v6442_v6, 1  ;;  %vm2097_vm4 = vcmp.eq.s32.totalorder %v6442_v6, 2 }
 0x11a   : > { %v6370_v14 = vpop.f32.mrf.mxu0  ;;  %vm2705_vm5 = vcmp.eq.s32.totalorder %v6442_v6, 3  ;;  %vm3313_vm6 = vcmp.eq.s32.totalorder %v6442_v6, 4  ;;  %vm3921_vm7 = vcmp.eq.s32.totalorder %v6442_v6, 5  ;;  %vm4529_vm8 = vcmp.eq.s32.totalorder %v6442_v6, 6 }
 0x11b   : > { %7181 = vst [vmem:[#allocation17_spill] sm:$0xff] %v6370_v14  ;;  %vm5137_vm9 = vcmp.eq.s32.totalorder %v6442_v6, 7 }
 0x1bb   : > { %v847_v16 = vpop.f32.mrf.mxu0 }
 0x1bc   : > { %v862_v20 = vmul.f32 0.70710677, %v847_v16 }
 0x1bd   : > { %v849_v18 = vpop.f32.mrf.mxu0 }
 0x1be   : > { %v863_v19 = vmul.f32 0.70710677, %v849_v18  ;;  %v859_v42 = vmul.f32 0.5, %v849_v18  ;;  %v996_v18 = vmul.f32 %v992_v17, %v980_v44 }
 0x1bf   : > { %v853_v21 = vpop.f32.mrf.mxu0 }
 0x1c0   : > { %v864_v22 = vmul.f32 0.70710677, %v853_v21  ;;  %5722 = verf.f32 %v863_v19  ;;  %v860_v40 = vmul.f32 0.5, %v853_v21  ;;  %v858_v19 = vmul.f32 0.5, %v847_v16  ;;  %v6375_v21 = vld [vmem:[%s7164_s4] sm:$0xff] }
 0x1c1   : > { %v855_v23 = vpop.f32.mrf.mxu0 }
 0x1c2   : > { %5724 = verf.f32 %v864_v22  ;;  %v865_v26 = vmul.f32 0.70710677, %v855_v23  ;;  %v861_v36 = vmul.f32 0.5, %v855_v23  ;;  %v979_v22 = vmul.f32 0.5, %v626_v13 }
 0x1c3   : > { %5726 = verf.f32 %v862_v20 }
 0x1c4   : > { %5728 = verf.f32 %v865_v26  ;;  %v978_v26 = vmul.f32 0.5, %v622_v11 }
 0x1c5   : > { %5730 = verf.f32 %v983_v24 }
 0x1c6   : > { %5732 = verf.f32 %v982_v25 }
 0x1c7   : > { %5734 = verf.f32 %v981_v27 }
 0x1cd   : > { %v5723_v29 = vpop.eup %5722 }
 0x1ce   : > { %v871_v35 = vadd.f32 1.0, %v5723_v29  ;;  %v977_v29 = vmul.f32 0.5, %v620_v9  ;;  %v6386_v9 = vpop.f32.mrf.mxu1 }
 0x1cf   : > { %v5725_v30 = vpop.eup %5724 }
 0x1d0   : > { %v5727_v31 = vpop.eup %5726  ;;  %v872_v33 = vadd.f32 1.0, %v5725_v30  ;;  %v875_v25 = vmul.f32 %v871_v35, %v859_v42  ;;  %v6388_v13 = vpop.f32.mrf.mxu1 }
 0x1d1   : > { %v5729_v32 = vpop.eup %5728  ;;  %v870_v39 = vadd.f32 1.0, %v5727_v31 }
 0x1d2   : > { %v5731_v34 = vpop.eup %5730  ;;  %v873_v37 = vadd.f32 1.0, %v5729_v32  ;;  %v876_v20 = vmul.f32 %v872_v33, %v860_v40  ;;  %v6390_v28 = vpop.f32.mrf.mxu1 }
 0x1d3   : > { %v5733_v38 = vpop.eup %5732  ;;  %v991_v24 = vadd.f32 1.0, %v5731_v34  ;;  %v874_v30 = vmul.f32 %v870_v39, %v858_v19 }
 0x1d4   : > { %v5735_v41 = vpop.eup %5734  ;;  %v877_v43 = vmul.f32 %v873_v37, %v861_v36  ;;  %v990_v27 = vadd.f32 1.0, %v5733_v38  ;;  %v6392_v31 = vpop.f32.mrf.mxu1 }
 0x1d5   : > { %v989_v23 = vadd.f32 1.0, %v5735_v41  ;;  %v995_v15 = vmul.f32 %v991_v24, %v979_v22 }
 0x1d6   : > { %909 = vmatprep.subr.mxu1 %v877_v43  ;;  %v994_v16 = vmul.f32 %v990_v27, %v978_v26  ;;  %v6394_v32 = vpop.f32.mrf.mxu1 }
 0x1d7   : > { %910 = vmatpush1.msra.mxu1 %v876_v20  ;;  %v993_v11 = vmul.f32 %v989_v23, %v977_v29 }
 0x1d8   : > { %911 = vmatprep.subr.mxu1 %v875_v25  ;;  %v6396_v33 = vpop.f32.mrf.mxu1 }
 0x1d9   : > { %912 = vmatpush1.msra.mxu1 %v874_v30 }
 0x1da   : > { %5560 = vmatmul.mubr.msk.f32.vlgmr.msra.gmra.mxu1 %vm774_vm1, %v6375_v21  ;;  %1025 = vmatprep.subr.mxu1 %v996_v18 }
 0x1db   : > { %1026 = vmatpush1.msra.mxu1 %v995_v15  ;;  %1061 = vmatprep.mubr.f32.mxu1 %v7166_v0 }
 0x1dc   : > { %1027 = vmatprep.subr.mxu1 %v994_v16 }
 0x1dd   : > { %1028 = vmatpush1.msra.mxu1 %v993_v11 }
 0x1de   : > { %5561 = vmatmul.mubr.msk.f32.vlgmr.msra.gmra.mxu1 %vm774_vm1, %v6303_v45  ;;  %v6398_v45 = vpop.f32.mrf.mxu1 }
 0x1df   : > { %1067 = vmatprep.mubr.f32.mxu1 %v7166_v0 }
 0x1e0   : > { %v6400_v34 = vpop.f32.mrf.mxu1 }
 0x1e2   : > { %5562 = vmatmul.mubr.msk.f32.gmra.mxu1 %vm774_vm1, %v6311_v46  ;;  %v6402_v35 = vpop.f32.mrf.mxu1 }
 0x1e3   : > { %1372 = vmatprep.mubr.f32.mxu1 %v7166_v0 }
 0x1e4   : > { %v6404_v46 = vpop.f32.mrf.mxu1 }
 0x1e6   : > { %v6406_v36 = vpop.f32.mrf.mxu1 }
 0x1e8   : > { %v6408_v37 = vpop.f32.mrf.mxu1 }
 0x1ea   : > { %v6410_v38 = vpop.f32.mrf.mxu1 }
 0x1ec   : > { %v6412_v39 = vpop.f32.mrf.mxu1 }
 0x1ee   : > { %v6414_v40 = vpop.f32.mrf.mxu1 }
 0x1ef   : > { %7182 = vst [vmem:[#allocation18_spill] sm:$0xff] %v6414_v40 }
 0x1f0   : > { %v6416_v41 = vpop.f32.mrf.mxu1 }
 0x1f1   : > { %7183 = vst [vmem:[#allocation19_spill] sm:$0xff] %v6416_v41 }
 0x1f2   : > { %v6418_v42 = vpop.f32.mrf.mxu1 }
 0x1f3   : > { %7184 = vst [vmem:[#allocation20_spill] sm:$0xff] %v6418_v42 }
 0x1f4   : > { %v6420_v43 = vpop.f32.mrf.mxu1 }
 0x1f5   : > { %7185 = vst [vmem:[#allocation21_spill] sm:$0xff] %v6420_v43 }
 0x1f6   : > { %v6422_v44 = vpop.f32.mrf.mxu1 }
 0x1f7   : > { %7186 = vst [vmem:[#allocation22_spill] sm:$0xff] %v6422_v44 }
 0x1f8   : > { %v6424_v17 = vpop.f32.mrf.mxu1 }
 0x1f9   : > { %7187 = vst [vmem:[#allocation23_spill] sm:$0xff] %v6424_v17 }
 0x1fa   : > { %v6426_v19 = vpop.f32.mrf.mxu1 }
 0x1fb   : > { %7188 = vst [vmem:[#allocation24_spill] sm:$0xff] %v6426_v19 }
 0x1fc   : > { %v6428_v20 = vpop.f32.mrf.mxu1 }
 0x1fd   : > { %7189 = vst [vmem:[#allocation25_spill] sm:$0xff] %v6428_v20 }
 0x1fe   : > { %v6430_v22 = vpop.f32.mrf.mxu1 }
 0x1ff   : > { %7190 = vst [vmem:[#allocation26_spill] sm:$0xff] %v6430_v22 }
 0x200   : > { %v6432_v24 = vpop.f32.mrf.mxu1 }
 0x201   : > { %7191 = vst [vmem:[#allocation27_spill] sm:$0xff] %v6432_v24 }
 0x202   : > { %v6434_v25 = vpop.f32.mrf.mxu1 }
 0x203   : > { %7192 = vst [vmem:[#allocation28_spill] sm:$0xff] %v6434_v25 }
 0x204   : > { %v6436_v26 = vpop.f32.mrf.mxu1 }
 0x205   : > { %7193 = vst [vmem:[#allocation29_spill] sm:$0xff] %v6436_v26 }
 0x206   : > { %v6438_v27 = vpop.f32.mrf.mxu1 }
 0x207   : > { %7194 = vst [vmem:[#allocation30_spill] sm:$0xff] %v6438_v27 }
 0x208   : > { %v6440_v30 = vpop.f32.mrf.mxu1 }
 0x209   : > { %7195 = vst [vmem:[#allocation31_spill] sm:$0xff] %v6440_v30 }
 0x29a   : > { %v947_v29 = vpop.f32.mrf.mxu1 }
 0x29b   : > { %v954_v18 = vmul.f32 0.70710677, %v947_v29 }
 0x29c   : > { %v949_v23 = vpop.f32.mrf.mxu1 }
 0x29d   : > { %v955_v16 = vmul.f32 0.70710677, %v949_v23  ;;  %5736 = verf.f32 %v954_v18 }
 0x29e   : > { %v1063_v15 = vpop.f32.mrf.mxu1 }
 0x29f   : > { %v1078_v14 = vmul.f32 0.70710677, %v1063_v15  ;;  %5738 = verf.f32 %v955_v16  ;;  %v953_v16 = vmul.f32 0.5, %v949_v23 }
 0x2a0   : > { %v1065_v11 = vpop.f32.mrf.mxu1 }
 0x2a1   : > { %v1079_v0 = vmul.f32 0.70710677, %v1065_v11  ;;  %v1075_v43 = vmul.f32 0.5, %v1065_v11 }
 0x2a2   : > { %v1069_v12 = vpop.f32.mrf.mxu1 }
 0x2a3   : > { %v1080_v10 = vmul.f32 0.70710677, %v1069_v12  ;;  %5740 = verf.f32 %v1079_v0 }
 0x2a4   : > { %v1071_v25 = vpop.f32.mrf.mxu1 }
 0x2a5   : > { %5742 = verf.f32 %v1080_v10  ;;  %v1081_v26 = vmul.f32 0.70710677, %v1071_v25  ;;  %v1077_v0 = vmul.f32 0.5, %v1071_v25  ;;  %v952_v10 = vmul.f32 0.5, %v947_v29 }
 0x2a6   : > { %5744 = verf.f32 %v1078_v14  ;;  %v1076_v14 = vmul.f32 0.5, %v1069_v12 }
 0x2a7   : > { %5746 = verf.f32 %v1081_v26 }
 0x2aa   : > { %v5737_v27 = vpop.eup %5736 }
 0x2ab   : > { %v958_v18 = vadd.f32 1.0, %v5737_v27 }
 0x2ac   : > { %v5739_v30 = vpop.eup %5738 }
 0x2ad   : > { %v959_v19 = vadd.f32 1.0, %v5739_v30  ;;  %v960_v3 = vmul.f32 %v958_v18, %v952_v10  ;;  %v1074_v30 = vmul.f32 0.5, %v1063_v15 }
 0x2af   : > { %v961_v26 = vmul.f32 %v959_v19, %v953_v16 }
 0x2b0   : > { %v5741_v24 = vpop.eup %5740 }
 0x2b1   : > { %v1087_v4 = vadd.f32 1.0, %v5741_v24 }
 0x2b2   : > { %v5743_v22 = vpop.eup %5742 }
 0x2b3   : > { %v5745_v20 = vpop.eup %5744  ;;  %v1088_v5 = vadd.f32 1.0, %v5743_v22  ;;  %v1091_v8 = vmul.f32 %v1087_v4, %v1075_v43  ;;  %v6448_v22 = vrot.slane %v961_v26, %v6445_v2  ;;  %v6474_v4 = vld [vmem:[%s7162_s2 + $0x18] sm:$0xff] }
 0x2b4   : > { %v5747_v7 = vpop.eup %5746  ;;  %v1086_v44 = vadd.f32 1.0, %v5745_v20 }
 0x2b5   : > { %v1089_v17 = vadd.f32 1.0, %v5747_v7  ;;  %v1092_v1 = vmul.f32 %v1088_v5, %v1076_v14  ;;  %v6451_v7 = vrot.slane %v960_v3, %v6445_v2  ;;  %v6466_v3 = vld [vmem:[%s7162_s2 + $0x10] sm:$0xff] }
 0x2b6   : > { %v1090_v27 = vmul.f32 %v1086_v44, %v1074_v30 }
 0x2b7   : > { %v1093_v42 = vmul.f32 %v1089_v17, %v1077_v0 }
 0x2b9   : > { %1122 = vmatprep.subr.mxu0 %v1093_v42 }
 0x2ba   : > { %1123 = vmatpush1.msra.mxu0 %v1092_v1  ;;  %v7196_v1 = vmov 0.0  }
 0x2bb   : > { %1124 = vmatprep.subr.mxu0 %v1091_v8 }
 0x2bc   : > { %1125 = vmatpush1.msra.mxu0 %v1090_v27 }
 0x2bd   : > { %5563 = vmatmul.mubr.msk.f32.vlgmr.msra.gmra.mxu0 %vm774_vm1, %v6375_v21  ;;  %5568 = vmatprep.subr.msk.mxu0 %vm962_vm2, %v6448_v22 }
 0x2be   : > { %5569 = vmatpush1.msk.msra.mxu0 %vm962_vm2, %v6451_v7  ;;  %1265 = vmatprep.mubr.f32.mxu0 %v7196_v1 }
 0x2c1   : > { %5570 = vmatmul.mubr.msk.f32.vlgmr.msra.gmra.mxu0 %vm246_vm0, %v6466_v3 }
 0x2c2   : > { %1271 = vmatprep.mubr.f32.mxu0 %v7196_v1 }
 0x2c5   : > { %5571 = vmatmul.mubr.msk.f32.gmra.mxu0 %vm246_vm0, %v6474_v4 }
 0x2c6   : > { %1472 = vmatprep.mubr.f32.mxu0 %v7196_v1 }
 0x37d   : > { %v1160_v5 = vpop.f32.mrf.mxu0 }
 0x37e   : > { %v1167_v43 = vmul.f32 0.70710677, %v1160_v5 }
 0x37f   : > { %v1162_v12 = vpop.f32.mrf.mxu0 }
 0x380   : > { %v1168_v19 = vmul.f32 0.70710677, %v1162_v12  ;;  %5748 = verf.f32 %v1167_v43  ;;  %v1166_v27 = vmul.f32 0.5, %v1162_v12  ;;  %v6486_v12 = vld [vmem:[%s7163_s3 + $0x10] sm:$0xff] }
 0x381   : > { %v1267_v42 = vpop.f32.mrf.mxu0 }
 0x382   : > { %v1278_v44 = vadd.f32 %v1267_v42, %v6316_v47  ;;  %5750 = verf.f32 %v1168_v19  ;;  %v1165_v19 = vmul.f32 0.5, %v1160_v5 }
 0x383   : > { %v1269_v17 = vpop.f32.mrf.mxu0 }
 0x384   : > { %v1279_v20 = vadd.f32 %v1269_v17, %v6318_v48  ;;  %v1286_v23 = vmul.f32 0.70710677, %v1278_v44 }
 0x385   : > { %v1273_v24 = vpop.f32.mrf.mxu0 }
 0x386   : > { %v1287_v25 = vmul.f32 0.70710677, %v1279_v20  ;;  %v1280_v29 = vadd.f32 %v1273_v24, %v6320_v49 }
 0x387   : > { %v1275_v15 = vpop.f32.mrf.mxu0 }
 0x388   : > { %v1288_v11 = vmul.f32 0.70710677, %v1280_v29  ;;  %v1281_v18 = vadd.f32 %v1275_v15, %v6322_v50  ;;  %5752 = verf.f32 %v1287_v25  ;;  %v1284_v24 = vmul.f32 0.5, %v1280_v29 }
 0x389   : > { %v1283_v15 = vmul.f32 0.5, %v1279_v20 }
 0x38a   : > { %5754 = verf.f32 %v1288_v11  ;;  %v1289_v16 = vmul.f32 0.70710677, %v1281_v18  ;;  %v1285_v42 = vmul.f32 0.5, %v1281_v18 }
 0x38b   : > { %5756 = verf.f32 %v1286_v23 }
 0x38c   : > { %5758 = verf.f32 %v1289_v16  ;;  %v1282_v16 = vmul.f32 0.5, %v1278_v44 }
 0x38d   : > { %v5749_v47 = vpop.eup %5748 }
 0x38e   : > { %v1171_v49 = vadd.f32 1.0, %v5749_v47 }
 0x38f   : > { %v5751_v0 = vpop.eup %5750 }
 0x390   : > { %v1172_v26 = vadd.f32 1.0, %v5751_v0  ;;  %v1173_v11 = vmul.f32 %v1171_v49, %v1165_v19 }
 0x392   : > { %v1174_v25 = vmul.f32 %v1172_v26, %v1166_v27  ;;  %v6492_v5 = vrot.slane %v1173_v11, %v6445_v2 }
 0x394   : > { %v6489_v18 = vrot.slane %v1174_v25, %v6445_v2 }
 0x395   : > { %v5753_v10 = vpop.eup %5752 }
 0x396   : > { %v1295_v17 = vadd.f32 1.0, %v5753_v10 }
 0x397   : > { %v5755_v48 = vpop.eup %5754 }
 0x398   : > { %v5757_v14 = vpop.eup %5756  ;;  %v1296_v8 = vadd.f32 1.0, %v5755_v48  ;;  %v1299_v41 = vmul.f32 %v1295_v17, %v1283_v15 }
 0x399   : > { %v5759_v30 = vpop.eup %5758  ;;  %v1294_v50 = vadd.f32 1.0, %v5757_v14 }
 0x39a   : > { %v1297_v43 = vadd.f32 1.0, %v5759_v30  ;;  %v1300_v63 = vmul.f32 %v1296_v8, %v1284_v24 }
 0x39b   : > { %v1298_v40 = vmul.f32 %v1294_v50, %v1282_v16 }
 0x39c   : > { %v1301_v23 = vmul.f32 %v1297_v43, %v1285_v42 }
 0x39e   : > { %1336 = vmatprep.subr.mxu1 %v1301_v23 }
 0x39f   : > { %1337 = vmatpush1.msra.mxu1 %v1300_v63  ;;  %v6503_v63 = vld [vmem:[%s7163_s3 + $0x18] sm:$0xff] }
 0x3a0   : > { %1338 = vmatprep.subr.mxu1 %v1299_v41 }
 0x3a1   : > { %1339 = vmatpush1.msra.mxu1 %v1298_v40 }
 0x3a2   : > { %5572 = vmatmul.mubr.msk.f32.vlgmr.msra.gmra.mxu1 %vm774_vm1, %v6486_v12  ;;  %5575 = vmatprep.subr.msk.mxu1 %vm962_vm2, %v6489_v18 }
 0x3a3   : > { %1378 = vmatprep.mubr.f32.mxu1 %v7196_v1  ;;  %5576 = vmatpush1.msk.msra.mxu1 %vm962_vm2, %v6492_v5 }
 0x3a6   : > { %5573 = vmatmul.mubr.msk.f32.gmra.mxu1 %vm774_vm1, %v6503_v63 }
 0x3a7   : > { %1568 = vmatprep.mubr.f32.mxu1 %v7196_v1 }
 0x3aa   : > { %5577 = vmatmul.mubr.msk.f32.vlgmr.msra.gmra.mxu1 %vm246_vm0, %v6466_v3 }
 0x3ab   : > { %1574 = vmatprep.mubr.f32.mxu1 %v7196_v1 }
 0x3ae   : > { %5578 = vmatmul.mubr.msk.f32.gmra.mxu1 %vm246_vm0, %v6474_v4 }
 0x3af   : > { %1766 = vmatprep.mubr.f32.mxu1 %v7196_v1 }
 0x462   : > { %v1374_v40 = vpop.f32.mrf.mxu1 }
 0x463   : > { %v1389_v20 = vmul.f32 0.70710677, %v1374_v40 }
 0x464   : > { %v1376_v41 = vpop.f32.mrf.mxu1 }
 0x465   : > { %v1390_v44 = vmul.f32 0.70710677, %v1376_v41  ;;  %v1386_v16 = vmul.f32 0.5, %v1376_v41 }
 0x466   : > { %v1380_v29 = vpop.f32.mrf.mxu1 }
 0x467   : > { %v1391_v47 = vmul.f32 0.70710677, %v1380_v29  ;;  %5760 = verf.f32 %v1390_v44 }
 0x468   : > { %v1382_v0 = vpop.f32.mrf.mxu1 }
 0x469   : > { %5762 = verf.f32 %v1391_v47  ;;  %v1392_v10 = vmul.f32 0.70710677, %v1382_v0  ;;  %v1388_v15 = vmul.f32 0.5, %v1382_v0 }
 0x46a   : > { %5764 = verf.f32 %v1389_v20  ;;  %v1570_v48 = vpop.f32.mrf.mxu1  ;;  %v1385_v20 = vmul.f32 0.5, %v1374_v40 }
 0x46b   : > { %5766 = verf.f32 %v1392_v10  ;;  %v1581_v3 = vadd.f32 %v1570_v48, %v6386_v9  ;;  %v1405_v10 = vrot.slane %v6375_v21, 1 }
 0x46c   : > { %v1572_v14 = vpop.f32.mrf.mxu1 }
 0x46d   : > { %v1582_v4 = vadd.f32 %v1572_v14, %v6388_v13  ;;  %v1589_v8 = vmul.f32 0.70710677, %v1581_v3 }
 0x46e   : > { %v1576_v26 = vpop.f32.mrf.mxu1 }
 0x46f   : > { %v1590_v30 = vmul.f32 0.70710677, %v1582_v4  ;;  %v1583_v49 = vadd.f32 %v1576_v26, %v6390_v28  ;;  %v1387_v28 = vmul.f32 0.5, %v1380_v29 }
 0x470   : > { %v1578_v27 = vpop.f32.mrf.mxu1 }
 0x471   : > { %v1591_v42 = vmul.f32 0.70710677, %v1583_v49  ;;  %v1584_v43 = vadd.f32 %v1578_v27, %v6392_v31  ;;  %5768 = verf.f32 %v1590_v30 }
 0x473   : > { %5770 = verf.f32 %v1591_v42  ;;  %v1592_v17 = vmul.f32 0.70710677, %v1584_v43  ;;  %v1588_v40 = vmul.f32 0.5, %v1584_v43  ;;  %v1587_v42 = vmul.f32 0.5, %v1583_v49 }
 0x474   : > { %5772 = verf.f32 %v1589_v8  ;;  %v5761_v19 = vpop.eup %5760 }
 0x475   : > { %5774 = verf.f32 %v1592_v17  ;;  %v1398_v13 = vadd.f32 1.0, %v5761_v19  ;;  %v1586_v17 = vmul.f32 0.5, %v1582_v4 }
 0x476   : > { %v5763_v50 = vpop.eup %5762 }
 0x477   : > { %v5765_v9 = vpop.eup %5764  ;;  %v1399_v25 = vadd.f32 1.0, %v5763_v50  ;;  %v1402_v31 = vmul.f32 %v1398_v13, %v1386_v16  ;;  %v1585_v50 = vmul.f32 0.5, %v1581_v3 }
 0x478   : > { %v5767_v24 = vpop.eup %5766  ;;  %v1397_v11 = vadd.f32 1.0, %v5765_v9 }
 0x479   : > { %v1400_v23 = vadd.f32 1.0, %v5767_v24  ;;  %v1403_v47 = vmul.f32 %v1399_v25, %v1387_v28 }
 0x47a   : > { %v1401_v48 = vmul.f32 %v1397_v11, %v1385_v20 }
 0x47b   : > { %v1404_v44 = vmul.f32 %v1400_v23, %v1388_v15 }
 0x47d   : > { %1436 = vmatprep.subr.mxu0 %v1404_v44 }
 0x47e   : > { %1437 = vmatpush1.msra.mxu0 %v1403_v47  ;;  %v5769_v14 = vpop.eup %5768 }
 0x47f   : > { %1438 = vmatprep.subr.mxu0 %v1402_v31  ;;  %v1598_v8 = vadd.f32 1.0, %v5769_v14 }
 0x480   : > { %v5771_v26 = vpop.eup %5770  ;;  %1439 = vmatpush1.msra.mxu0 %v1401_v48 }
 0x481   : > { %v5773_v30 = vpop.eup %5772  ;;  %5574 = vmatmul.mubr.msk.f32.vlgmr.msra.gmra.mxu0 %vm774_vm1, %v1405_v10  ;;  %v1599_v41 = vadd.f32 1.0, %v5771_v26  ;;  %v1602_v24 = vmul.f32 %v1598_v8, %v1586_v17  ;;  %v971_v8 = vsel %vm962_vm2, %v6451_v7, 0.0  ;;  %v6562_v7 = vld [vmem:[%s7162_s2 + $0x28] sm:$0xff] }
 0x482   : > { %v5775_v29 = vpop.eup %5774  ;;  %1669 = vmatprep.mubr.f32.mxu0 %v7196_v1  ;;  %v1597_v27 = vadd.f32 1.0, %v5773_v30 }
 0x483   : > { %v1600_v0 = vadd.f32 1.0, %v5775_v29  ;;  %v1603_v9 = vmul.f32 %v1599_v41, %v1587_v42 }
 0x484   : > { %v1601_v25 = vmul.f32 %v1597_v27, %v1585_v50  ;;  %v6548_v27 = vld [vmem:[%s7162_s2 + $0x20] sm:$0xff] }
 0x485   : > { %v1604_v19 = vmul.f32 %v1600_v0, %v1588_v40  ;;  %v972_v40 = vsel %vm962_vm2, %v6448_v22, 0.0 }
 0x487   : > { %1633 = vmatprep.subr.mxu0 %v1604_v19 }
 0x488   : > { %1634 = vmatpush1.msra.mxu0 %v1603_v9 }
 0x489   : > { %1635 = vmatprep.subr.mxu0 %v1602_v24 }
 0x48a   : > { %1636 = vmatpush1.msra.mxu0 %v1601_v25 }
 0x48b   : > { %5579 = vmatmul.mubr.msk.f32.vlgmr.msra.gmra.mxu0 %vm774_vm1, %v6486_v12 }
 0x48c   : > { %1675 = vmatprep.mubr.f32.mxu0 %v7196_v1 }
 0x48f   : > { %5580 = vmatmul.mubr.msk.f32.gmra.mxu0 %vm774_vm1, %v6503_v63 }
 0x490   : > { %1873 = vmatprep.mubr.f32.mxu0 %v7196_v1 }
 0x541   : > { %v1474_v4 = vpop.f32.mrf.mxu0 }
 0x542   : > { %v1481_v49 = vmul.f32 0.70710677, %v1474_v4  ;;  %v1479_v20 = vmul.f32 0.5, %v1474_v4 }
 0x543   : > { %v1476_v3 = vpop.f32.mrf.mxu0 }
 0x544   : > { %5776 = verf.f32 %v1481_v49  ;;  %v1482_v43 = vmul.f32 0.70710677, %v1476_v3  ;;  %v1480_v14 = vmul.f32 0.5, %v1476_v3 }
 0x546   : > { %5778 = verf.f32 %v1482_v43 }
 0x54b   : > { %v1671_v13 = vpop.f32.mrf.mxu0 }
 0x54c   : > { %v1686_v11 = vmul.f32 0.70710677, %v1671_v13 }
 0x54d   : > { %v1673_v15 = vpop.f32.mrf.mxu0 }
 0x54e   : > { %v1687_v23 = vmul.f32 0.70710677, %v1673_v15  ;;  %v1683_v43 = vmul.f32 0.5, %v1673_v15 }
 0x54f   : > { %v1677_v28 = vpop.f32.mrf.mxu0 }
 0x550   : > { %v1688_v16 = vmul.f32 0.70710677, %v1677_v28  ;;  %5780 = verf.f32 %v1687_v23  ;;  %v1684_v3 = vmul.f32 0.5, %v1677_v28 }
 0x551   : > { %v5777_v12 = vpop.eup %5776  ;;  %v1679_v44 = vpop.f32.mrf.mxu0 }
 0x552   : > { %v1485_v47 = vadd.f32 1.0, %v5777_v12  ;;  %5782 = verf.f32 %v1688_v16  ;;  %v1689_v63 = vmul.f32 0.70710677, %v1679_v44  ;;  %v1685_v25 = vmul.f32 0.5, %v1679_v44 }
 0x553   : > { %v5779_v31 = vpop.eup %5778  ;;  %5784 = verf.f32 %v1686_v11  ;;  %v1682_v11 = vmul.f32 0.5, %v1671_v13 }
 0x554   : > { %v1487_v48 = vmul.f32 %v1485_v47, %v1479_v20  ;;  %v1486_v26 = vadd.f32 1.0, %v5779_v31  ;;  %5786 = verf.f32 %v1689_v63 }
 0x556   : > { %v1488_v30 = vmul.f32 %v1486_v26, %v1480_v14  ;;  %v1493_v29 = vrot.slane %v1487_v48, %v6445_v2 }
 0x558   : > { %v1497_v41 = vrot.slane %v1488_v30, %v6445_v2  ;;  %v6553_v42 = vsel %vm1489_vm3, %v1493_v29, %v971_v8 }
 0x55a   : > { %v6540_v0 = vsel %vm1489_vm3, %v1497_v41, %v972_v40 }
 0x55b   : > { %1839 = vmatprep.subr.mxu0 %v6540_v0 }
 0x55c   : > { %1840 = vmatpush1.msra.mxu0 %v6553_v42 }
 0x55d   : > { %5586 = vmatmul.mubr.msk.f32.vlgmr.msra.gmra.mxu0 %vm246_vm0, %v6548_v27  ;;  %v5781_v22 = vpop.eup %5780 }
 0x55e   : > { %1879 = vmatprep.mubr.f32.mxu0 %v7196_v1  ;;  %v1695_v24 = vadd.f32 1.0, %v5781_v22 }
 0x55f   : > { %v5783_v17 = vpop.eup %5782 }
 0x560   : > { %v5785_v19 = vpop.eup %5784  ;;  %v1696_v9 = vadd.f32 1.0, %v5783_v17  ;;  %v1699_v12 = vmul.f32 %v1695_v24, %v1683_v43 }
 0x561   : > { %v5787_v50 = vpop.eup %5786  ;;  %5587 = vmatmul.mubr.msk.f32.gmra.mxu0 %vm246_vm0, %v6562_v7  ;;  %v1694_v49 = vadd.f32 1.0, %v5785_v19 }
 0x562   : > { %v1697_v4 = vadd.f32 1.0, %v5787_v50  ;;  %2080 = vmatprep.mubr.f32.mxu0 %v7196_v1  ;;  %v1700_v16 = vmul.f32 %v1696_v9, %v1684_v3 }
 0x563   : > { %v1698_v20 = vmul.f32 %v1694_v49, %v1682_v11 }
 0x564   : > { %v1701_v23 = vmul.f32 %v1697_v4, %v1685_v25 }
 0x566   : > { %1730 = vmatprep.subr.mxu1 %v1701_v23 }
 0x567   : > { %1731 = vmatpush1.msra.mxu1 %v1700_v16 }
 0x568   : > { %1732 = vmatprep.subr.mxu1 %v1699_v12 }
 0x569   : > { %1733 = vmatpush1.msra.mxu1 %v1698_v20  ;;  %v6578_v20 = vld [vmem:[%s7163_s3 + $0x20] sm:$0xff] }
 0x56a   : > { %5581 = vmatmul.mubr.msk.f32.vlgmr.msra.gmra.mxu1 %vm774_vm1, %v1405_v10 }
 0x56b   : > { %1980 = vmatprep.mubr.f32.mxu1 %v7196_v1 }
 0x61d   : > { %v1875_v44 = vpop.f32.mrf.mxu0 }
 0x61e   : > { %v1886_v47 = vadd.f32 %v1875_v44, %v6324_v51 }
 0x61f   : > { %v1877_v28 = vpop.f32.mrf.mxu0 }
 0x620   : > { %v1887_v15 = vadd.f32 %v1877_v28, %v6326_v52  ;;  %v1894_v48 = vmul.f32 0.70710677, %v1886_v47  ;;  %v1890_v49 = vmul.f32 0.5, %v1886_v47 }
 0x621   : > { %v1881_v13 = vpop.f32.mrf.mxu0 }
 0x622   : > { %v1895_v63 = vmul.f32 0.70710677, %v1887_v15  ;;  %v1888_v31 = vadd.f32 %v1881_v13, %v6328_v53  ;;  %v1891_v25 = vmul.f32 0.5, %v1887_v15 }
 0x623   : > { %v1883_v14 = vpop.f32.mrf.mxu0 }
 0x624   : > { %v1896_v26 = vmul.f32 0.70710677, %v1888_v31  ;;  %v1889_v30 = vadd.f32 %v1883_v14, %v6330_v54  ;;  %5788 = verf.f32 %v1895_v63  ;;  %v1892_v24 = vmul.f32 0.5, %v1888_v31  ;;  %v6586_v63 = vld [vmem:[%s7163_s3 + $0x28] sm:$0xff] }
 0x625   : > { %v1184_v14 = vsel %vm962_vm2, %v6489_v18, 0.0 }
 0x626   : > { %5790 = verf.f32 %v1896_v26  ;;  %v1897_v10 = vmul.f32 0.70710677, %v1889_v30  ;;  %v1893_v19 = vmul.f32 0.5, %v1889_v30  ;;  %v1183_v30 = vsel %vm962_vm2, %v6492_v5, 0.0 }
 0x627   : > { %5792 = verf.f32 %v1894_v48 }
 0x628   : > { %5794 = verf.f32 %v1897_v10 }
 0x62a   : > { %v1768_v29 = vpop.f32.mrf.mxu1 }
 0x62b   : > { %v1775_v41 = vmul.f32 0.70710677, %v1768_v29  ;;  %v1773_v16 = vmul.f32 0.5, %v1768_v29 }
 0x62c   : > { %v1770_v51 = vpop.f32.mrf.mxu1 }
 0x62d   : > { %5796 = verf.f32 %v1775_v41  ;;  %v1776_v40 = vmul.f32 0.70710677, %v1770_v51  ;;  %v1774_v13 = vmul.f32 0.5, %v1770_v51 }
 0x62f   : > { %5798 = verf.f32 %v1776_v40 }
 0x631   : > { %v5789_v52 = vpop.eup %5788 }
 0x632   : > { %v1903_v9 = vadd.f32 1.0, %v5789_v52 }
 0x633   : > { %v5791_v8 = vpop.eup %5790 }
 0x634   : > { %v5793_v22 = vpop.eup %5792  ;;  %v1904_v17 = vadd.f32 1.0, %v5791_v8  ;;  %v1907_v23 = vmul.f32 %v1903_v9, %v1891_v25 }
 0x635   : > { %v5795_v53 = vpop.eup %5794  ;;  %v1902_v54 = vadd.f32 1.0, %v5793_v22 }
 0x636   : > { %v1905_v50 = vadd.f32 1.0, %v5795_v53  ;;  %v1908_v3 = vmul.f32 %v1904_v17, %v1892_v24 }
 0x637   : > { %v1906_v11 = vmul.f32 %v1902_v54, %v1890_v49 }
 0x638   : > { %v1909_v4 = vmul.f32 %v1905_v50, %v1893_v19 }
 0x63a   : > { %v5797_v43 = vpop.eup %5796  ;;  %1944 = vmatprep.subr.mxu1 %v1909_v4 }
 0x63b   : > { %v1779_v12 = vadd.f32 1.0, %v5797_v43  ;;  %1945 = vmatpush1.msra.mxu1 %v1908_v3 }
 0x63c   : > { %v5799_v44 = vpop.eup %5798  ;;  %1946 = vmatprep.subr.mxu1 %v1907_v23 }
 0x63d   : > { %v1781_v28 = vmul.f32 %v1779_v12, %v1773_v16  ;;  %v1780_v15 = vadd.f32 1.0, %v5799_v44  ;;  %1947 = vmatpush1.msra.mxu1 %v1906_v11 }
 0x63e   : > { %5588 = vmatmul.mubr.msk.f32.vlgmr.msra.gmra.mxu1 %vm774_vm1, %v6578_v20 }
 0x63f   : > { %v1782_v47 = vmul.f32 %v1780_v15, %v1774_v13  ;;  %1986 = vmatprep.mubr.f32.mxu1 %v7196_v1  ;;  %v1786_v31 = vrot.slane %v1781_v28, %v6445_v2 }
 0x641   : > { %v1790_v48 = vrot.slane %v1782_v47, %v6445_v2  ;;  %v6606_v10 = vsel %vm1489_vm3, %v1786_v31, %v1183_v30  ;;  %v2013_v47 = vrot.slane %v6375_v21, 2 }
 0x642   : > { %5589 = vmatmul.mubr.msk.f32.gmra.mxu1 %vm774_vm1, %v6586_v63 }
 0x643   : > { %v6597_v26 = vsel %vm1489_vm3, %v1790_v48, %v1184_v14  ;;  %2176 = vmatprep.mubr.f32.mxu1 %v7196_v1 }
 0x644   : > { %2142 = vmatprep.subr.mxu1 %v6597_v26 }
 0x645   : > { %2143 = vmatpush1.msra.mxu1 %v6606_v10 }
 0x646   : > { %5591 = vmatmul.mubr.msk.f32.vlgmr.msra.gmra.mxu1 %vm246_vm0, %v6548_v27 }
 0x647   : > { %2182 = vmatprep.mubr.f32.mxu1 %v7196_v1 }
 0x64a   : > { %5592 = vmatmul.mubr.msk.f32.gmra.mxu1 %vm246_vm0, %v6562_v7 }
 0x64b   : > { %2374 = vmatprep.mubr.f32.mxu1 %v7196_v1 }
 0x6fe   : > { %v1982_v18 = vpop.f32.mrf.mxu1 }
 0x6ff   : > { %v1997_v41 = vmul.f32 0.70710677, %v1982_v18  ;;  %v1993_v13 = vmul.f32 0.5, %v1982_v18 }
 0x700   : > { %v1984_v5 = vpop.f32.mrf.mxu1 }
 0x701   : > { %v1998_v29 = vmul.f32 0.70710677, %v1984_v5  ;;  %v1994_v44 = vmul.f32 0.5, %v1984_v5 }
 0x702   : > { %v1988_v51 = vpop.f32.mrf.mxu1 }
 0x703   : > { %v1999_v40 = vmul.f32 0.70710677, %v1988_v51  ;;  %5800 = verf.f32 %v1998_v29 }
 0x704   : > { %v1990_v52 = vpop.f32.mrf.mxu1 }
 0x705   : > { %5802 = verf.f32 %v1999_v40  ;;  %v2000_v8 = vmul.f32 0.70710677, %v1990_v52  ;;  %v1996_v11 = vmul.f32 0.5, %v1990_v52 }
 0x706   : > { %5804 = verf.f32 %v1997_v41  ;;  %v2178_v22 = vpop.f32.mrf.mxu1 }
 0x707   : > { %5806 = verf.f32 %v2000_v8  ;;  %v2189_v27 = vadd.f32 %v2178_v22, %v6394_v32 }
 0x708   : > { %v2180_v53 = vpop.f32.mrf.mxu1 }
 0x709   : > { %v2190_v7 = vadd.f32 %v2180_v53, %v6396_v33  ;;  %v2197_v9 = vmul.f32 0.70710677, %v2189_v27  ;;  %v2193_v53 = vmul.f32 0.5, %v2189_v27 }
 0x70a   : > { %v2184_v17 = vpop.f32.mrf.mxu1 }
 0x70b   : > { %v2198_v19 = vmul.f32 0.70710677, %v2190_v7  ;;  %v2191_v50 = vadd.f32 %v2184_v17, %v6398_v45  ;;  %v1995_v45 = vmul.f32 0.5, %v1988_v51  ;;  %v2194_v8 = vmul.f32 0.5, %v2190_v7 }
 0x70c   : > { %v2186_v54 = vpop.f32.mrf.mxu1 }
 0x70d   : > { %v2199_v24 = vmul.f32 0.70710677, %v2191_v50  ;;  %v2192_v25 = vadd.f32 %v2186_v54, %v6400_v34  ;;  %5808 = verf.f32 %v2198_v19  ;;  %v2195_v52 = vmul.f32 0.5, %v2191_v50 }
 0x70f   : > { %5810 = verf.f32 %v2199_v24  ;;  %v2200_v4 = vmul.f32 0.70710677, %v2192_v25  ;;  %v2196_v18 = vmul.f32 0.5, %v2192_v25 }
 0x710   : > { %5812 = verf.f32 %v2197_v9  ;;  %v5801_v49 = vpop.eup %5800 }
 0x711   : > { %5814 = verf.f32 %v2200_v4  ;;  %v2006_v33 = vadd.f32 1.0, %v5801_v49 }
 0x712   : > { %v5803_v3 = vpop.eup %5802 }
 0x713   : > { %v5805_v32 = vpop.eup %5804  ;;  %v2007_v23 = vadd.f32 1.0, %v5803_v3  ;;  %v2010_v34 = vmul.f32 %v2006_v33, %v1994_v44 }
 0x714   : > { %v5807_v43 = vpop.eup %5806  ;;  %v2005_v12 = vadd.f32 1.0, %v5805_v32 }
 0x715   : > { %v2008_v16 = vadd.f32 1.0, %v5807_v43  ;;  %v2011_v15 = vmul.f32 %v2007_v23, %v1995_v45 }
 0x716   : > { %v2009_v31 = vmul.f32 %v2005_v12, %v1993_v13 }
 0x717   : > { %v2012_v28 = vmul.f32 %v2008_v16, %v1996_v11 }
 0x719   : > { %2044 = vmatprep.subr.mxu0 %v2012_v28 }
 0x71a   : > { %2045 = vmatpush1.msra.mxu0 %v2011_v15  ;;  %v5809_v48 = vpop.eup %5808 }
 0x71b   : > { %2046 = vmatprep.subr.mxu0 %v2010_v34  ;;  %v2206_v51 = vadd.f32 1.0, %v5809_v48  ;;  %v6641_v34 = vld [vmem:[%s7162_s2 + $0x30] sm:$0xff] }
 0x71c   : > { %v5811_v14 = vpop.eup %5810  ;;  %2047 = vmatpush1.msra.mxu0 %v2009_v31 }
 0x71d   : > { %v5813_v30 = vpop.eup %5812  ;;  %5590 = vmatmul.mubr.msk.f32.vlgmr.msra.gmra.mxu0 %vm774_vm1, %v2013_v47  ;;  %v2207_v5 = vadd.f32 1.0, %v5811_v14  ;;  %v2210_v19 = vmul.f32 %v2206_v51, %v2194_v8 }
 0x71e   : > { %v5815_v29 = vpop.eup %5814  ;;  %2277 = vmatprep.mubr.f32.mxu0 %v7196_v1  ;;  %v2205_v40 = vadd.f32 1.0, %v5813_v30 }
 0x71f   : > { %v2208_v41 = vadd.f32 1.0, %v5815_v29  ;;  %v2211_v17 = vmul.f32 %v2207_v5, %v2195_v52 }
 0x720   : > { %v2209_v9 = vmul.f32 %v2205_v40, %v2193_v53 }
 0x721   : > { %v2212_v22 = vmul.f32 %v2208_v41, %v2196_v18 }
 0x723   : > { %2241 = vmatprep.subr.mxu0 %v2212_v22 }
 0x724   : > { %2242 = vmatpush1.msra.mxu0 %v2211_v17 }
 0x725   : > { %2243 = vmatprep.subr.mxu0 %v2210_v19 }
 0x726   : > { %2244 = vmatpush1.msra.mxu0 %v2209_v9 }
 0x727   : > { %5593 = vmatmul.mubr.msk.f32.vlgmr.msra.gmra.mxu0 %vm774_vm1, %v6578_v20 }
 0x728   : > { %2283 = vmatprep.mubr.f32.mxu0 %v7196_v1 }
 0x72b   : > { %5594 = vmatmul.mubr.msk.f32.gmra.mxu0 %vm774_vm1, %v6586_v63 }
 0x72c   : > { %2481 = vmatprep.mubr.f32.mxu0 %v7196_v1 }
 0x7dd   : > { %v2082_v7 = vpop.f32.mrf.mxu0 }
 0x7de   : > { %v2089_v50 = vmul.f32 0.70710677, %v2082_v7  ;;  %v2087_v23 = vmul.f32 0.5, %v2082_v7 }
 0x7df   : > { %v2084_v27 = vpop.f32.mrf.mxu0 }
 0x7e0   : > { %5816 = verf.f32 %v2089_v50  ;;  %v2090_v54 = vmul.f32 0.70710677, %v2084_v27  ;;  %v2088_v12 = vmul.f32 0.5, %v2084_v27 }
 0x7e2   : > { %5818 = verf.f32 %v2090_v54 }
 0x7e7   : > { %v2279_v24 = vpop.f32.mrf.mxu0 }
 0x7e8   : > { %v2294_v49 = vmul.f32 0.70710677, %v2279_v24  ;;  %v2290_v22 = vmul.f32 0.5, %v2279_v24 }
 0x7e9   : > { %v2281_v25 = vpop.f32.mrf.mxu0 }
 0x7ea   : > { %v2295_v4 = vmul.f32 0.70710677, %v2281_v25  ;;  %v2291_v52 = vmul.f32 0.5, %v2281_v25 }
 0x7eb   : > { %v2285_v3 = vpop.f32.mrf.mxu0 }
 0x7ec   : > { %v2296_v32 = vmul.f32 0.70710677, %v2285_v3  ;;  %5820 = verf.f32 %v2295_v4  ;;  %v2292_v40 = vmul.f32 0.5, %v2285_v3 }
 0x7ed   : > { %v5817_v20 = vpop.eup %5816  ;;  %v2287_v43 = vpop.f32.mrf.mxu0 }
 0x7ee   : > { %v2093_v33 = vadd.f32 1.0, %v5817_v20  ;;  %5822 = verf.f32 %v2296_v32  ;;  %v2297_v63 = vmul.f32 0.70710677, %v2287_v43  ;;  %v2293_v18 = vmul.f32 0.5, %v2287_v43 }
 0x7ef   : > { %v5819_v11 = vpop.eup %5818  ;;  %5824 = verf.f32 %v2294_v49 }
 0x7f0   : > { %v2095_v16 = vmul.f32 %v2093_v33, %v2087_v23  ;;  %v2094_v45 = vadd.f32 1.0, %v5819_v11  ;;  %5826 = verf.f32 %v2297_v63 }
 0x7f2   : > { %v2096_v44 = vmul.f32 %v2094_v45, %v2088_v12  ;;  %v2101_v28 = vrot.slane %v2095_v16, %v6445_v2 }
 0x7f4   : > { %v2105_v13 = vrot.slane %v2096_v44, %v6445_v2  ;;  %v6647_v31 = vsel %vm2097_vm4, %v2101_v28, %v6553_v42 }
 0x7f6   : > { %v6636_v15 = vsel %vm2097_vm4, %v2105_v13, %v6540_v0  ;;  %v6656_v0 = vld [vmem:[%s7162_s2 + $0x38] sm:$0xff] }
 0x7f7   : > { %2447 = vmatprep.subr.mxu0 %v6636_v15 }
 0x7f8   : > { %2448 = vmatpush1.msra.mxu0 %v6647_v31 }
 0x7f9   : > { %5600 = vmatmul.mubr.msk.f32.vlgmr.msra.gmra.mxu0 %vm246_vm0, %v6641_v34  ;;  %v5821_v48 = vpop.eup %5820 }
 0x7fa   : > { %2487 = vmatprep.mubr.f32.mxu0 %v7196_v1  ;;  %v2303_v42 = vadd.f32 1.0, %v5821_v48 }
 0x7fb   : > { %v5823_v14 = vpop.eup %5822 }
 0x7fc   : > { %v5825_v30 = vpop.eup %5824  ;;  %v2304_v5 = vadd.f32 1.0, %v5823_v14  ;;  %v2307_v17 = vmul.f32 %v2303_v42, %v2291_v52 }
 0x7fd   : > { %v5827_v29 = vpop.eup %5826  ;;  %5601 = vmatmul.mubr.msk.f32.gmra.mxu0 %vm246_vm0, %v6656_v0  ;;  %v2302_v51 = vadd.f32 1.0, %v5825_v30 }
 0x7fe   : > { %v2305_v41 = vadd.f32 1.0, %v5827_v29  ;;  %2688 = vmatprep.mubr.f32.mxu0 %v7196_v1  ;;  %v2308_v53 = vmul.f32 %v2304_v5, %v2292_v40 }
 0x7ff   : > { %v2306_v19 = vmul.f32 %v2302_v51, %v2290_v22  ;;  %v6680_v22 = vld [vmem:[%s7163_s3 + $0x38] sm:$0xff] }
 0x800   : > { %v2309_v8 = vmul.f32 %v2305_v41, %v2293_v18  ;;  %v6672_v18 = vld [vmem:[%s7163_s3 + $0x30] sm:$0xff] }
 0x802   : > { %2338 = vmatprep.subr.mxu1 %v2309_v8 }
 0x803   : > { %2339 = vmatpush1.msra.mxu1 %v2308_v53 }
 0x804   : > { %2340 = vmatprep.subr.mxu1 %v2307_v17 }
 0x805   : > { %2341 = vmatpush1.msra.mxu1 %v2306_v19 }
 0x806   : > { %5595 = vmatmul.mubr.msk.f32.vlgmr.msra.gmra.mxu1 %vm774_vm1, %v2013_v47 }
 0x807   : > { %2588 = vmatprep.mubr.f32.mxu1 %v7196_v1 }
 0x8b9   : > { %v2483_v9 = vpop.f32.mrf.mxu0 }
 0x8ba   : > { %v2494_v7 = vadd.f32 %v2483_v9, %v6332_v55 }
 0x8bb   : > { %v2485_v50 = vpop.f32.mrf.mxu0 }
 0x8bc   : > { %v2495_v27 = vadd.f32 %v2485_v50, %v6334_v56  ;;  %v2502_v4 = vmul.f32 0.70710677, %v2494_v7  ;;  %v2498_v13 = vmul.f32 0.5, %v2494_v7 }
 0x8bd   : > { %v2489_v54 = vpop.f32.mrf.mxu0 }
 0x8be   : > { %v2503_v24 = vmul.f32 0.70710677, %v2495_v27  ;;  %v2496_v25 = vadd.f32 %v2489_v54, %v6336_v57  ;;  %v2499_v44 = vmul.f32 0.5, %v2495_v27 }
 0x8bf   : > { %v2491_v49 = vpop.f32.mrf.mxu0 }
 0x8c0   : > { %v2504_v3 = vmul.f32 0.70710677, %v2496_v25  ;;  %v2497_v32 = vadd.f32 %v2491_v49, %v6338_v58  ;;  %5828 = verf.f32 %v2503_v24  ;;  %v2500_v45 = vmul.f32 0.5, %v2496_v25 }
 0x8c2   : > { %5830 = verf.f32 %v2504_v3  ;;  %v2505_v21 = vmul.f32 0.70710677, %v2497_v32  ;;  %v2501_v11 = vmul.f32 0.5, %v2497_v32 }
 0x8c3   : > { %5832 = verf.f32 %v2502_v4 }
 0x8c4   : > { %5834 = verf.f32 %v2505_v21 }
 0x8c6   : > { %v2376_v47 = vpop.f32.mrf.mxu1 }
 0x8c7   : > { %v2383_v20 = vmul.f32 0.70710677, %v2376_v47  ;;  %v2381_v5 = vmul.f32 0.5, %v2376_v47 }
 0x8c8   : > { %v2378_v55 = vpop.f32.mrf.mxu1 }
 0x8c9   : > { %5836 = verf.f32 %v2383_v20  ;;  %v2384_v43 = vmul.f32 0.70710677, %v2378_v55  ;;  %v2382_v40 = vmul.f32 0.5, %v2378_v55 }
 0x8cb   : > { %5838 = verf.f32 %v2384_v43 }
 0x8cd   : > { %v5829_v56 = vpop.eup %5828 }
 0x8ce   : > { %v2511_v12 = vadd.f32 1.0, %v5829_v56 }
 0x8cf   : > { %v5831_v23 = vpop.eup %5830 }
 0x8d0   : > { %v5833_v33 = vpop.eup %5832  ;;  %v2512_v63 = vadd.f32 1.0, %v5831_v23  ;;  %v2515_v30 = vmul.f32 %v2511_v12, %v2499_v44 }
 0x8d1   : > { %v5835_v57 = vpop.eup %5834  ;;  %v2510_v58 = vadd.f32 1.0, %v5833_v33 }
 0x8d2   : > { %v2513_v16 = vadd.f32 1.0, %v5835_v57  ;;  %v2516_v48 = vmul.f32 %v2512_v63, %v2500_v45 }
 0x8d3   : > { %v2514_v29 = vmul.f32 %v2510_v58, %v2498_v13  ;;  %v6712_v13 = vld [vmem:[%s7164_s4] sm:$0xff] }
 0x8d4   : > { %v2517_v28 = vmul.f32 %v2513_v16, %v2501_v11 }
 0x8d6   : > { %v5837_v14 = vpop.eup %5836  ;;  %2552 = vmatprep.subr.mxu1 %v2517_v28 }
 0x8d7   : > { %v2387_v42 = vadd.f32 1.0, %v5837_v14  ;;  %2553 = vmatpush1.msra.mxu1 %v2516_v48  ;;  %v2621_v48 = vrot.slane %v6712_v13, 3 }
 0x8d8   : > { %v5839_v41 = vpop.eup %5838  ;;  %2554 = vmatprep.subr.mxu1 %v2515_v30 }
 0x8d9   : > { %v2389_v51 = vmul.f32 %v2387_v42, %v2381_v5  ;;  %v2388_v52 = vadd.f32 1.0, %v5839_v41  ;;  %2555 = vmatpush1.msra.mxu1 %v2514_v29 }
 0x8da   : > { %5602 = vmatmul.mubr.msk.f32.vlgmr.msra.gmra.mxu1 %vm774_vm1, %v6672_v18 }
 0x8db   : > { %v2390_v8 = vmul.f32 %v2388_v52, %v2382_v40  ;;  %2594 = vmatprep.mubr.f32.mxu1 %v7196_v1  ;;  %v2394_v53 = vrot.slane %v2389_v51, %v6445_v2 }
 0x8dd   : > { %v2398_v17 = vrot.slane %v2390_v8, %v6445_v2  ;;  %v6696_v9 = vsel %vm2097_vm4, %v2394_v53, %v6606_v10 }
 0x8de   : > { %5603 = vmatmul.mubr.msk.f32.gmra.mxu1 %vm774_vm1, %v6680_v22 }
 0x8df   : > { %v6689_v19 = vsel %vm2097_vm4, %v2398_v17, %v6597_v26  ;;  %2784 = vmatprep.mubr.f32.mxu1 %v7196_v1 }
 0x8e0   : > { %2750 = vmatprep.subr.mxu1 %v6689_v19 }
 0x8e1   : > { %2751 = vmatpush1.msra.mxu1 %v6696_v9 }
 0x8e2   : > { %5605 = vmatmul.mubr.msk.f32.vlgmr.msra.gmra.mxu1 %vm246_vm0, %v6641_v34 }
 0x8e3   : > { %2790 = vmatprep.mubr.f32.mxu1 %v7196_v1 }
 0x8e6   : > { %5606 = vmatmul.mubr.msk.f32.gmra.mxu1 %vm246_vm0, %v6656_v0 }
 0x8e7   : > { %2982 = vmatprep.mubr.f32.mxu1 %v7196_v1 }
 0x99a   : > { %v2590_v26 = vpop.f32.mrf.mxu1 }
 0x99b   : > { %v2605_v27 = vmul.f32 0.70710677, %v2590_v26  ;;  %v2601_v44 = vmul.f32 0.5, %v2590_v26 }
 0x99c   : > { %v2592_v7 = vpop.f32.mrf.mxu1 }
 0x99d   : > { %v2606_v50 = vmul.f32 0.70710677, %v2592_v7  ;;  %v2602_v58 = vmul.f32 0.5, %v2592_v7 }
 0x99e   : > { %v2596_v54 = vpop.f32.mrf.mxu1 }
 0x99f   : > { %v2607_v24 = vmul.f32 0.70710677, %v2596_v54  ;;  %5840 = verf.f32 %v2606_v50 }
 0x9a0   : > { %v2598_v10 = vpop.f32.mrf.mxu1 }
 0x9a1   : > { %5842 = verf.f32 %v2607_v24  ;;  %v2608_v25 = vmul.f32 0.70710677, %v2598_v10  ;;  %v2604_v11 = vmul.f32 0.5, %v2598_v10 }
 0x9a2   : > { %5844 = verf.f32 %v2605_v27  ;;  %v2786_v4 = vpop.f32.mrf.mxu1 }
 0x9a3   : > { %5846 = verf.f32 %v2608_v25  ;;  %v2797_v34 = vadd.f32 %v2786_v4, %v6402_v35 }
 0x9a4   : > { %v2788_v49 = vpop.f32.mrf.mxu1 }
 0x9a5   : > { %v2798_v0 = vadd.f32 %v2788_v49, %v6404_v46  ;;  %v2805_v47 = vmul.f32 0.70710677, %v2797_v34  ;;  %v2801_v7 = vmul.f32 0.5, %v2797_v34 }
 0x9a6   : > { %v2792_v3 = vpop.f32.mrf.mxu1 }
 0x9a7   : > { %v2806_v32 = vmul.f32 0.70710677, %v2798_v0  ;;  %v2799_v21 = vadd.f32 %v2792_v3, %v6406_v36  ;;  %v2603_v36 = vmul.f32 0.5, %v2596_v54  ;;  %v2802_v17 = vmul.f32 0.5, %v2798_v0 }
 0x9a8   : > { %v2794_v20 = vpop.f32.mrf.mxu1 }
 0x9a9   : > { %v2807_v55 = vmul.f32 0.70710677, %v2799_v21  ;;  %v2800_v43 = vadd.f32 %v2794_v20, %v6408_v37  ;;  %5848 = verf.f32 %v2806_v32  ;;  %v2803_v53 = vmul.f32 0.5, %v2799_v21 }
 0x9ab   : > { %5850 = verf.f32 %v2807_v55  ;;  %v2808_v56 = vmul.f32 0.70710677, %v2800_v43  ;;  %v2804_v51 = vmul.f32 0.5, %v2800_v43 }
 0x9ac   : > { %5852 = verf.f32 %v2805_v47  ;;  %v5841_v23 = vpop.eup %5840 }
 0x9ad   : > { %5854 = verf.f32 %v2808_v56  ;;  %v2614_v46 = vadd.f32 1.0, %v5841_v23 }
 0x9ae   : > { %v5843_v33 = vpop.eup %5842 }
 0x9af   : > { %v5845_v35 = vpop.eup %5844  ;;  %v2615_v63 = vadd.f32 1.0, %v5843_v33  ;;  %v2618_v37 = vmul.f32 %v2614_v46, %v2602_v58 }
 0x9b0   : > { %v5847_v57 = vpop.eup %5846  ;;  %v2613_v12 = vadd.f32 1.0, %v5845_v35 }
 0x9b1   : > { %v2616_v16 = vadd.f32 1.0, %v5847_v57  ;;  %v2619_v28 = vmul.f32 %v2615_v63, %v2603_v36 }
 0x9b2   : > { %v2617_v14 = vmul.f32 %v2613_v12, %v2601_v44 }
 0x9b3   : > { %v2620_v45 = vmul.f32 %v2616_v16, %v2604_v11  ;;  %v6736_v11 = vld [vmem:[%s7162_s2 + $0x40] sm:$0xff] }
 0x9b5   : > { %2652 = vmatprep.subr.mxu0 %v2620_v45 }
 0x9b6   : > { %2653 = vmatpush1.msra.mxu0 %v2619_v28  ;;  %v5849_v30 = vpop.eup %5848 }
 0x9b7   : > { %2654 = vmatprep.subr.mxu0 %v2618_v37  ;;  %v2814_v52 = vadd.f32 1.0, %v5849_v30 }
 0x9b8   : > { %v5851_v29 = vpop.eup %5850  ;;  %2655 = vmatpush1.msra.mxu0 %v2617_v14 }
 0x9b9   : > { %v5853_v5 = vpop.eup %5852  ;;  %5604 = vmatmul.mubr.msk.f32.vlgmr.msra.gmra.mxu0 %vm774_vm1, %v2621_v48  ;;  %v2815_v41 = vadd.f32 1.0, %v5851_v29  ;;  %v2818_v27 = vmul.f32 %v2814_v52, %v2802_v17 }
 0x9ba   : > { %v5855_v42 = vpop.eup %5854  ;;  %2885 = vmatprep.mubr.f32.mxu0 %v7196_v1  ;;  %v2813_v8 = vadd.f32 1.0, %v5853_v5 }
 0x9bb   : > { %v2816_v40 = vadd.f32 1.0, %v5855_v42  ;;  %v2819_v50 = vmul.f32 %v2815_v41, %v2803_v53 }
 0x9bc   : > { %v2817_v54 = vmul.f32 %v2813_v8, %v2801_v7 }
 0x9bd   : > { %v2820_v26 = vmul.f32 %v2816_v40, %v2804_v51 }
 0x9bf   : > { %2849 = vmatprep.subr.mxu0 %v2820_v26 }
 0x9c0   : > { %2850 = vmatpush1.msra.mxu0 %v2819_v50 }
 0x9c1   : > { %2851 = vmatprep.subr.mxu0 %v2818_v27 }
 0x9c2   : > { %2852 = vmatpush1.msra.mxu0 %v2817_v54 }
 0x9c3   : > { %5607 = vmatmul.mubr.msk.f32.vlgmr.msra.gmra.mxu0 %vm774_vm1, %v6672_v18 }
 0x9c4   : > { %2891 = vmatprep.mubr.f32.mxu0 %v7196_v1 }
 0x9c7   : > { %5608 = vmatmul.mubr.msk.f32.gmra.mxu0 %vm774_vm1, %v6680_v22 }
 0x9c8   : > { %3089 = vmatprep.mubr.f32.mxu0 %v7196_v1 }
 0xa79   : > { %v2690_v24 = vpop.f32.mrf.mxu0 }
 0xa7a   : > { %v2697_v10 = vmul.f32 0.70710677, %v2690_v24  ;;  %v2695_v20 = vmul.f32 0.5, %v2690_v24 }
 0xa7b   : > { %v2692_v25 = vpop.f32.mrf.mxu0 }
 0xa7c   : > { %5856 = verf.f32 %v2697_v10  ;;  %v2698_v4 = vmul.f32 0.70710677, %v2692_v25  ;;  %v2696_v23 = vmul.f32 0.5, %v2692_v25 }
 0xa7e   : > { %5858 = verf.f32 %v2698_v4 }
 0xa83   : > { %v2887_v34 = vpop.f32.mrf.mxu0 }
 0xa84   : > { %v2902_v3 = vmul.f32 0.70710677, %v2887_v34  ;;  %v2898_v42 = vmul.f32 0.5, %v2887_v34 }
 0xa85   : > { %v2889_v49 = vpop.f32.mrf.mxu0 }
 0xa86   : > { %v2903_v0 = vmul.f32 0.70710677, %v2889_v49  ;;  %v2899_v29 = vmul.f32 0.5, %v2889_v49 }
 0xa87   : > { %v2893_v32 = vpop.f32.mrf.mxu0 }
 0xa88   : > { %v2904_v21 = vmul.f32 0.70710677, %v2893_v32  ;;  %5860 = verf.f32 %v2903_v0  ;;  %v2900_v30 = vmul.f32 0.5, %v2893_v32 }
 0xa89   : > { %v5857_v18 = vpop.eup %5856  ;;  %v2895_v47 = vpop.f32.mrf.mxu0 }
 0xa8a   : > { %v2701_v55 = vadd.f32 1.0, %v5857_v18  ;;  %5862 = verf.f32 %v2904_v21  ;;  %v2905_v22 = vmul.f32 0.70710677, %v2895_v47  ;;  %v2901_v28 = vmul.f32 0.5, %v2895_v47 }
 0xa8b   : > { %v5859_v43 = vpop.eup %5858  ;;  %5864 = verf.f32 %v2902_v3 }
 0xa8c   : > { %v2703_v56 = vmul.f32 %v2701_v55, %v2695_v20  ;;  %v2702_v33 = vadd.f32 1.0, %v5859_v43  ;;  %5866 = verf.f32 %v2905_v22 }
 0xa8e   : > { %v2704_v35 = vmul.f32 %v2702_v33, %v2696_v23  ;;  %v2709_v57 = vrot.slane %v2703_v56, %v6445_v2 }
 0xa90   : > { %v2713_v63 = vrot.slane %v2704_v35, %v6445_v2  ;;  %v6742_v16 = vsel %vm2705_vm5, %v2709_v57, %v6647_v31 }
 0xa92   : > { %v6731_v46 = vsel %vm2705_vm5, %v2713_v63, %v6636_v15  ;;  %v6751_v15 = vld [vmem:[%s7162_s2 + $0x48] sm:$0xff]  ;;  %v6767_v63 = vld [vmem:[%s7163_s3 + $0x40] sm:$0xff] }
 0xa93   : > { %3055 = vmatprep.subr.mxu0 %v6731_v46 }
 0xa94   : > { %3056 = vmatpush1.msra.mxu0 %v6742_v16 }
 0xa95   : > { %5614 = vmatmul.mubr.msk.f32.vlgmr.msra.gmra.mxu0 %vm246_vm0, %v6736_v11  ;;  %v5861_v12 = vpop.eup %5860 }
 0xa96   : > { %3095 = vmatprep.mubr.f32.mxu0 %v7196_v1  ;;  %v2911_v31 = vadd.f32 1.0, %v5861_v12 }
 0xa97   : > { %v5863_v36 = vpop.eup %5862 }
 0xa98   : > { %v5865_v58 = vpop.eup %5864  ;;  %v2912_v44 = vadd.f32 1.0, %v5863_v36  ;;  %v2915_v51 = vmul.f32 %v2911_v31, %v2899_v29  ;;  %v6775_v31 = vld [vmem:[%s7163_s3 + $0x48] sm:$0xff] }
 0xa99   : > { %v5867_v45 = vpop.eup %5866  ;;  %5615 = vmatmul.mubr.msk.f32.gmra.mxu0 %vm246_vm0, %v6751_v15  ;;  %v2910_v14 = vadd.f32 1.0, %v5865_v58 }
 0xa9a   : > { %v2913_v37 = vadd.f32 1.0, %v5867_v45  ;;  %3296 = vmatprep.mubr.f32.mxu0 %v7196_v1  ;;  %v2916_v41 = vmul.f32 %v2912_v44, %v2900_v30 }
 0xa9b   : > { %v2914_v40 = vmul.f32 %v2910_v14, %v2898_v42 }
 0xa9c   : > { %v2917_v5 = vmul.f32 %v2913_v37, %v2901_v28 }
 0xa9e   : > { %2946 = vmatprep.subr.mxu1 %v2917_v5 }
 0xa9f   : > { %2947 = vmatpush1.msra.mxu1 %v2916_v41 }
 0xaa0   : > { %2948 = vmatprep.subr.mxu1 %v2915_v51 }
 0xaa1   : > { %2949 = vmatpush1.msra.mxu1 %v2914_v40 }
 0xaa2   : > { %5609 = vmatmul.mubr.msk.f32.vlgmr.msra.gmra.mxu1 %vm774_vm1, %v2621_v48 }
 0xaa3   : > { %3196 = vmatprep.mubr.f32.mxu1 %v7196_v1 }
 0xb55   : > { %v3091_v52 = vpop.f32.mrf.mxu0 }
 0xb56   : > { %v3102_v8 = vadd.f32 %v3091_v52, %v6340_v59 }
 0xb57   : > { %v3093_v53 = vpop.f32.mrf.mxu0 }
 0xb58   : > { %v3103_v17 = vadd.f32 %v3093_v53, %v6342_v60  ;;  %v3110_v27 = vmul.f32 0.70710677, %v3102_v8  ;;  %v3106_v22 = vmul.f32 0.5, %v3102_v8 }
 0xb59   : > { %v3097_v26 = vpop.f32.mrf.mxu0 }
 0xb5a   : > { %v3111_v7 = vmul.f32 0.70710677, %v3103_v17  ;;  %v3104_v50 = vadd.f32 %v3097_v26, %v6344_v61  ;;  %v3107_v20 = vmul.f32 0.5, %v3103_v17  ;;  %v7197_v26 = vld [vmem:[#allocation18_spill] sm:$0xff] }
 0xb5b   : > { %v3099_v54 = vpop.f32.mrf.mxu0 }
 0xb5c   : > { %v3112_v24 = vmul.f32 0.70710677, %v3104_v50  ;;  %v3105_v10 = vadd.f32 %v3099_v54, %v6346_v62  ;;  %5868 = verf.f32 %v3111_v7  ;;  %v3108_v47 = vmul.f32 0.5, %v3104_v50 }
 0xb5e   : > { %5870 = verf.f32 %v3112_v24  ;;  %v3113_v48 = vmul.f32 0.70710677, %v3105_v10  ;;  %v3109_v32 = vmul.f32 0.5, %v3105_v10  ;;  %v7198_v24 = vld [vmem:[#allocation19_spill] sm:$0xff] }
 0xb5f   : > { %5872 = verf.f32 %v3110_v27 }
 0xb60   : > { %5874 = verf.f32 %v3113_v48 }
 0xb62   : > { %v2984_v25 = vpop.f32.mrf.mxu1 }
 0xb63   : > { %v2991_v4 = vmul.f32 0.70710677, %v2984_v25  ;;  %v2989_v35 = vmul.f32 0.5, %v2984_v25 }
 0xb64   : > { %v2986_v59 = vpop.f32.mrf.mxu1 }
 0xb65   : > { %5876 = verf.f32 %v2991_v4  ;;  %v2992_v34 = vmul.f32 0.70710677, %v2986_v59  ;;  %v2990_v58 = vmul.f32 0.5, %v2986_v59 }
 0xb67   : > { %5878 = verf.f32 %v2992_v34 }
 0xb69   : > { %v5869_v60 = vpop.eup %5868 }
 0xb6a   : > { %v3119_v18 = vadd.f32 1.0, %v5869_v60 }
 0xb6b   : > { %v5871_v49 = vpop.eup %5870 }
 0xb6c   : > { %v5873_v0 = vpop.eup %5872  ;;  %v3120_v3 = vadd.f32 1.0, %v5871_v49  ;;  %v3123_v23 = vmul.f32 %v3119_v18, %v3107_v20 }
 0xb6d   : > { %v5875_v61 = vpop.eup %5874  ;;  %v3118_v62 = vadd.f32 1.0, %v5873_v0 }
 0xb6e   : > { %v3121_v21 = vadd.f32 1.0, %v5875_v61  ;;  %v3124_v43 = vmul.f32 %v3120_v3, %v3108_v47  ;;  %v3229_v47 = vrot.slane %v6712_v13, 4 }
 0xb6f   : > { %v3122_v33 = vmul.f32 %v3118_v62, %v3106_v22 }
 0xb70   : > { %v3125_v55 = vmul.f32 %v3121_v21, %v3109_v32 }
 0xb72   : > { %v5877_v56 = vpop.eup %5876  ;;  %3160 = vmatprep.subr.mxu1 %v3125_v55 }
 0xb73   : > { %v2995_v57 = vadd.f32 1.0, %v5877_v56  ;;  %3161 = vmatpush1.msra.mxu1 %v3124_v43 }
 0xb74   : > { %v5879_v12 = vpop.eup %5878  ;;  %3162 = vmatprep.subr.mxu1 %v3123_v23 }
 0xb75   : > { %v2997_v36 = vmul.f32 %v2995_v57, %v2989_v35  ;;  %v2996_v45 = vadd.f32 1.0, %v5879_v12  ;;  %3163 = vmatpush1.msra.mxu1 %v3122_v33 }
 0xb76   : > { %5616 = vmatmul.mubr.msk.f32.vlgmr.msra.gmra.mxu1 %vm774_vm1, %v6767_v63 }
 0xb77   : > { %v2998_v44 = vmul.f32 %v2996_v45, %v2990_v58  ;;  %3202 = vmatprep.mubr.f32.mxu1 %v7196_v1  ;;  %v3002_v28 = vrot.slane %v2997_v36, %v6445_v2 }
 0xb79   : > { %v3006_v37 = vrot.slane %v2998_v44, %v6445_v2  ;;  %v6791_v30 = vsel %vm2705_vm5, %v3002_v28, %v6696_v9 }
 0xb7a   : > { %5617 = vmatmul.mubr.msk.f32.gmra.mxu1 %vm774_vm1, %v6775_v31 }
 0xb7b   : > { %v6784_v14 = vsel %vm2705_vm5, %v3006_v37, %v6689_v19  ;;  %3392 = vmatprep.mubr.f32.mxu1 %v7196_v1 }
 0xb7c   : > { %3358 = vmatprep.subr.mxu1 %v6784_v14 }
 0xb7d   : > { %3359 = vmatpush1.msra.mxu1 %v6791_v30 }
 0xb7e   : > { %5619 = vmatmul.mubr.msk.f32.vlgmr.msra.gmra.mxu1 %vm246_vm0, %v6736_v11 }
 0xb7f   : > { %3398 = vmatprep.mubr.f32.mxu1 %v7196_v1 }
 0xb82   : > { %5620 = vmatmul.mubr.msk.f32.gmra.mxu1 %vm246_vm0, %v6751_v15 }
 0xb83   : > { %3590 = vmatprep.mubr.f32.mxu1 %v7196_v1 }
 0xc36   : > { %v3198_v19 = vpop.f32.mrf.mxu1 }
 0xc37   : > { %v3213_v42 = vmul.f32 0.70710677, %v3198_v19  ;;  %v3209_v21 = vmul.f32 0.5, %v3198_v19 }
 0xc38   : > { %v3200_v29 = vpop.f32.mrf.mxu1 }
 0xc39   : > { %v3214_v5 = vmul.f32 0.70710677, %v3200_v29  ;;  %v3210_v3 = vmul.f32 0.5, %v3200_v29 }
 0xc3a   : > { %v3204_v41 = vpop.f32.mrf.mxu1 }
 0xc3b   : > { %v3215_v51 = vmul.f32 0.70710677, %v3204_v41  ;;  %5880 = verf.f32 %v3214_v5  ;;  %v3211_v61 = vmul.f32 0.5, %v3204_v41 }
 0xc3c   : > { %v3206_v9 = vpop.f32.mrf.mxu1 }
 0xc3d   : > { %5882 = verf.f32 %v3215_v51  ;;  %v3216_v40 = vmul.f32 0.70710677, %v3206_v9  ;;  %v3212_v60 = vmul.f32 0.5, %v3206_v9 }
 0xc3e   : > { %5884 = verf.f32 %v3213_v42  ;;  %v3394_v52 = vpop.f32.mrf.mxu1 }
 0xc3f   : > { %5886 = verf.f32 %v3216_v40  ;;  %v3405_v11 = vadd.f32 %v3394_v52, %v6410_v38 }
 0xc40   : > { %v3396_v8 = vpop.f32.mrf.mxu1 }
 0xc41   : > { %v3406_v15 = vadd.f32 %v3396_v8, %v6412_v39  ;;  %v3413_v50 = vmul.f32 0.70710677, %v3405_v11  ;;  %v3409_v44 = vmul.f32 0.5, %v3405_v11 }
 0xc42   : > { %v3400_v53 = vpop.f32.mrf.mxu1 }
 0xc43   : > { %v3414_v17 = vmul.f32 0.70710677, %v3406_v15  ;;  %v3407_v7 = vadd.f32 %v3400_v53, %v7197_v26  ;;  %v3410_v58 = vmul.f32 0.5, %v3406_v15 }
 0xc44   : > { %v3402_v27 = vpop.f32.mrf.mxu1 }
 0xc45   : > { %v3415_v54 = vmul.f32 0.70710677, %v3407_v7  ;;  %v3408_v10 = vadd.f32 %v3402_v27, %v7198_v24  ;;  %5888 = verf.f32 %v3414_v17  ;;  %v3411_v36 = vmul.f32 0.5, %v3407_v7 }
 0xc47   : > { %5890 = verf.f32 %v3415_v54  ;;  %v3416_v48 = vmul.f32 0.70710677, %v3408_v10  ;;  %v3412_v33 = vmul.f32 0.5, %v3408_v10 }
 0xc48   : > { %5892 = verf.f32 %v3413_v50  ;;  %v5881_v25 = vpop.eup %5880 }
 0xc49   : > { %5894 = verf.f32 %v3416_v48  ;;  %v3222_v39 = vadd.f32 1.0, %v5881_v25  ;;  %v6826_v25 = vld [vmem:[%s7162_s2 + $0x50] sm:$0xff] }
 0xc4a   : > { %v5883_v4 = vpop.eup %5882 }
 0xc4b   : > { %v5885_v38 = vpop.eup %5884  ;;  %v3223_v34 = vadd.f32 1.0, %v5883_v4  ;;  %v3226_v62 = vmul.f32 %v3222_v39, %v3210_v3 }
 0xc4c   : > { %v5887_v59 = vpop.eup %5886  ;;  %v3221_v0 = vadd.f32 1.0, %v5885_v38 }
 0xc4d   : > { %v3224_v49 = vadd.f32 1.0, %v5887_v59  ;;  %v3227_v18 = vmul.f32 %v3223_v34, %v3211_v61 }
 0xc4e   : > { %v3225_v20 = vmul.f32 %v3221_v0, %v3209_v21 }
 0xc4f   : > { %v3228_v32 = vmul.f32 %v3224_v49, %v3212_v60 }
 0xc51   : > { %3260 = vmatprep.subr.mxu0 %v3228_v32 }
 0xc52   : > { %3261 = vmatpush1.msra.mxu0 %v3227_v18  ;;  %v5889_v55 = vpop.eup %5888 }
 0xc53   : > { %3262 = vmatprep.subr.mxu0 %v3226_v62  ;;  %v3422_v57 = vadd.f32 1.0, %v5889_v55 }
 0xc54   : > { %v5891_v22 = vpop.eup %5890  ;;  %3263 = vmatpush1.msra.mxu0 %v3225_v20 }
 0xc55   : > { %v5893_v43 = vpop.eup %5892  ;;  %5618 = vmatmul.mubr.msk.f32.vlgmr.msra.gmra.mxu0 %vm774_vm1, %v3229_v47  ;;  %v3423_v23 = vadd.f32 1.0, %v5891_v22  ;;  %v3426_v37 = vmul.f32 %v3422_v57, %v3410_v58 }
 0xc56   : > { %v5895_v56 = vpop.eup %5894  ;;  %3493 = vmatprep.mubr.f32.mxu0 %v7196_v1  ;;  %v3421_v12 = vadd.f32 1.0, %v5893_v43  ;;  %v7199_v43 = vld [vmem:[#allocation6_spill] sm:$0xff] }
 0xc57   : > { %v3424_v35 = vadd.f32 1.0, %v5895_v56  ;;  %v3427_v28 = vmul.f32 %v3423_v23, %v3411_v36  ;;  %v7201_v36 = vld [vmem:[#allocation8_spill] sm:$0xff] }
 0xc58   : > { %v3425_v19 = vmul.f32 %v3421_v12, %v3409_v44 }
 0xc59   : > { %v3428_v45 = vmul.f32 %v3424_v35, %v3412_v33  ;;  %v7200_v33 = vld [vmem:[#allocation7_spill] sm:$0xff] }
 0xc5b   : > { %3457 = vmatprep.subr.mxu0 %v3428_v45 }
 0xc5c   : > { %3458 = vmatpush1.msra.mxu0 %v3427_v28 }
 0xc5d   : > { %3459 = vmatprep.subr.mxu0 %v3426_v37  ;;  %v7202_v37 = vld [vmem:[#allocation9_spill] sm:$0xff] }
 0xc5e   : > { %3460 = vmatpush1.msra.mxu0 %v3425_v19 }
 0xc5f   : > { %5621 = vmatmul.mubr.msk.f32.vlgmr.msra.gmra.mxu0 %vm774_vm1, %v6767_v63 }
 0xc60   : > { %3499 = vmatprep.mubr.f32.mxu0 %v7196_v1 }
 0xc63   : > { %5622 = vmatmul.mubr.msk.f32.gmra.mxu0 %vm774_vm1, %v6775_v31 }
 0xc64   : > { %3697 = vmatprep.mubr.f32.mxu0 %v7196_v1 }
 0xd15   : > { %v3298_v29 = vpop.f32.mrf.mxu0 }
 0xd16   : > { %v3305_v5 = vmul.f32 0.70710677, %v3298_v29  ;;  %v3303_v53 = vmul.f32 0.5, %v3298_v29 }
 0xd17   : > { %v3300_v42 = vpop.f32.mrf.mxu0 }
 0xd18   : > { %5896 = verf.f32 %v3305_v5  ;;  %v3306_v41 = vmul.f32 0.70710677, %v3300_v42  ;;  %v3304_v50 = vmul.f32 0.5, %v3300_v42 }
 0xd1a   : > { %5898 = verf.f32 %v3306_v41 }
 0xd1f   : > { %v3495_v51 = vpop.f32.mrf.mxu0 }
 0xd20   : > { %v3510_v52 = vmul.f32 0.70710677, %v3495_v51  ;;  %v3506_v18 = vmul.f32 0.5, %v3495_v51 }
 0xd21   : > { %v3497_v9 = vpop.f32.mrf.mxu0 }
 0xd22   : > { %v3511_v40 = vmul.f32 0.70710677, %v3497_v9  ;;  %v3507_v32 = vmul.f32 0.5, %v3497_v9 }
 0xd23   : > { %v3501_v11 = vpop.f32.mrf.mxu0 }
 0xd24   : > { %v3512_v8 = vmul.f32 0.70710677, %v3501_v11  ;;  %5900 = verf.f32 %v3511_v40  ;;  %v3508_v3 = vmul.f32 0.5, %v3501_v11 }
 0xd25   : > { %v5897_v63 = vpop.eup %5896  ;;  %v3503_v15 = vpop.f32.mrf.mxu0 }
 0xd26   : > { %v3309_v17 = vadd.f32 1.0, %v5897_v63  ;;  %5902 = verf.f32 %v3512_v8  ;;  %v3513_v31 = vmul.f32 0.70710677, %v3503_v15  ;;  %v3509_v49 = vmul.f32 0.5, %v3503_v15 }
 0xd27   : > { %v5899_v26 = vpop.eup %5898  ;;  %5904 = verf.f32 %v3510_v52 }
 0xd28   : > { %v3311_v7 = vmul.f32 %v3309_v17, %v3303_v53  ;;  %v3310_v27 = vadd.f32 1.0, %v5899_v26  ;;  %5906 = verf.f32 %v3513_v31 }
 0xd2a   : > { %v3312_v54 = vmul.f32 %v3310_v27, %v3304_v50  ;;  %v3317_v24 = vrot.slane %v3311_v7, %v6445_v2 }
 0xd2c   : > { %v3321_v10 = vrot.slane %v3312_v54, %v6445_v2  ;;  %v6832_v4 = vsel %vm3313_vm6, %v3317_v24, %v6742_v16 }
 0xd2e   : > { %v6821_v48 = vsel %vm3313_vm6, %v3321_v10, %v6731_v46  ;;  %v6841_v46 = vld [vmem:[%s7162_s2 + $0x58] sm:$0xff] }
 0xd2f   : > { %3663 = vmatprep.subr.mxu0 %v6821_v48 }
 0xd30   : > { %3664 = vmatpush1.msra.mxu0 %v6832_v4 }
 0xd31   : > { %5628 = vmatmul.mubr.msk.f32.vlgmr.msra.gmra.mxu0 %vm246_vm0, %v6826_v25  ;;  %v5901_v38 = vpop.eup %5900 }
 0xd32   : > { %3703 = vmatprep.mubr.f32.mxu0 %v7196_v1  ;;  %v3519_v16 = vadd.f32 1.0, %v5901_v38 }
 0xd33   : > { %v5903_v59 = vpop.eup %5902 }
 0xd34   : > { %v5905_v34 = vpop.eup %5904  ;;  %v3520_v60 = vadd.f32 1.0, %v5903_v59  ;;  %v3523_v20 = vmul.f32 %v3519_v16, %v3507_v32  ;;  %v6857_v59 = vld [vmem:[%s7163_s3 + $0x50] sm:$0xff] }
 0xd35   : > { %v5907_v39 = vpop.eup %5906  ;;  %5629 = vmatmul.mubr.msk.f32.gmra.mxu0 %vm246_vm0, %v6841_v46  ;;  %v3518_v61 = vadd.f32 1.0, %v5905_v34 }
 0xd36   : > { %v3521_v0 = vadd.f32 1.0, %v5907_v39  ;;  %3904 = vmatprep.mubr.f32.mxu0 %v7196_v1  ;;  %v3524_v62 = vmul.f32 %v3520_v60, %v3508_v3 }
 0xd37   : > { %v3522_v55 = vmul.f32 %v3518_v61, %v3506_v18 }
 0xd38   : > { %v3525_v21 = vmul.f32 %v3521_v0, %v3509_v49  ;;  %v6865_v0 = vld [vmem:[%s7163_s3 + $0x58] sm:$0xff] }
 0xd3a   : > { %3554 = vmatprep.subr.mxu1 %v3525_v21 }
 0xd3b   : > { %3555 = vmatpush1.msra.mxu1 %v3524_v62 }
 0xd3c   : > { %3556 = vmatprep.subr.mxu1 %v3523_v20 }
 0xd3d   : > { %3557 = vmatpush1.msra.mxu1 %v3522_v55 }
 0xd3e   : > { %5623 = vmatmul.mubr.msk.f32.vlgmr.msra.gmra.mxu1 %vm774_vm1, %v3229_v47 }
 0xd3f   : > { %3804 = vmatprep.mubr.f32.mxu1 %v7196_v1 }
 0xdf1   : > { %v3699_v22 = vpop.f32.mrf.mxu0 }
 0xdf2   : > { %v3710_v56 = vadd.f32 %v3699_v22, %v7199_v43 }
 0xdf3   : > { %v3701_v23 = vpop.f32.mrf.mxu0 }
 0xdf4   : > { %v3711_v35 = vadd.f32 %v3701_v23, %v7200_v33  ;;  %v3718_v45 = vmul.f32 0.70710677, %v3710_v56  ;;  %v3714_v7 = vmul.f32 0.5, %v3710_v56 }
 0xdf5   : > { %v3705_v57 = vpop.f32.mrf.mxu0 }
 0xdf6   : > { %v3719_v12 = vmul.f32 0.70710677, %v3711_v35  ;;  %v3712_v58 = vadd.f32 %v3705_v57, %v7201_v36  ;;  %v3715_v31 = vmul.f32 0.5, %v3711_v35  ;;  %v7204_v35 = vld [vmem:[#allocation21_spill] sm:$0xff]  ;;  %v7205_v36 = vld [vmem:[#allocation22_spill] sm:$0xff] }
 0xdf7   : > { %v3707_v44 = vpop.f32.mrf.mxu0 }
 0xdf8   : > { %v3720_v28 = vmul.f32 0.70710677, %v3712_v58  ;;  %v3713_v19 = vadd.f32 %v3707_v44, %v7202_v37  ;;  %5908 = verf.f32 %v3719_v12  ;;  %v3716_v17 = vmul.f32 0.5, %v3712_v58  ;;  %v7206_v37 = vld [vmem:[#allocation23_spill] sm:$0xff] }
 0xdfa   : > { %5910 = verf.f32 %v3720_v28  ;;  %v3721_v47 = vmul.f32 0.70710677, %v3713_v19  ;;  %v3717_v8 = vmul.f32 0.5, %v3713_v19 }
 0xdfb   : > { %5912 = verf.f32 %v3718_v45 }
 0xdfc   : > { %5914 = verf.f32 %v3721_v47 }
 0xdfe   : > { %v3592_v29 = vpop.f32.mrf.mxu1 }
 0xdff   : > { %v3599_v5 = vmul.f32 0.70710677, %v3592_v29  ;;  %v3597_v10 = vmul.f32 0.5, %v3592_v29 }
 0xe00   : > { %v3594_v42 = vpop.f32.mrf.mxu1 }
 0xe01   : > { %5916 = verf.f32 %v3599_v5  ;;  %v3600_v41 = vmul.f32 0.70710677, %v3594_v42  ;;  %v3598_v60 = vmul.f32 0.5, %v3594_v42 }
 0xe03   : > { %5918 = verf.f32 %v3600_v41 }
 0xe05   : > { %v5909_v51 = vpop.eup %5908 }
 0xe06   : > { %v3727_v15 = vadd.f32 1.0, %v5909_v51 }
 0xe07   : > { %v5911_v9 = vpop.eup %5910 }
 0xe08   : > { %v5913_v40 = vpop.eup %5912  ;;  %v3728_v11 = vadd.f32 1.0, %v5911_v9  ;;  %v3731_v54 = vmul.f32 %v3727_v15, %v3715_v31 }
 0xe09   : > { %v5915_v52 = vpop.eup %5914  ;;  %v3726_v53 = vadd.f32 1.0, %v5913_v40 }
 0xe0a   : > { %v3729_v63 = vadd.f32 1.0, %v5915_v52  ;;  %v3732_v50 = vmul.f32 %v3728_v11, %v3716_v17 }
 0xe0b   : > { %v3730_v24 = vmul.f32 %v3726_v53, %v3714_v7 }
 0xe0c   : > { %v3733_v26 = vmul.f32 %v3729_v63, %v3717_v8 }
 0xe0e   : > { %v5917_v27 = vpop.eup %5916  ;;  %3768 = vmatprep.subr.mxu1 %v3733_v26  ;;  %v3837_v26 = vrot.slane %v6712_v13, 5 }
 0xe0f   : > { %v3603_v38 = vadd.f32 1.0, %v5917_v27  ;;  %3769 = vmatpush1.msra.mxu1 %v3732_v50 }
 0xe10   : > { %v5919_v34 = vpop.eup %5918  ;;  %3770 = vmatprep.subr.mxu1 %v3731_v54 }
 0xe11   : > { %v3605_v39 = vmul.f32 %v3603_v38, %v3597_v10  ;;  %v3604_v16 = vadd.f32 1.0, %v5919_v34  ;;  %3771 = vmatpush1.msra.mxu1 %v3730_v24 }
 0xe12   : > { %5630 = vmatmul.mubr.msk.f32.vlgmr.msra.gmra.mxu1 %vm774_vm1, %v6857_v59 }
 0xe13   : > { %v3606_v49 = vmul.f32 %v3604_v16, %v3598_v60  ;;  %3810 = vmatprep.mubr.f32.mxu1 %v7196_v1  ;;  %v3610_v61 = vrot.slane %v3605_v39, %v6445_v2 }
 0xe15   : > { %v3614_v3 = vrot.slane %v3606_v49, %v6445_v2  ;;  %v6881_v21 = vsel %vm3313_vm6, %v3610_v61, %v6791_v30 }
 0xe16   : > { %5631 = vmatmul.mubr.msk.f32.gmra.mxu1 %vm774_vm1, %v6865_v0 }
 0xe17   : > { %v6874_v32 = vsel %vm3313_vm6, %v3614_v3, %v6784_v14  ;;  %4000 = vmatprep.mubr.f32.mxu1 %v7196_v1 }
 0xe18   : > { %3966 = vmatprep.subr.mxu1 %v6874_v32 }
 0xe19   : > { %3967 = vmatpush1.msra.mxu1 %v6881_v21 }
 0xe1a   : > { %5633 = vmatmul.mubr.msk.f32.vlgmr.msra.gmra.mxu1 %vm246_vm0, %v6826_v25  ;;  %v7203_v25 = vld [vmem:[#allocation20_spill] sm:$0xff] }
 0xe1b   : > { %4006 = vmatprep.mubr.f32.mxu1 %v7196_v1 }
 0xe1e   : > { %5634 = vmatmul.mubr.msk.f32.gmra.mxu1 %vm246_vm0, %v6841_v46 }
 0xe1f   : > { %4198 = vmatprep.mubr.f32.mxu1 %v7196_v1 }
 0xed2   : > { %v3806_v14 = vpop.f32.mrf.mxu1 }
 0xed3   : > { %v3821_v20 = vmul.f32 0.70710677, %v3806_v14  ;;  %v3817_v53 = vmul.f32 0.5, %v3806_v14 }
 0xed4   : > { %v3808_v18 = vpop.f32.mrf.mxu1 }
 0xed5   : > { %v3822_v62 = vmul.f32 0.70710677, %v3808_v18  ;;  %v3818_v63 = vmul.f32 0.5, %v3808_v18 }
 0xed6   : > { %v3812_v55 = vpop.f32.mrf.mxu1 }
 0xed7   : > { %v3823_v22 = vmul.f32 0.70710677, %v3812_v55  ;;  %5920 = verf.f32 %v3822_v62  ;;  %v3819_v8 = vmul.f32 0.5, %v3812_v55 }
 0xed8   : > { %v3814_v30 = vpop.f32.mrf.mxu1 }
 0xed9   : > { %5922 = verf.f32 %v3823_v22  ;;  %v3824_v43 = vmul.f32 0.70710677, %v3814_v30  ;;  %v3820_v40 = vmul.f32 0.5, %v3814_v30 }
 0xeda   : > { %5924 = verf.f32 %v3821_v20  ;;  %v4002_v56 = vpop.f32.mrf.mxu1 }
 0xedb   : > { %5926 = verf.f32 %v3824_v43  ;;  %v4013_v23 = vadd.f32 %v4002_v56, %v7203_v25 }
 0xedc   : > { %v4004_v33 = vpop.f32.mrf.mxu1 }
 0xedd   : > { %v4014_v46 = vadd.f32 %v4004_v33, %v7204_v35  ;;  %v4021_v45 = vmul.f32 0.70710677, %v4013_v23  ;;  %v4017_v3 = vmul.f32 0.5, %v4013_v23 }
 0xede   : > { %v4008_v57 = vpop.f32.mrf.mxu1 }
 0xedf   : > { %v4022_v12 = vmul.f32 0.70710677, %v4014_v46  ;;  %v4015_v58 = vadd.f32 %v4008_v57, %v7205_v36  ;;  %v4018_v49 = vmul.f32 0.5, %v4014_v46 }
 0xee0   : > { %v4010_v44 = vpop.f32.mrf.mxu1 }
 0xee1   : > { %v4023_v28 = vmul.f32 0.70710677, %v4015_v58  ;;  %v4016_v19 = vadd.f32 %v4010_v44, %v7206_v37  ;;  %5928 = verf.f32 %v4022_v12  ;;  %v4019_v16 = vmul.f32 0.5, %v4015_v58 }
 0xee3   : > { %5930 = verf.f32 %v4023_v28  ;;  %v4024_v47 = vmul.f32 0.70710677, %v4016_v19  ;;  %v4020_v38 = vmul.f32 0.5, %v4016_v19 }
 0xee4   : > { %5932 = verf.f32 %v4021_v45  ;;  %v5921_v29 = vpop.eup %5920 }
 0xee5   : > { %5934 = verf.f32 %v4024_v47  ;;  %v3830_v9 = vadd.f32 1.0, %v5921_v29  ;;  %v6916_v29 = vld [vmem:[%s7162_s2 + $0x60] sm:$0xff] }
 0xee6   : > { %v5923_v5 = vpop.eup %5922 }
 0xee7   : > { %v5925_v42 = vpop.eup %5924  ;;  %v3831_v51 = vadd.f32 1.0, %v5923_v5  ;;  %v3834_v31 = vmul.f32 %v3830_v9, %v3818_v63 }
 0xee8   : > { %v5927_v41 = vpop.eup %5926  ;;  %v3829_v11 = vadd.f32 1.0, %v5925_v42 }
 0xee9   : > { %v3832_v52 = vadd.f32 1.0, %v5927_v41  ;;  %v3835_v17 = vmul.f32 %v3831_v51, %v3819_v8 }
 0xeea   : > { %v3833_v7 = vmul.f32 %v3829_v11, %v3817_v53 }
 0xeeb   : > { %v3836_v15 = vmul.f32 %v3832_v52, %v3820_v40 }
 0xeed   : > { %3868 = vmatprep.subr.mxu0 %v3836_v15 }
 0xeee   : > { %3869 = vmatpush1.msra.mxu0 %v3835_v17  ;;  %v5929_v50 = vpop.eup %5928 }
 0xeef   : > { %3870 = vmatprep.subr.mxu0 %v3834_v31  ;;  %v4030_v39 = vadd.f32 1.0, %v5929_v50 }
 0xef0   : > { %v5931_v27 = vpop.eup %5930  ;;  %3871 = vmatpush1.msra.mxu0 %v3833_v7 }
 0xef1   : > { %v5933_v54 = vpop.eup %5932  ;;  %5632 = vmatmul.mubr.msk.f32.vlgmr.msra.gmra.mxu0 %vm774_vm1, %v3837_v26  ;;  %v4031_v10 = vadd.f32 1.0, %v5931_v27  ;;  %v4034_v18 = vmul.f32 %v4030_v39, %v4018_v49 }
 0xef2   : > { %v5935_v24 = vpop.eup %5934  ;;  %4101 = vmatprep.mubr.f32.mxu0 %v7196_v1  ;;  %v4029_v60 = vadd.f32 1.0, %v5933_v54  ;;  %v7207_v54 = vld [vmem:[#allocation10_spill] sm:$0xff] }
 0xef3   : > { %v4032_v34 = vadd.f32 1.0, %v5935_v24  ;;  %v4035_v14 = vmul.f32 %v4031_v10, %v4019_v16  ;;  %v7209_v16 = vld [vmem:[#allocation12_spill] sm:$0xff] }
 0xef4   : > { %v4033_v62 = vmul.f32 %v4029_v60, %v4017_v3 }
 0xef5   : > { %v4036_v61 = vmul.f32 %v4032_v34, %v4020_v38  ;;  %v7208_v38 = vld [vmem:[#allocation11_spill] sm:$0xff] }
 0xef7   : > { %4065 = vmatprep.subr.mxu0 %v4036_v61 }
 0xef8   : > { %4066 = vmatpush1.msra.mxu0 %v4035_v14 }
 0xef9   : > { %4067 = vmatprep.subr.mxu0 %v4034_v18  ;;  %v7210_v18 = vld [vmem:[#allocation13_spill] sm:$0xff] }
 0xefa   : > { %4068 = vmatpush1.msra.mxu0 %v4033_v62 }
 0xefb   : > { %5635 = vmatmul.mubr.msk.f32.vlgmr.msra.gmra.mxu0 %vm774_vm1, %v6857_v59 }
 0xefc   : > { %4107 = vmatprep.mubr.f32.mxu0 %v7196_v1 }
 0xeff   : > { %5636 = vmatmul.mubr.msk.f32.gmra.mxu0 %vm774_vm1, %v6865_v0 }
 0xf00   : > { %4305 = vmatprep.mubr.f32.mxu0 %v7196_v1 }
 0xfb1   : > { %v3906_v20 = vpop.f32.mrf.mxu0 }
 0xfb2   : > { %v3913_v55 = vmul.f32 0.70710677, %v3906_v20  ;;  %v3911_v57 = vmul.f32 0.5, %v3906_v20 }
 0xfb3   : > { %v3908_v22 = vpop.f32.mrf.mxu0 }
 0xfb4   : > { %5936 = verf.f32 %v3913_v55  ;;  %v3914_v30 = vmul.f32 0.70710677, %v3908_v22  ;;  %v3912_v45 = vmul.f32 0.5, %v3908_v22 }
 0xfb6   : > { %5938 = verf.f32 %v3914_v30 }
 0xfbb   : > { %v4103_v43 = vpop.f32.mrf.mxu0 }
 0xfbc   : > { %v4118_v23 = vmul.f32 0.70710677, %v4103_v43  ;;  %v4114_v17 = vmul.f32 0.5, %v4103_v43 }
 0xfbd   : > { %v4105_v56 = vpop.f32.mrf.mxu0 }
 0xfbe   : > { %v4119_v25 = vmul.f32 0.70710677, %v4105_v56  ;;  %v4115_v15 = vmul.f32 0.5, %v4105_v56 }
 0xfbf   : > { %v4109_v33 = vpop.f32.mrf.mxu0 }
 0xfc0   : > { %v4120_v35 = vmul.f32 0.70710677, %v4109_v33  ;;  %5940 = verf.f32 %v4119_v25  ;;  %v4116_v63 = vmul.f32 0.5, %v4109_v33 }
 0xfc1   : > { %v5937_v59 = vpop.eup %5936  ;;  %v4111_v46 = vpop.f32.mrf.mxu0 }
 0xfc2   : > { %v3917_v12 = vadd.f32 1.0, %v5937_v59  ;;  %5942 = verf.f32 %v4120_v35  ;;  %v4121_v0 = vmul.f32 0.70710677, %v4111_v46  ;;  %v4117_v52 = vmul.f32 0.5, %v4111_v46 }
 0xfc3   : > { %v5939_v36 = vpop.eup %5938  ;;  %5944 = verf.f32 %v4118_v23 }
 0xfc4   : > { %v3919_v58 = vmul.f32 %v3917_v12, %v3911_v57  ;;  %v3918_v44 = vadd.f32 1.0, %v5939_v36  ;;  %5946 = verf.f32 %v4121_v0 }
 0xfc6   : > { %v3920_v28 = vmul.f32 %v3918_v44, %v3912_v45  ;;  %v3925_v37 = vrot.slane %v3919_v58, %v6445_v2 }
 0xfc8   : > { %v3929_v19 = vrot.slane %v3920_v28, %v6445_v2  ;;  %v6922_v5 = vsel %vm3921_vm7, %v3925_v37, %v6832_v4 }
 0xfca   : > { %v6911_v47 = vsel %vm3921_vm7, %v3929_v19, %v6821_v48  ;;  %v6931_v48 = vld [vmem:[%s7162_s2 + $0x68] sm:$0xff] }
 0xfcb   : > { %4271 = vmatprep.subr.mxu0 %v6911_v47 }
 0xfcc   : > { %4272 = vmatpush1.msra.mxu0 %v6922_v5 }
 0xfcd   : > { %5642 = vmatmul.mubr.msk.f32.vlgmr.msra.gmra.mxu0 %vm246_vm0, %v6916_v29  ;;  %v5941_v42 = vpop.eup %5940 }
 0xfce   : > { %4311 = vmatprep.mubr.f32.mxu0 %v7196_v1  ;;  %v4127_v4 = vadd.f32 1.0, %v5941_v42  ;;  %v6947_v42 = vld [vmem:[%s7163_s3 + $0x60] sm:$0xff] }
 0xfcf   : > { %v5943_v41 = vpop.eup %5942 }
 0xfd0   : > { %v5945_v51 = vpop.eup %5944  ;;  %v4128_v40 = vadd.f32 1.0, %v5943_v41  ;;  %v4131_v7 = vmul.f32 %v4127_v4, %v4115_v15 }
 0xfd1   : > { %v5947_v9 = vpop.eup %5946  ;;  %5643 = vmatmul.mubr.msk.f32.gmra.mxu0 %vm246_vm0, %v6931_v48  ;;  %v4126_v8 = vadd.f32 1.0, %v5945_v51 }
 0xfd2   : > { %v4129_v11 = vadd.f32 1.0, %v5947_v9  ;;  %4512 = vmatprep.mubr.f32.mxu0 %v7196_v1  ;;  %v4132_v31 = vmul.f32 %v4128_v40, %v4116_v63 }
 0xfd3   : > { %v4130_v50 = vmul.f32 %v4126_v8, %v4114_v17 }
 0xfd4   : > { %v4133_v53 = vmul.f32 %v4129_v11, %v4117_v52  ;;  %v6955_v52 = vld [vmem:[%s7163_s3 + $0x68] sm:$0xff] }
 0xfd6   : > { %4162 = vmatprep.subr.mxu1 %v4133_v53 }
 0xfd7   : > { %4163 = vmatpush1.msra.mxu1 %v4132_v31 }
 0xfd8   : > { %4164 = vmatprep.subr.mxu1 %v4131_v7 }
 0xfd9   : > { %4165 = vmatpush1.msra.mxu1 %v4130_v50 }
 0xfda   : > { %5637 = vmatmul.mubr.msk.f32.vlgmr.msra.gmra.mxu1 %vm774_vm1, %v3837_v26 }
 0xfdb   : > { %4412 = vmatprep.mubr.f32.mxu1 %v7196_v1 }
0x108d   : > { %v4307_v27 = vpop.f32.mrf.mxu0 }
0x108e   : > { %v4318_v24 = vadd.f32 %v4307_v27, %v7207_v54 }
0x108f   : > { %v4309_v10 = vpop.f32.mrf.mxu0 }
0x1090   : > { %v4319_v34 = vadd.f32 %v4309_v10, %v7208_v38  ;;  %v4326_v61 = vmul.f32 0.70710677, %v4318_v24  ;;  %v4322_v36 = vmul.f32 0.5, %v4318_v24  ;;  %v7212_v38 = vld [vmem:[#allocation25_spill] sm:$0xff] }
0x1091   : > { %v4313_v39 = vpop.f32.mrf.mxu0 }
0x1092   : > { %v4327_v60 = vmul.f32 0.70710677, %v4319_v34  ;;  %v4320_v49 = vadd.f32 %v4313_v39, %v7209_v16  ;;  %v4323_v12 = vmul.f32 0.5, %v4319_v34 }
0x1093   : > { %v4315_v3 = vpop.f32.mrf.mxu0 }
0x1094   : > { %v4328_v14 = vmul.f32 0.70710677, %v4320_v49  ;;  %v4321_v62 = vadd.f32 %v4315_v3, %v7210_v18  ;;  %5948 = verf.f32 %v4327_v60  ;;  %v4324_v57 = vmul.f32 0.5, %v4320_v49  ;;  %v7213_v60 = vld [vmem:[#allocation26_spill] sm:$0xff] }
0x1096   : > { %5950 = verf.f32 %v4328_v14  ;;  %v4329_v13 = vmul.f32 0.70710677, %v4321_v62  ;;  %v4325_v33 = vmul.f32 0.5, %v4321_v62  ;;  %v7214_v14 = vld [vmem:[#allocation27_spill] sm:$0xff] }
0x1097   : > { %5952 = verf.f32 %v4326_v61 }
0x1098   : > { %5954 = verf.f32 %v4329_v13 }
0x109a   : > { %v4200_v26 = vpop.f32.mrf.mxu1 }
0x109b   : > { %v4207_v20 = vmul.f32 0.70710677, %v4200_v26  ;;  %v4205_v37 = vmul.f32 0.5, %v4200_v26 }
0x109c   : > { %v4202_v55 = vpop.f32.mrf.mxu1 }
0x109d   : > { %5956 = verf.f32 %v4207_v20  ;;  %v4208_v22 = vmul.f32 0.70710677, %v4202_v55  ;;  %v4206_v9 = vmul.f32 0.5, %v4202_v55 }
0x109f   : > { %5958 = verf.f32 %v4208_v22 }
0x10a1   : > { %v5949_v30 = vpop.eup %5948 }
0x10a2   : > { %v4335_v59 = vadd.f32 1.0, %v5949_v30 }
0x10a3   : > { %v5951_v43 = vpop.eup %5950 }
0x10a4   : > { %v5953_v56 = vpop.eup %5952  ;;  %v4336_v23 = vadd.f32 1.0, %v5951_v43  ;;  %v4339_v44 = vmul.f32 %v4335_v59, %v4323_v12  ;;  %v6987_v12 = vld [vmem:[%s7164_s4] sm:$0xff] }
0x10a5   : > { %v5955_v25 = vpop.eup %5954  ;;  %v4334_v46 = vadd.f32 1.0, %v5953_v56 }
0x10a6   : > { %v4337_v35 = vadd.f32 1.0, %v5955_v25  ;;  %v4340_v58 = vmul.f32 %v4336_v23, %v4324_v57 }
0x10a7   : > { %v4338_v28 = vmul.f32 %v4334_v46, %v4322_v36 }
0x10a8   : > { %v4341_v0 = vmul.f32 %v4337_v35, %v4325_v33 }
0x10aa   : > { %v5957_v45 = vpop.eup %5956  ;;  %4376 = vmatprep.subr.mxu1 %v4341_v0  ;;  %v4445_v0 = vrot.slane %v6987_v12, 6 }
0x10ab   : > { %v4211_v19 = vadd.f32 1.0, %v5957_v45  ;;  %4377 = vmatpush1.msra.mxu1 %v4340_v58 }
0x10ac   : > { %v5959_v41 = vpop.eup %5958  ;;  %4378 = vmatprep.subr.mxu1 %v4339_v44 }
0x10ad   : > { %v4213_v51 = vmul.f32 %v4211_v19, %v4205_v37  ;;  %v4212_v40 = vadd.f32 1.0, %v5959_v41  ;;  %4379 = vmatpush1.msra.mxu1 %v4338_v28 }
0x10ae   : > { %5644 = vmatmul.mubr.msk.f32.vlgmr.msra.gmra.mxu1 %vm774_vm1, %v6947_v42 }
0x10af   : > { %v4214_v4 = vmul.f32 %v4212_v40, %v4206_v9  ;;  %4418 = vmatprep.mubr.f32.mxu1 %v7196_v1  ;;  %v4218_v11 = vrot.slane %v4213_v51, %v6445_v2 }
0x10b1   : > { %v4222_v8 = vrot.slane %v4214_v4, %v6445_v2  ;;  %v6971_v15 = vsel %vm3921_vm7, %v4218_v11, %v6881_v21 }
0x10b2   : > { %5645 = vmatmul.mubr.msk.f32.gmra.mxu1 %vm774_vm1, %v6955_v52 }
0x10b3   : > { %v6964_v63 = vsel %vm3921_vm7, %v4222_v8, %v6874_v32  ;;  %4608 = vmatprep.mubr.f32.mxu1 %v7196_v1 }
0x10b4   : > { %4574 = vmatprep.subr.mxu1 %v6964_v63 }
0x10b5   : > { %4575 = vmatpush1.msra.mxu1 %v6971_v15 }
0x10b6   : > { %5647 = vmatmul.mubr.msk.f32.vlgmr.msra.gmra.mxu1 %vm246_vm0, %v6916_v29  ;;  %v7211_v29 = vld [vmem:[#allocation24_spill] sm:$0xff] }
0x10b7   : > { %4614 = vmatprep.mubr.f32.mxu1 %v7196_v1 }
0x10ba   : > { %5648 = vmatmul.mubr.msk.f32.gmra.mxu1 %vm246_vm0, %v6931_v48 }
0x10bb   : > { %4806 = vmatprep.mubr.f32.mxu1 %v7196_v1 }
0x116e   : > { %v4414_v32 = vpop.f32.mrf.mxu1 }
0x116f   : > { %v4429_v31 = vmul.f32 0.70710677, %v4414_v32  ;;  %v4425_v59 = vmul.f32 0.5, %v4414_v32 }
0x1170   : > { %v4416_v53 = vpop.f32.mrf.mxu1 }
0x1171   : > { %v4430_v17 = vmul.f32 0.70710677, %v4416_v53  ;;  %v4426_v33 = vmul.f32 0.5, %v4416_v53 }
0x1172   : > { %v4420_v7 = vpop.f32.mrf.mxu1 }
0x1173   : > { %v4431_v50 = vmul.f32 0.70710677, %v4420_v7  ;;  %5960 = verf.f32 %v4430_v17  ;;  %v4427_v23 = vmul.f32 0.5, %v4420_v7 }
0x1174   : > { %v4422_v21 = vpop.f32.mrf.mxu1 }
0x1175   : > { %5962 = verf.f32 %v4431_v50  ;;  %v4432_v27 = vmul.f32 0.70710677, %v4422_v21  ;;  %v4428_v43 = vmul.f32 0.5, %v4422_v21 }
0x1176   : > { %5964 = verf.f32 %v4429_v31  ;;  %v4610_v54 = vpop.f32.mrf.mxu1 }
0x1177   : > { %5966 = verf.f32 %v4432_v27  ;;  %v4621_v24 = vadd.f32 %v4610_v54, %v7211_v29 }
0x1178   : > { %v4612_v10 = vpop.f32.mrf.mxu1 }
0x1179   : > { %v4622_v48 = vadd.f32 %v4612_v10, %v7212_v38  ;;  %v4629_v49 = vmul.f32 0.70710677, %v4621_v24  ;;  %v4625_v8 = vmul.f32 0.5, %v4621_v24 }
0x117a   : > { %v4616_v34 = vpop.f32.mrf.mxu1 }
0x117b   : > { %v4630_v39 = vmul.f32 0.70710677, %v4622_v48  ;;  %v4623_v16 = vadd.f32 %v4616_v34, %v7213_v60  ;;  %v4626_v4 = vmul.f32 0.5, %v4622_v48 }
0x117c   : > { %v4618_v61 = vpop.f32.mrf.mxu1 }
0x117d   : > { %v4631_v3 = vmul.f32 0.70710677, %v4623_v16  ;;  %v4624_v18 = vadd.f32 %v4618_v61, %v7214_v14  ;;  %5968 = verf.f32 %v4630_v39  ;;  %v4627_v40 = vmul.f32 0.5, %v4623_v16 }
0x117f   : > { %5970 = verf.f32 %v4631_v3  ;;  %v4632_v62 = vmul.f32 0.70710677, %v4624_v18  ;;  %v4628_v19 = vmul.f32 0.5, %v4624_v18 }
0x1180   : > { %5972 = verf.f32 %v4629_v49  ;;  %v5961_v13 = vpop.eup %5960 }
0x1181   : > { %5974 = verf.f32 %v4632_v62  ;;  %v4438_v30 = vadd.f32 1.0, %v5961_v13  ;;  %v7011_v13 = vld [vmem:[%s7162_s2 + $0x70] sm:$0xff] }
0x1182   : > { %v5963_v26 = vpop.eup %5962 }
0x1183   : > { %v5965_v20 = vpop.eup %5964  ;;  %v4439_v22 = vadd.f32 1.0, %v5963_v26  ;;  %v4442_v57 = vmul.f32 %v4438_v30, %v4426_v33 }
0x1184   : > { %v5967_v55 = vpop.eup %5966  ;;  %v4437_v25 = vadd.f32 1.0, %v5965_v20 }
0x1185   : > { %v4440_v56 = vadd.f32 1.0, %v5967_v55  ;;  %v4443_v46 = vmul.f32 %v4439_v22, %v4427_v23 }
0x1186   : > { %v4441_v36 = vmul.f32 %v4437_v25, %v4425_v59 }
0x1187   : > { %v4444_v35 = vmul.f32 %v4440_v56, %v4428_v43 }
0x1189   : > { %4476 = vmatprep.subr.mxu0 %v4444_v35 }
0x118a   : > { %4477 = vmatpush1.msra.mxu0 %v4443_v46  ;;  %v5969_v58 = vpop.eup %5968 }
0x118b   : > { %4478 = vmatprep.subr.mxu0 %v4442_v57  ;;  %v4638_v51 = vadd.f32 1.0, %v5969_v58 }
0x118c   : > { %v5971_v45 = vpop.eup %5970  ;;  %4479 = vmatpush1.msra.mxu0 %v4441_v36 }
0x118d   : > { %v5973_v44 = vpop.eup %5972  ;;  %5646 = vmatmul.mubr.msk.f32.vlgmr.msra.gmra.mxu0 %vm774_vm1, %v4445_v0  ;;  %v4639_v37 = vadd.f32 1.0, %v5971_v45  ;;  %v4642_v53 = vmul.f32 %v4638_v51, %v4626_v4 }
0x118e   : > { %v5975_v28 = vpop.eup %5974  ;;  %4709 = vmatprep.mubr.f32.mxu0 %v7196_v1  ;;  %v4637_v9 = vadd.f32 1.0, %v5973_v44  ;;  %v7215_v44 = vld [vmem:[#allocation14_spill] sm:$0xff] }
0x118f   : > { %v4640_v41 = vadd.f32 1.0, %v5975_v28  ;;  %v4643_v32 = vmul.f32 %v4639_v37, %v4627_v40  ;;  %v7217_v40 = vld [vmem:[#allocation16_spill] sm:$0xff] }
0x1190   : > { %v4641_v17 = vmul.f32 %v4637_v9, %v4625_v8 }
0x1191   : > { %v4644_v11 = vmul.f32 %v4640_v41, %v4628_v19  ;;  %v7216_v19 = vld [vmem:[#allocation15_spill] sm:$0xff] }
0x1193   : > { %4673 = vmatprep.subr.mxu0 %v4644_v11 }
0x1194   : > { %4674 = vmatpush1.msra.mxu0 %v4643_v32 }
0x1195   : > { %4675 = vmatprep.subr.mxu0 %v4642_v53  ;;  %v7218_v53 = vld [vmem:[#allocation17_spill] sm:$0xff] }
0x1196   : > { %4676 = vmatpush1.msra.mxu0 %v4641_v17 }
0x1197   : > { %5649 = vmatmul.mubr.msk.f32.vlgmr.msra.gmra.mxu0 %vm774_vm1, %v6947_v42 }
0x1198   : > { %4715 = vmatprep.mubr.f32.mxu0 %v7196_v1 }
0x119b   : > { %5650 = vmatmul.mubr.msk.f32.gmra.mxu0 %vm774_vm1, %v6955_v52 }
0x119c   : > { %4913 = vmatprep.mubr.f32.mxu0 %v7196_v1 }
0x124d   : > { %v4514_v31 = vpop.f32.mrf.mxu0 }
0x124e   : > { %v4521_v7 = vmul.f32 0.70710677, %v4514_v31  ;;  %v4519_v34 = vmul.f32 0.5, %v4514_v31 }
0x124f   : > { %v4516_v50 = vpop.f32.mrf.mxu0 }
0x1250   : > { %5976 = verf.f32 %v4521_v7  ;;  %v4522_v21 = vmul.f32 0.70710677, %v4516_v50  ;;  %v4520_v49 = vmul.f32 0.5, %v4516_v50 }
0x1252   : > { %5978 = verf.f32 %v4522_v21 }
0x1257   : > { %v4711_v27 = vpop.f32.mrf.mxu0 }
0x1258   : > { %v4726_v24 = vmul.f32 0.70710677, %v4711_v27  ;;  %v4722_v46 = vmul.f32 0.5, %v4711_v27 }
0x1259   : > { %v4713_v54 = vpop.f32.mrf.mxu0 }
0x125a   : > { %v4727_v29 = vmul.f32 0.70710677, %v4713_v54  ;;  %v4723_v35 = vmul.f32 0.5, %v4713_v54 }
0x125b   : > { %v4717_v10 = vpop.f32.mrf.mxu0 }
0x125c   : > { %v4728_v38 = vmul.f32 0.70710677, %v4717_v10  ;;  %5980 = verf.f32 %v4727_v29  ;;  %v4724_v33 = vmul.f32 0.5, %v4717_v10 }
0x125d   : > { %v5977_v42 = vpop.eup %5976  ;;  %v4719_v48 = vpop.f32.mrf.mxu0 }
0x125e   : > { %v4525_v39 = vadd.f32 1.0, %v5977_v42  ;;  %5982 = verf.f32 %v4728_v38  ;;  %v4729_v52 = vmul.f32 0.70710677, %v4719_v48  ;;  %v4725_v56 = vmul.f32 0.5, %v4719_v48 }
0x125f   : > { %v5979_v60 = vpop.eup %5978  ;;  %5984 = verf.f32 %v4726_v24 }
0x1260   : > { %v4527_v16 = vmul.f32 %v4525_v39, %v4519_v34  ;;  %v4526_v61 = vadd.f32 1.0, %v5979_v60  ;;  %5986 = verf.f32 %v4729_v52 }
0x1262   : > { %v4528_v3 = vmul.f32 %v4526_v61, %v4520_v49  ;;  %v4533_v14 = vrot.slane %v4527_v16, %v6445_v2 }
0x1264   : > { %v4537_v18 = vrot.slane %v4528_v3, %v6445_v2  ;;  %v7017_v26 = vsel %vm4529_vm8, %v4533_v14, %v6922_v5 }
0x1266   : > { %v7006_v62 = vsel %vm4529_vm8, %v4537_v18, %v6911_v47  ;;  %v7026_v47 = vld [vmem:[%s7162_s2 + $0x78] sm:$0xff] }
0x1267   : > { %4879 = vmatprep.subr.mxu0 %v7006_v62 }
0x1268   : > { %4880 = vmatpush1.msra.mxu0 %v7017_v26 }
0x1269   : > { %5656 = vmatmul.mubr.msk.f32.vlgmr.msra.gmra.mxu0 %vm246_vm0, %v7011_v13  ;;  %v5981_v20 = vpop.eup %5980 }
0x126a   : > { %4919 = vmatprep.mubr.f32.mxu0 %v7196_v1  ;;  %v4735_v5 = vadd.f32 1.0, %v5981_v20 }
0x126b   : > { %v5983_v55 = vpop.eup %5982 }
0x126c   : > { %v5985_v22 = vpop.eup %5984  ;;  %v4736_v43 = vadd.f32 1.0, %v5983_v55  ;;  %v4739_v36 = vmul.f32 %v4735_v5, %v4723_v35  ;;  %v7042_v55 = vld [vmem:[%s7163_s3 + $0x70] sm:$0xff] }
0x126d   : > { %v5987_v30 = vpop.eup %5986  ;;  %5657 = vmatmul.mubr.msk.f32.gmra.mxu0 %vm246_vm0, %v7026_v47  ;;  %v4734_v23 = vadd.f32 1.0, %v5985_v22 }
0x126e   : > { %v4737_v25 = vadd.f32 1.0, %v5987_v30  ;;  %5120 = vmatprep.mubr.f32.mxu0 %v7196_v1  ;;  %v4740_v57 = vmul.f32 %v4736_v43, %v4724_v33 }
0x126f   : > { %v4738_v58 = vmul.f32 %v4734_v23, %v4722_v46 }
0x1270   : > { %v4741_v59 = vmul.f32 %v4737_v25, %v4725_v56  ;;  %v7050_v25 = vld [vmem:[%s7163_s3 + $0x78] sm:$0xff] }
0x1272   : > { %4770 = vmatprep.subr.mxu1 %v4741_v59 }
0x1273   : > { %4771 = vmatpush1.msra.mxu1 %v4740_v57 }
0x1274   : > { %4772 = vmatprep.subr.mxu1 %v4739_v36 }
0x1275   : > { %4773 = vmatpush1.msra.mxu1 %v4738_v58 }
0x1276   : > { %5651 = vmatmul.mubr.msk.f32.vlgmr.msra.gmra.mxu1 %vm774_vm1, %v4445_v0 }
0x1277   : > { %5020 = vmatprep.mubr.f32.mxu1 %v7196_v1 }
0x1329   : > { %v4915_v45 = vpop.f32.mrf.mxu0 }
0x132a   : > { %v4926_v28 = vadd.f32 %v4915_v45, %v7215_v44 }
0x132b   : > { %v4917_v37 = vpop.f32.mrf.mxu0 }
0x132c   : > { %v4927_v41 = vadd.f32 %v4917_v37, %v7216_v19  ;;  %v4934_v11 = vmul.f32 0.70710677, %v4926_v28  ;;  %v4930_v16 = vmul.f32 0.5, %v4926_v28 }
0x132d   : > { %v4921_v51 = vpop.f32.mrf.mxu0 }
0x132e   : > { %v4935_v9 = vmul.f32 0.70710677, %v4927_v41  ;;  %v4928_v4 = vadd.f32 %v4921_v51, %v7217_v40  ;;  %v4931_v52 = vmul.f32 0.5, %v4927_v41  ;;  %v7220_v41 = vld [vmem:[#allocation29_spill] sm:$0xff]  ;;  %v7221_v40 = vld [vmem:[#allocation30_spill] sm:$0xff] }
0x132f   : > { %v4923_v8 = vpop.f32.mrf.mxu0 }
0x1330   : > { %v4936_v32 = vmul.f32 0.70710677, %v4928_v4  ;;  %v4929_v17 = vadd.f32 %v4923_v8, %v7218_v53  ;;  %5988 = verf.f32 %v4935_v9  ;;  %v4932_v39 = vmul.f32 0.5, %v4928_v4  ;;  %v7222_v53 = vld [vmem:[#allocation31_spill] sm:$0xff] }
0x1332   : > { %5990 = verf.f32 %v4936_v32  ;;  %v4937_v0 = vmul.f32 0.70710677, %v4929_v17  ;;  %v4933_v38 = vmul.f32 0.5, %v4929_v17 }
0x1333   : > { %5992 = verf.f32 %v4934_v11 }
0x1334   : > { %5994 = verf.f32 %v4937_v0 }
0x1336   : > { %v4808_v31 = vpop.f32.mrf.mxu1 }
0x1337   : > { %v4815_v7 = vmul.f32 0.70710677, %v4808_v31  ;;  %v4813_v18 = vmul.f32 0.5, %v4808_v31 }
0x1338   : > { %v4810_v50 = vpop.f32.mrf.mxu1 }
0x1339   : > { %5996 = verf.f32 %v4815_v7  ;;  %v4816_v21 = vmul.f32 0.70710677, %v4810_v50  ;;  %v4814_v43 = vmul.f32 0.5, %v4810_v50 }
0x133b   : > { %5998 = verf.f32 %v4816_v21 }
0x133d   : > { %v5989_v27 = vpop.eup %5988 }
0x133e   : > { %v4943_v48 = vadd.f32 1.0, %v5989_v27 }
0x133f   : > { %v5991_v54 = vpop.eup %5990 }
0x1340   : > { %v5993_v29 = vpop.eup %5992  ;;  %v4944_v10 = vadd.f32 1.0, %v5991_v54  ;;  %v4947_v3 = vmul.f32 %v4943_v48, %v4931_v52 }
0x1341   : > { %v5995_v24 = vpop.eup %5994  ;;  %v4942_v34 = vadd.f32 1.0, %v5993_v29 }
0x1342   : > { %v4945_v42 = vadd.f32 1.0, %v5995_v24  ;;  %v4948_v49 = vmul.f32 %v4944_v10, %v4932_v39 }
0x1343   : > { %v4946_v14 = vmul.f32 %v4942_v34, %v4930_v16 }
0x1344   : > { %v4949_v60 = vmul.f32 %v4945_v42, %v4933_v38 }
0x1346   : > { %v5997_v61 = vpop.eup %5996  ;;  %4984 = vmatprep.subr.mxu1 %v4949_v60  ;;  %v5053_v60 = vrot.slane %v6987_v12, 7 }
0x1347   : > { %v4819_v20 = vadd.f32 1.0, %v5997_v61  ;;  %4985 = vmatpush1.msra.mxu1 %v4948_v49 }
0x1348   : > { %v5999_v22 = vpop.eup %5998  ;;  %4986 = vmatprep.subr.mxu1 %v4947_v3 }
0x1349   : > { %v4821_v30 = vmul.f32 %v4819_v20, %v4813_v18  ;;  %v4820_v5 = vadd.f32 1.0, %v5999_v22  ;;  %4987 = vmatpush1.msra.mxu1 %v4946_v14 }
0x134a   : > { %5658 = vmatmul.mubr.msk.f32.vlgmr.msra.gmra.mxu1 %vm774_vm1, %v7042_v55 }
0x134b   : > { %v4822_v56 = vmul.f32 %v4820_v5, %v4814_v43  ;;  %5026 = vmatprep.mubr.f32.mxu1 %v7196_v1  ;;  %v4826_v23 = vrot.slane %v4821_v30, %v6445_v2 }
0x134d   : > { %v4830_v33 = vrot.slane %v4822_v56, %v6445_v2  ;;  %v7066_v59 = vsel %vm4529_vm8, %v4826_v23, %v6971_v15 }
0x134e   : > { %5659 = vmatmul.mubr.msk.f32.gmra.mxu1 %vm774_vm1, %v7050_v25 }
0x134f   : > { %v7059_v35 = vsel %vm4529_vm8, %v4830_v33, %v6964_v63  ;;  %5216 = vmatprep.mubr.f32.mxu1 %v7196_v1 }
0x1350   : > { %5182 = vmatprep.subr.mxu1 %v7059_v35 }
0x1351   : > { %5183 = vmatpush1.msra.mxu1 %v7066_v59 }
0x1352   : > { %5661 = vmatmul.mubr.msk.f32.vlgmr.msra.gmra.mxu1 %vm246_vm0, %v7011_v13  ;;  %v7219_v13 = vld [vmem:[#allocation28_spill] sm:$0xff] }
0x1353   : > { %5222 = vmatprep.mubr.f32.mxu1 %v7196_v1 }
0x1356   : > { %5662 = vmatmul.mubr.msk.f32.gmra.mxu1 %vm246_vm0, %v7026_v47 }
0x1357   : > { %5414 = vmatprep.mubr.f32.mxu1 %v7196_v1 }
0x140a   : > { %v5022_v63 = vpop.f32.mrf.mxu1 }
0x140b   : > { %v5037_v36 = vmul.f32 0.70710677, %v5022_v63  ;;  %v5033_v34 = vmul.f32 0.5, %v5022_v63 }
0x140c   : > { %v5024_v46 = vpop.f32.mrf.mxu1 }
0x140d   : > { %v5038_v57 = vmul.f32 0.70710677, %v5024_v46  ;;  %v5034_v42 = vmul.f32 0.5, %v5024_v46 }
0x140e   : > { %v5028_v58 = vpop.f32.mrf.mxu1 }
0x140f   : > { %v5039_v45 = vmul.f32 0.70710677, %v5028_v58  ;;  %6000 = verf.f32 %v5038_v57  ;;  %v5035_v38 = vmul.f32 0.5, %v5028_v58 }
0x1410   : > { %v5030_v15 = vpop.f32.mrf.mxu1 }
0x1411   : > { %6002 = verf.f32 %v5039_v45  ;;  %v5040_v44 = vmul.f32 0.70710677, %v5030_v15  ;;  %v5036_v29 = vmul.f32 0.5, %v5030_v15 }
0x1412   : > { %6004 = verf.f32 %v5037_v36  ;;  %v5218_v28 = vpop.f32.mrf.mxu1 }
0x1413   : > { %6006 = verf.f32 %v5040_v44  ;;  %v5229_v37 = vadd.f32 %v5218_v28, %v7219_v13 }
0x1414   : > { %v5220_v19 = vpop.f32.mrf.mxu1 }
0x1415   : > { %v5230_v47 = vadd.f32 %v5220_v19, %v7220_v41  ;;  %v5237_v11 = vmul.f32 0.70710677, %v5229_v37  ;;  %v5233_v33 = vmul.f32 0.5, %v5229_v37 }
0x1416   : > { %v5224_v51 = vpop.f32.mrf.mxu1 }
0x1417   : > { %v5238_v9 = vmul.f32 0.70710677, %v5230_v47  ;;  %v5231_v4 = vadd.f32 %v5224_v51, %v7221_v40  ;;  %v5234_v56 = vmul.f32 0.5, %v5230_v47 }
0x1418   : > { %v5226_v8 = vpop.f32.mrf.mxu1 }
0x1419   : > { %v5239_v32 = vmul.f32 0.70710677, %v5231_v4  ;;  %v5232_v17 = vadd.f32 %v5226_v8, %v7222_v53  ;;  %6008 = verf.f32 %v5238_v9  ;;  %v5235_v5 = vmul.f32 0.5, %v5231_v4 }
0x141b   : > { %6010 = verf.f32 %v5239_v32  ;;  %v5240_v0 = vmul.f32 0.70710677, %v5232_v17  ;;  %v5236_v20 = vmul.f32 0.5, %v5232_v17 }
0x141c   : > { %6012 = verf.f32 %v5237_v11  ;;  %v6001_v31 = vpop.eup %6000 }
0x141d   : > { %6014 = verf.f32 %v5240_v0  ;;  %v5046_v54 = vadd.f32 1.0, %v6001_v31 }
0x141e   : > { %v6003_v7 = vpop.eup %6002 }
0x141f   : > { %v6005_v50 = vpop.eup %6004  ;;  %v5047_v27 = vadd.f32 1.0, %v6003_v7  ;;  %v5050_v52 = vmul.f32 %v5046_v54, %v5034_v42 }
0x1420   : > { %v6007_v21 = vpop.eup %6006  ;;  %v5045_v10 = vadd.f32 1.0, %v6005_v50 }
0x1421   : > { %v5048_v24 = vadd.f32 1.0, %v6007_v21  ;;  %v5051_v39 = vmul.f32 %v5047_v27, %v5035_v38 }
0x1422   : > { %v5049_v16 = vmul.f32 %v5045_v10, %v5033_v34 }
0x1423   : > { %v5052_v48 = vmul.f32 %v5048_v24, %v5036_v29 }
0x1425   : > { %5084 = vmatprep.subr.mxu0 %v5052_v48 }
0x1426   : > { %5085 = vmatpush1.msra.mxu0 %v5051_v39  ;;  %v6009_v49 = vpop.eup %6008 }
0x1427   : > { %5086 = vmatprep.subr.mxu0 %v5050_v52  ;;  %v5246_v30 = vadd.f32 1.0, %v6009_v49 }
0x1428   : > { %v6011_v61 = vpop.eup %6010  ;;  %5087 = vmatpush1.msra.mxu0 %v5049_v16 }
0x1429   : > { %v6013_v3 = vpop.eup %6012  ;;  %5660 = vmatmul.mubr.msk.f32.vlgmr.msra.gmra.mxu0 %vm774_vm1, %v5053_v60  ;;  %v5247_v18 = vadd.f32 1.0, %v6011_v61  ;;  %v5250_v46 = vmul.f32 %v5246_v30, %v5234_v56 }
0x142a   : > { %v6015_v14 = vpop.eup %6014  ;;  %5317 = vmatprep.mubr.f32.mxu0 %v7196_v1  ;;  %v5245_v43 = vadd.f32 1.0, %v6013_v3 }
0x142b   : > { %v5248_v22 = vadd.f32 1.0, %v6015_v14  ;;  %v5251_v63 = vmul.f32 %v5247_v18, %v5235_v5 }
0x142c   : > { %v5249_v57 = vmul.f32 %v5245_v43, %v5233_v33 }
0x142d   : > { %v5252_v23 = vmul.f32 %v5248_v22, %v5236_v20 }
0x142f   : > { %5281 = vmatprep.subr.mxu0 %v5252_v23 }
0x1430   : > { %5282 = vmatpush1.msra.mxu0 %v5251_v63 }
0x1431   : > { %5283 = vmatprep.subr.mxu0 %v5250_v46 }
0x1432   : > { %5284 = vmatpush1.msra.mxu0 %v5249_v57 }
0x1433   : > { %5663 = vmatmul.mubr.msk.f32.vlgmr.msra.gmra.mxu0 %vm774_vm1, %v7042_v55 }
0x1434   : > { %5323 = vmatprep.mubr.f32.mxu0 %v7196_v1 }
0x1437   : > { %5664 = vmatmul.mubr.msk.f32.gmra.mxu0 %vm774_vm1, %v7050_v25 }
0x14e9   : > { %v5122_v36 = vpop.f32.mrf.mxu0 }
0x14ea   : > { %v5129_v58 = vmul.f32 0.70710677, %v5122_v36  ;;  %v5127_v47 = vmul.f32 0.5, %v5122_v36 }
0x14eb   : > { %v5124_v45 = vpop.f32.mrf.mxu0 }
0x14ec   : > { %6016 = verf.f32 %v5129_v58  ;;  %v5130_v15 = vmul.f32 0.70710677, %v5124_v45  ;;  %v5128_v4 = vmul.f32 0.5, %v5124_v45 }
0x14ee   : > { %6018 = verf.f32 %v5130_v15 }
0x14f3   : > { %v5319_v44 = vpop.f32.mrf.mxu0 }
0x14f4   : > { %v5334_v37 = vmul.f32 0.70710677, %v5319_v44  ;;  %v5330_v48 = vmul.f32 0.5, %v5319_v44 }
0x14f5   : > { %v5321_v28 = vpop.f32.mrf.mxu0 }
0x14f6   : > { %v5335_v13 = vmul.f32 0.70710677, %v5321_v28  ;;  %v5331_v38 = vmul.f32 0.5, %v5321_v28 }
0x14f7   : > { %v5325_v19 = vpop.f32.mrf.mxu0 }
0x14f8   : > { %v5336_v41 = vmul.f32 0.70710677, %v5325_v19  ;;  %6020 = verf.f32 %v5335_v13  ;;  %v5332_v10 = vmul.f32 0.5, %v5325_v19 }
0x14f9   : > { %v6017_v55 = vpop.eup %6016  ;;  %v5327_v1 = vpop.f32.mrf.mxu0 }
0x14fa   : > { %v5133_v51 = vadd.f32 1.0, %v6017_v55  ;;  %6022 = verf.f32 %v5336_v41  ;;  %v5337_v25 = vmul.f32 0.70710677, %v5327_v1  ;;  %v5333_v29 = vmul.f32 0.5, %v5327_v1 }
0x14fb   : > { %v6019_v9 = vpop.eup %6018  ;;  %6024 = verf.f32 %v5334_v37 }
0x14fc   : > { %v5135_v40 = vmul.f32 %v5133_v51, %v5127_v47  ;;  %v5134_v11 = vadd.f32 1.0, %v6019_v9  ;;  %6026 = verf.f32 %v5337_v25 }
0x14fe   : > { %v5141_v8 = vrot.slane %v5135_v40, %v6445_v2  ;;  %v5136_v32 = vmul.f32 %v5134_v11, %v5128_v4 }
0x1500   : > { %v5146_v53 = vsel %vm5137_vm9, %v5141_v8, %v7017_v26  ;;  %v5145_v17 = vrot.slane %v5136_v32, %v6445_v2 }
0x1501   : > { %5441 = vst [vmem:[%s7098_s15] sm:$0xff] %v5146_v53 }
0x1502   : > { %v5147_v0 = vsel %vm5137_vm9, %v5145_v17, %v7006_v62 }
0x1503   : > { %5442 = vst [vmem:[%s7098_s15 + $0x8] sm:$0xff] %v5147_v0 }
0x1505   : > { %v6021_v31 = vpop.eup %6020 }
0x1506   : > { %v5343_v54 = vadd.f32 1.0, %v6021_v31 }
0x1507   : > { %v6023_v7 = vpop.eup %6022 }
0x1508   : > { %v6025_v50 = vpop.eup %6024  ;;  %v5344_v27 = vadd.f32 1.0, %v6023_v7  ;;  %v5347_v39 = vmul.f32 %v5343_v54, %v5331_v38 }
0x1509   : > { %v6027_v21 = vpop.eup %6026  ;;  %v5342_v24 = vadd.f32 1.0, %v6025_v50 }
0x150a   : > { %v5345_v26 = vadd.f32 1.0, %v6027_v21  ;;  %v5348_v34 = vmul.f32 %v5344_v27, %v5332_v10 }
0x150b   : > { %v5346_v52 = vmul.f32 %v5342_v24, %v5330_v48 }
0x150c   : > { %v5349_v42 = vmul.f32 %v5345_v26, %v5333_v29 }
0x150e   : > { %5378 = vmatprep.subr.mxu1 %v5349_v42 }
0x150f   : > { %5379 = vmatpush1.msra.mxu1 %v5348_v34 }
0x1510   : > { %5380 = vmatprep.subr.mxu1 %v5347_v39 }
0x1511   : > { %5381 = vmatpush1.msra.mxu1 %v5346_v52 }
0x1512   : > { %5665 = vmatmul.mubr.msk.f32.vlgmr.msra.gmra.mxu1 %vm774_vm1, %v5053_v60 }
0x15d2   : > { %v5416_v62 = vpop.f32.mrf.mxu1 }
0x15d3   : > { %v5423_v16 = vmul.f32 0.70710677, %v5416_v62  ;;  %v5421_v14 = vmul.f32 0.5, %v5416_v62 }
0x15d4   : > { %v5418_v49 = vpop.f32.mrf.mxu1 }
0x15d5   : > { %6028 = verf.f32 %v5423_v16  ;;  %v5424_v61 = vmul.f32 0.70710677, %v5418_v49  ;;  %v5422_v30 = vmul.f32 0.5, %v5418_v49 }
0x15d7   : > { %6030 = verf.f32 %v5424_v61 }
0x15e2   : > { %v6029_v3 = vpop.eup %6028 }
0x15e3   : > { %v5427_v18 = vadd.f32 1.0, %v6029_v3 }
0x15e4   : > { %v6031_v20 = vpop.eup %6030 }
0x15e5   : > { %v5429_v22 = vmul.f32 %v5427_v18, %v5421_v14  ;;  %v5428_v12 = vadd.f32 1.0, %v6031_v20 }
0x15e7   : > { %v5434_v60 = vrot.slane %v5429_v22, %v6445_v2  ;;  %v5430_v43 = vmul.f32 %v5428_v12, %v5422_v30 }
0x15e9   : > { %v5439_v5 = vsel %vm5137_vm9, %v5434_v60, %v7066_v59  ;;  %v5438_v56 = vrot.slane %v5430_v43, %v6445_v2 }
0x15ea   : > { %5443 = vst [vmem:[%s7098_s15 + $0x10] sm:$0xff] %v5439_v5 }
0x15eb   : > { %v5440_v23 = vsel %vm5137_vm9, %v5438_v56, %v7059_v35 }
0x15ec   : > { %5444 = vst [vmem:[%s7098_s15 + $0x18] sm:$0xff] %v5440_v23 }
0x15ed   : > { %6047 = shalt.err (!%p6044_p3)
}
0x15ee   : > { %s6048_s9 = scalar_lea.hbm %s7119_s26, 512  ;;  %s6052_s12 = scalar_lea.hbm %s7165_s5, 1024 }
0x15ef   : > { %p6049_p4 = scmp.ne.s32.totalorder %s7119_s26, %s6048_s9  ;;  %p6053_p9 = scmp.lt.s32.totalorder %s7119_s26, %s7165_s5 }
0x15f0   : > { %p6054_p10 = scmp.lt.s32.totalorder %s6052_s12, %s6048_s9 }
0x15f1   : > { %p6050_p7 = pnand %p6049_p4, %p6166_p5 }
0x15f2   : > { %p6055_p11 = por %p6054_p10, %p6053_p9 }
0x15f3   : > { %p6051_p8 = pneg %p6050_p7 }
0x15f5   : > { %p6056_p12 = pnand %p6055_p11, %p6051_p8 }
0x15f7   : > { %6059 = shalt.err (!%p6056_p12)
}
0x15f8   : > { %5672 = dma.vmem_to_hbm [thread:$0]  (%p6166_p5), %s5461_s17, 512, %s7119_s26, %s5446_s22  }
0x15f9 PF: > { %p5678_p13 = scmp.ge.s32.totalorder %s6094_s21, 2  ;;  %s5472_s15 = sand.u32 1, %s6082_s18  }
0x15fa   : > { %s5473_s16 = scalar_lea.sflag [#allocation4], %s5472_s15 }
0x15fb   : > { %p5675_p0 = pnand %p5678_p13, %p6170_p6 }
0x15fd   : > { %p5676_p1 = pneg %p5675_p0 }
0x15ff   : > { %6077 = dma.done.wait (%p5676_p1), %s5473_s16, 512  }
0x1600   : > { %6079 = vsyncadd (%p5676_p1), %s5473_s16, 4294966784  ;;  %p15_p2 = scmp.ge.s32.totalorder %s6153_s24, 4   ;;  %s7223_s18 = smov %s6086_s19 }
0x1601   : > { %s7224_s19 = smov %s6090_s20  ;;  %s7225_s20 = smov %s6164_s27 }
0x1602   : > { %s7226_s21 = smov %s6153_s24  ;;  %17 = sbr.rel (!%p15_p2) target bundleno = 3 (0x3), region = 89 }
0x1607   :  { %5478 = vsyncpa [#allocation4], 1 }
0x1608   :  { %5480 = vsyncpa [#allocation4 + $0x1], 1 }

</bundles_post_ra>
